<compile_context>
chip_gen: v6e
topology: v6e:2x2x1
jax: 0.10.0
libtpu: 0.0.40
codegen_flags: <defaults>
</compile_context>

<pallas_src>
import math

import jax
import jax.numpy as jnp
from jax import lax
from jax.experimental import pallas as pl
from jax.experimental.pallas import tpu as pltpu


BN_EPS = 0.8           # nn.BatchNorm2d(out_filters, 0.8): the 0.8 lands on eps
LRELU_SLOPE = 0.2


def _round_up(x, m):
    return (x + m - 1) // m * m


def _vmem_limit(block_bytes):
    """Scoped-VMEM request sized to the double-buffered working set.

    Floor 32 MiB (v5e's default scoped limit is only 16 MiB), cap 48 MiB so it
    always fits v7x's 64 MiB physical VMEM.
    """
    need = 2 * block_bytes + (8 << 20)
    return int(min(max(need, 32 << 20), 48 << 20))


# ------------------------------ Pallas kernels ------------------------------

def _make_conv_kernel(ow, n_rows, c_out):
    """Fused (space-to-depth 3x3/s2 conv) + bias + LeakyReLU + folded BN."""
    tap_offsets = (0, 1, ow + 1, ow + 2)          # (ar, ac) -> ar*(ow+1) + ac

    def kernel(x_ref, w_ref, b_ref, scale_ref, shift_ref, o_ref):
        # x_ref:  [1, m_in_pad, 4*C_in]  space-to-depth input, flat spatial
        # w_ref:  [4, 4*C_in, C_out]     zero-padded weight taps
        # b/scale/shift: [1, C_out]
        # o_ref:  [1, n_rows, C_out]     n_rows = oh*(ow+1) (junk col kept)
        x0 = x_ref[0, pl.ds(tap_offsets[0], n_rows), :]
        acc = jnp.dot(x0, w_ref[0], preferred_element_type=jnp.float32)
        for t in range(1, 4):
            xs = x_ref[0, pl.ds(tap_offsets[t], n_rows), :]
            acc = acc + jnp.dot(xs, w_ref[t],
                                preferred_element_type=jnp.float32)
        y = acc + b_ref[...]
        y = jnp.maximum(y, LRELU_SLOPE * y)               # LeakyReLU(0.2)
        # TODO(synk): Dropout2d(0.25) is stochastic; identity in eval mode.
        y = y * scale_ref[...] + shift_ref[...]           # folded eval BatchNorm2d
        o_ref[0] = y.astype(o_ref.dtype)

    return kernel


def _head_kernel(x_ref, w_ref, b_ref, o_ref, acc_ref):
    # x: [N, TF] bf16, w: [TF, 1] bf16, b: [1, 1] f32 -> o: [N, 1] f32
    k = pl.program_id(0)

    @pl.when(k == 0)
    def _():
        acc_ref[...] = jnp.zeros_like(acc_ref)

    acc_ref[...] += jnp.dot(x_ref[...], w_ref[...],
                            preferred_element_type=jnp.float32)

    @pl.when(k == pl.num_programs(0) - 1)
    def _():
        y = acc_ref[...] + b_ref[...]
        o_ref[...] = 1.0 / (1.0 + jnp.exp(-y))            # Sigmoid (exp -> EUP)


# ------------------------------ layer wrappers -------------------------------

def _conv_block(x_nhwc, w_taps, b, scale, shift, *,
                out_dtype=jnp.bfloat16, keep_flat=False):
    """Conv2d(3,3,stride=2,pad=1) + LeakyReLU + (Dropout noop) + BN; NHWC io.

    keep_flat=True returns the raw [N, oh*(ow+1), C_out] flat-row slab (with
    the junk column still present) so the head can consume it without an extra
    slice/copy pass.
    """
    N, H, W, C = x_nhwc.shape
    assert H % 2 == 0 and W % 2 == 0, "even spatial dims expected (stride 2)"
    oh, ow = H // 2, W // 2
    K = 4 * C
    C_out = w_taps.shape[-1]

    # pad + 2x2 space-to-depth, flatten spatial -> [N, (oh+1)*(ow+1), 4*C]
    x_pad = jnp.pad(x_nhwc, ((0, 0), (1, 1), (1, 1), (0, 0)))
    x_s2d = x_pad.reshape(N, oh + 1, 2, ow + 1, 2, C)
    x_s2d = x_s2d.transpose(0, 1, 3, 2, 4, 5).reshape(N, (oh + 1) * (ow + 1), K)
    m_in = (oh + 1) * (ow + 1)
    m_in_pad = _round_up(m_in + 1, 8)     # +1: last tap peeks one row past m_in
    x_s2d = jnp.pad(x_s2d, ((0, 0), (0, m_in_pad - m_in), (0, 0)))
    x_s2d = x_s2d.astype(jnp.bfloat16)

    n_rows = oh * (ow + 1)                # flat output rows (incl. junk column)
    block_bytes = (m_in_pad * K * 2                       # bf16 input block
                   + 4 * K * C_out * 2                    # weight taps
                   + 3 * C_out * 4                        # bias / scale / shift
                   + n_rows * C_out * jnp.dtype(out_dtype).itemsize  # output
                   + n_rows * C_out * 4                   # f32 accumulator temp
                   + 2 * m_in_pad * K * 2)                # slice-copy temps

    out = pl.pallas_call(
        _make_conv_kernel(ow, n_rows, C_out),
        out_shape=jax.ShapeDtypeStruct((N, n_rows, C_out), out_dtype),
        grid=(N,),
        in_specs=[
            pl.BlockSpec((1, m_in_pad, K), lambda n: (n, 0, 0)),
            pl.BlockSpec((4, K, C_out), lambda n: (0, 0, 0)),
            pl.BlockSpec((1, C_out), lambda n: (0, 0)),
            pl.BlockSpec((1, C_out), lambda n: (0, 0)),
            pl.BlockSpec((1, C_out), lambda n: (0, 0)),
        ],
        out_specs=pl.BlockSpec((1, n_rows, C_out), lambda n: (n, 0, 0)),
        compiler_params=pltpu.CompilerParams(
            dimension_semantics=("parallel",),
            vmem_limit_bytes=_vmem_limit(block_bytes)),
    )(x_s2d, w_taps, b[None, :], scale[None, :], shift[None, :])

    if keep_flat:
        return out                        # [N, oh*(ow+1), C_out]
    # flat rows are (r, c) with c in [0, ow]; drop the junk column c == ow.
    return out.reshape(N, oh, ow + 1, C_out)[:, :, :ow, :]


def _linear_sigmoid(flat_bf16, w_bf16, b_f32, *, tile_f=2048):
    """Tiled Linear(F, 1) + Sigmoid head with an f32 accumulator scratch."""
    N, F = flat_bf16.shape
    tf = min(tile_f, _round_up(F, 128))
    f_pad = _round_up(F, tf)
    if f_pad != F:                         # zero pad: contributes 0 to the dot
        flat_bf16 = jnp.pad(flat_bf16, ((0, 0), (0, f_pad - F)))
        w_bf16 = jnp.pad(w_bf16, ((0, f_pad - F), (0, 0)))

    block_bytes = N * tf * 2 + tf * 2 + 4 + N * 4
    return pl.pallas_call(
        _head_kernel,
        out_shape=jax.ShapeDtypeStruct((N, 1), jnp.float32),
        grid=(f_pad // tf,),
        in_specs=[
            pl.BlockSpec((N, tf), lambda k: (0, k)),
            pl.BlockSpec((tf, 1), lambda k: (k, 0)),
            pl.BlockSpec((1, 1), lambda k: (0, 0)),
        ],
        out_specs=pl.BlockSpec((N, 1), lambda k: (0, 0)),
        scratch_shapes=[pltpu.VMEM((N, 1), jnp.float32)],
        compiler_params=pltpu.CompilerParams(
            dimension_semantics=("arbitrary",),
            vmem_limit_bytes=_vmem_limit(block_bytes)),
    )(flat_bf16, w_bf16, b_f32[None, :])


# ------------------------------ param folding --------------------------------

def _fold_conv_weight(w_oihw):
    """[C_out, C_in, 3, 3] -> [4, 4*C_in, C_out] space-to-depth taps (bf16)."""
    c_out, c_in = w_oihw.shape[:2]
    w = jnp.pad(w_oihw, ((0, 0), (0, 0), (0, 1), (0, 1)))   # 3x3 -> 4x4 (zeros)
    w = w.reshape(c_out, c_in, 2, 2, 2, 2)                  # (co, ci, ar, br, ac, bc)
    w = w.transpose(2, 4, 3, 5, 1, 0)                       # (ar, ac, br, bc, ci, co)
    return w.reshape(4, 4 * c_in, c_out).astype(jnp.bfloat16)


def prepare_conv_params(raw_params):
    return [(_fold_conv_weight(w), b, scale, shift)
            for (w, b, scale, shift) in raw_params]


def prepare_head_params(lin_w, lin_b, c_feat, oh, ow):
    """Permute Linear weight rows from NCHW-flatten order to the conv kernel's
    flat-row NHWC order, with zero weights on the junk column rows so the head
    can consume the last conv layer's raw output without a slice/copy."""
    w = lin_w.reshape(c_feat, oh, ow)
    w = jnp.pad(w, ((0, 0), (0, 0), (0, 1)))       # zero weight for junk column
    w = w.transpose(1, 2, 0).reshape(-1, 1)        # (oh*(ow+1)*c_feat, 1)
    return w.astype(jnp.bfloat16), lin_b


# --------------------------------- model -------------------------------------

def init_params(key, channels):
    """Deterministic synthetic params, PyTorch-default-style init."""
    plan = [(channels, 16, False), (16, 32, True), (32, 64, True), (64, 128, True)]
    params = []
    for c_in, c_out, has_bn in plan:
        key, k1, k2 = jax.random.split(key, 3)
        bound = 1.0 / math.sqrt(c_in * 9)
        w = jax.random.uniform(k1, (c_out, c_in, 3, 3), jnp.float32, -bound, bound)
        b = jax.random.uniform(k2, (c_out,), jnp.float32, -bound, bound)
        if has_bn:
            gamma = jnp.ones((c_out,), jnp.float32)
            beta = jnp.zeros((c_out,), jnp.float32)
            run_mean = jnp.zeros((c_out,), jnp.float32)
            run_var = jnp.ones((c_out,), jnp.float32)
            scale = gamma / jnp.sqrt(run_var + BN_EPS)
            shift = beta - run_mean * scale
        else:
            scale = jnp.ones((c_out,), jnp.float32)
            shift = jnp.zeros((c_out,), jnp.float32)
        params.append((w, b, scale, shift))
    return key, params


def init_head(key, feat_dim):
    key, k1, k2 = jax.random.split(key, 3)
    bound = 1.0 / math.sqrt(feat_dim)
    w = jax.random.uniform(k1, (feat_dim, 1), jnp.float32, -bound, bound)
    b = jax.random.uniform(k2, (1,), jnp.float32, -bound, bound)
    return w, b


def discriminator_forward(img_nchw, conv_params, head_w, head_b):
    x = jnp.transpose(img_nchw, (0, 2, 3, 1)).astype(jnp.bfloat16)   # NCHW->NHWC
    n_layers = len(conv_params)
    for li, (w_taps, b, scale, shift) in enumerate(conv_params):
        last = li == n_layers - 1
        x = _conv_block(x, w_taps, b, scale, shift, keep_flat=last)
    n, rows, c = x.shape                  # last layer returned flat-row slab
    flat = x.reshape(n, rows * c)         # free reshape; head_w is pre-permuted
    return _linear_sigmoid(flat, head_w, head_b)


def reference_forward(img_nchw, raw_conv_params, lin_w, lin_b):
    """Pure-JAX reference with matching bf16 quantisation points."""
    y = img_nchw.astype(jnp.bfloat16)
    for (w, b, scale, shift) in raw_conv_params:
        y = lax.conv_general_dilated(
            y, w.astype(jnp.bfloat16), (2, 2), ((1, 1), (1, 1)),
            dimension_numbers=("NCHW", "OIHW", "NCHW"),
            preferred_element_type=jnp.float32)
        y = y + b[None, :, None, None]
        y = jnp.where(y > 0, y, LRELU_SLOPE * y)
        y = y * scale[None, :, None, None] + shift[None, :, None, None]
        y = y.astype(jnp.bfloat16)
    flat = y.reshape(y.shape[0], -1)                       # NCHW .view(N, -1)
    logits = jnp.dot(flat, lin_w.astype(jnp.bfloat16),
                     preferred_element_type=jnp.float32) + lin_b[None, :]
    return jax.nn.sigmoid(logits)


if __name__ == "__main__":
    # Small shapes consistent with the module (original hardcodes 800x512 ->
    # Linear(128*50*32, 1); here 32x32 -> Linear(128*2*2, 1)).
    N, C, H, W = 2, 3, 32, 32
    key = jax.random.PRNGKey(0)
    key, k_img = jax.random.split(key)
    img = jax.random.normal(k_img, (N, C, H, W), jnp.float32)

    key, raw_conv = init_params(key, C)
    oh4, ow4 = H // 2 ** 4, W // 2 ** 4
    feat_dim = 128 * oh4 * ow4
    lin_w, lin_b = init_head(key, feat_dim)

    conv_params = prepare_conv_params(raw_conv)
    head_w, head_b = prepare_head_params(lin_w, lin_b, 128, oh4, ow4)

    fwd = jax.jit(lambda im: discriminator_forward(im, conv_params, head_w, head_b))
    validity = jax.block_until_ready(fwd(img))
    ref = jax.block_until_ready(reference_forward(img, raw_conv, lin_w, lin_b))

    assert validity.shape == (N, 1), validity.shape
    assert jnp.allclose(validity, ref, rtol=2e-2, atol=2e-3), (validity, ref)
    print("KERNEL_OK")
</pallas_src>

<mosaic_0001>
module attributes {stable_mosaic.version = 11 : i64} {
  func.func @kernel(%arg0: i32, %arg1: memref<1x296x12xbf16, #tpu.memory_space<vmem>>, %arg2: memref<4x12x16xbf16, #tpu.memory_space<vmem>>, %arg3: memref<1x16xf32, #tpu.memory_space<vmem>>, %arg4: memref<1x16xf32, #tpu.memory_space<vmem>>, %arg5: memref<1x16xf32, #tpu.memory_space<vmem>>, %arg6: memref<1x272x16xbf16, #tpu.memory_space<vmem>>) attributes {dimension_semantics = [#tpu.dimension_semantics<parallel>], iteration_bounds = array<i64: 2>, scalar_prefetch = 0 : i64, scratch_operands = 0 : i64, tpu.core_type = #tpu.core_type<tc>, window_params = [{transform_indices = @transform_0, window_bounds = array<i64: 1, 296, 12>}, {pipeline_mode = #tpu.pipeline_mode<synchronous>, transform_indices = @transform_1, window_bounds = array<i64: 4, 12, 16>}, {pipeline_mode = #tpu.pipeline_mode<synchronous>, transform_indices = @transform_2, window_bounds = array<i64: 1, 16>}, {pipeline_mode = #tpu.pipeline_mode<synchronous>, transform_indices = @transform_3, window_bounds = array<i64: 1, 16>}, {pipeline_mode = #tpu.pipeline_mode<synchronous>, transform_indices = @transform_4, window_bounds = array<i64: 1, 16>}, {transform_indices = @transform_5, window_bounds = array<i64: 1, 272, 16>}]} {
    %c0 = arith.constant 0 : index
    %c0_0 = arith.constant 0 : index
    %c0_1 = arith.constant 0 : index
    %0 = vector.load %arg1[%c0, %c0_0, %c0_1] : memref<1x296x12xbf16, #tpu.memory_space<vmem>>, vector<1x272x12xbf16>
    %1 = vector.shape_cast %0 : vector<1x272x12xbf16> to vector<272x12xbf16>
    %c0_2 = arith.constant 0 : index
    %c0_3 = arith.constant 0 : index
    %c0_4 = arith.constant 0 : index
    %2 = vector.load %arg2[%c0_2, %c0_3, %c0_4] : memref<4x12x16xbf16, #tpu.memory_space<vmem>>, vector<1x12x16xbf16>
    %3 = vector.shape_cast %2 : vector<1x12x16xbf16> to vector<12x16xbf16>
    %cst = arith.constant dense<0.000000e+00> : vector<272x16xf32>
    %4 = tpu.matmul %1, %3, %cst {dimension_numbers = #tpu.dot_dimension_numbers<[1], [0], [0], [1], [0, 0, 1, 1], [], []>} : vector<272x12xbf16>, vector<12x16xbf16>, vector<272x16xf32> -> vector<272x16xf32>
    %c0_5 = arith.constant 0 : index
    %c1 = arith.constant 1 : index
    %c0_6 = arith.constant 0 : index
    %5 = vector.load %arg1[%c0_5, %c1, %c0_6] : memref<1x296x12xbf16, #tpu.memory_space<vmem>>, vector<1x272x12xbf16>
    %6 = vector.shape_cast %5 : vector<1x272x12xbf16> to vector<272x12xbf16>
    %c1_7 = arith.constant 1 : index
    %c0_8 = arith.constant 0 : index
    %c0_9 = arith.constant 0 : index
    %7 = vector.load %arg2[%c1_7, %c0_8, %c0_9] : memref<4x12x16xbf16, #tpu.memory_space<vmem>>, vector<1x12x16xbf16>
    %8 = vector.shape_cast %7 : vector<1x12x16xbf16> to vector<12x16xbf16>
    %cst_10 = arith.constant dense<0.000000e+00> : vector<272x16xf32>
    %9 = tpu.matmul %6, %8, %cst_10 {dimension_numbers = #tpu.dot_dimension_numbers<[1], [0], [0], [1], [0, 0, 1, 1], [], []>} : vector<272x12xbf16>, vector<12x16xbf16>, vector<272x16xf32> -> vector<272x16xf32>
    %10 = arith.addf %4, %9 : vector<272x16xf32>
    %c0_11 = arith.constant 0 : index
    %c17 = arith.constant 17 : index
    %c0_12 = arith.constant 0 : index
    %11 = vector.load %arg1[%c0_11, %c17, %c0_12] : memref<1x296x12xbf16, #tpu.memory_space<vmem>>, vector<1x272x12xbf16>
    %12 = vector.shape_cast %11 : vector<1x272x12xbf16> to vector<272x12xbf16>
    %c2 = arith.constant 2 : index
    %c0_13 = arith.constant 0 : index
    %c0_14 = arith.constant 0 : index
    %13 = vector.load %arg2[%c2, %c0_13, %c0_14] : memref<4x12x16xbf16, #tpu.memory_space<vmem>>, vector<1x12x16xbf16>
    %14 = vector.shape_cast %13 : vector<1x12x16xbf16> to vector<12x16xbf16>
    %cst_15 = arith.constant dense<0.000000e+00> : vector<272x16xf32>
    %15 = tpu.matmul %12, %14, %cst_15 {dimension_numbers = #tpu.dot_dimension_numbers<[1], [0], [0], [1], [0, 0, 1, 1], [], []>} : vector<272x12xbf16>, vector<12x16xbf16>, vector<272x16xf32> -> vector<272x16xf32>
    %16 = arith.addf %10, %15 : vector<272x16xf32>
    %c0_16 = arith.constant 0 : index
    %c18 = arith.constant 18 : index
    %c0_17 = arith.constant 0 : index
    %17 = vector.load %arg1[%c0_16, %c18, %c0_17] : memref<1x296x12xbf16, #tpu.memory_space<vmem>>, vector<1x272x12xbf16>
    %18 = vector.shape_cast %17 : vector<1x272x12xbf16> to vector<272x12xbf16>
    %c3 = arith.constant 3 : index
    %c0_18 = arith.constant 0 : index
    %c0_19 = arith.constant 0 : index
    %19 = vector.load %arg2[%c3, %c0_18, %c0_19] : memref<4x12x16xbf16, #tpu.memory_space<vmem>>, vector<1x12x16xbf16>
    %20 = vector.shape_cast %19 : vector<1x12x16xbf16> to vector<12x16xbf16>
    %cst_20 = arith.constant dense<0.000000e+00> : vector<272x16xf32>
    %21 = tpu.matmul %18, %20, %cst_20 {dimension_numbers = #tpu.dot_dimension_numbers<[1], [0], [0], [1], [0, 0, 1, 1], [], []>} : vector<272x12xbf16>, vector<12x16xbf16>, vector<272x16xf32> -> vector<272x16xf32>
    %22 = arith.addf %16, %21 : vector<272x16xf32>
    %c0_21 = arith.constant 0 : index
    %c0_22 = arith.constant 0 : index
    %23 = vector.load %arg3[%c0_21, %c0_22] : memref<1x16xf32, #tpu.memory_space<vmem>>, vector<1x16xf32>
    %24 = vector.broadcast %23 : vector<1x16xf32> to vector<272x16xf32>
    %25 = arith.addf %22, %24 : vector<272x16xf32>
    %cst_23 = arith.constant 2.000000e-01 : f32
    %26 = vector.broadcast %cst_23 : f32 to vector<272x16xf32>
    %27 = arith.mulf %26, %25 : vector<272x16xf32>
    %28 = arith.maximumf %25, %27 : vector<272x16xf32>
    %c0_24 = arith.constant 0 : index
    %c0_25 = arith.constant 0 : index
    %29 = vector.load %arg4[%c0_24, %c0_25] : memref<1x16xf32, #tpu.memory_space<vmem>>, vector<1x16xf32>
    %30 = vector.broadcast %29 : vector<1x16xf32> to vector<272x16xf32>
    %31 = arith.mulf %28, %30 : vector<272x16xf32>
    %c0_26 = arith.constant 0 : index
    %c0_27 = arith.constant 0 : index
    %32 = vector.load %arg5[%c0_26, %c0_27] : memref<1x16xf32, #tpu.memory_space<vmem>>, vector<1x16xf32>
    %33 = vector.broadcast %32 : vector<1x16xf32> to vector<272x16xf32>
    %34 = arith.addf %31, %33 : vector<272x16xf32>
    %35 = arith.truncf %34 : vector<272x16xf32> to vector<272x16xbf16>
    %c0_28 = arith.constant 0 : index
    %c0_29 = arith.constant 0 : index
    %c0_30 = arith.constant 0 : index
    %36 = vector.load %arg6[%c0_28, %c0_29, %c0_30] : memref<1x272x16xbf16, #tpu.memory_space<vmem>>, vector<1x272x16xbf16>
    %37 = vector.shape_cast %36 : vector<1x272x16xbf16> to vector<272x16xbf16>
    %38 = vector.shape_cast %35 : vector<272x16xbf16> to vector<1x272x16xbf16>
    tpu.vector_store %arg6[%c0_28, %c0_29, %c0_30], %38 {strides = array<i32>} : memref<1x272x16xbf16, #tpu.memory_space<vmem>>, vector<1x272x16xbf16>,
    return
  }
  func.func @transform_0(%arg0: i32) -> (i32, i32, i32) {
    %c0_i32 = arith.constant 0 : i32
    %c0_i32_0 = arith.constant 0 : i32
    %c0_i32_1 = arith.constant 0 : i32
    return %arg0, %c0_i32, %c0_i32_0 : i32, i32, i32
  }
  func.func @transform_1(%arg0: i32) -> (i32, i32, i32) {
    %c0_i32 = arith.constant 0 : i32
    %c0_i32_0 = arith.constant 0 : i32
    %c0_i32_1 = arith.constant 0 : i32
    %c0_i32_2 = arith.constant 0 : i32
    return %c0_i32, %c0_i32_0, %c0_i32_1 : i32, i32, i32
  }
  func.func @transform_2(%arg0: i32) -> (i32, i32) {
    %c0_i32 = arith.constant 0 : i32
    %c0_i32_0 = arith.constant 0 : i32
    %c0_i32_1 = arith.constant 0 : i32
    return %c0_i32, %c0_i32_0 : i32, i32
  }
  func.func @transform_3(%arg0: i32) -> (i32, i32) {
    %c0_i32 = arith.constant 0 : i32
    %c0_i32_0 = arith.constant 0 : i32
    %c0_i32_1 = arith.constant 0 : i32
    return %c0_i32, %c0_i32_0 : i32, i32
  }
  func.func @transform_4(%arg0: i32) -> (i32, i32) {
    %c0_i32 = arith.constant 0 : i32
    %c0_i32_0 = arith.constant 0 : i32
    %c0_i32_1 = arith.constant 0 : i32
    return %c0_i32, %c0_i32_0 : i32, i32
  }
  func.func @transform_5(%arg0: i32) -> (i32, i32, i32) {
    %c0_i32 = arith.constant 0 : i32
    %c0_i32_0 = arith.constant 0 : i32
    %c0_i32_1 = arith.constant 0 : i32
    return %arg0, %c0_i32, %c0_i32_0 : i32, i32, i32
  }
}

module attributes {stable_mosaic.version = 11 : i64} {
  func.func @kernel(%arg0: i32, %arg1: memref<1x88x64xbf16, #tpu.memory_space<vmem>>, %arg2: memref<4x64x32xbf16, #tpu.memory_space<vmem>>, %arg3: memref<1x32xf32, #tpu.memory_space<vmem>>, %arg4: memref<1x32xf32, #tpu.memory_space<vmem>>, %arg5: memref<1x32xf32, #tpu.memory_space<vmem>>, %arg6: memref<1x72x32xbf16, #tpu.memory_space<vmem>>) attributes {dimension_semantics = [#tpu.dimension_semantics<parallel>], iteration_bounds = array<i64: 2>, scalar_prefetch = 0 : i64, scratch_operands = 0 : i64, tpu.core_type = #tpu.core_type<tc>, window_params = [{transform_indices = @transform_0, window_bounds = array<i64: 1, 88, 64>}, {pipeline_mode = #tpu.pipeline_mode<synchronous>, transform_indices = @transform_1, window_bounds = array<i64: 4, 64, 32>}, {pipeline_mode = #tpu.pipeline_mode<synchronous>, transform_indices = @transform_2, window_bounds = array<i64: 1, 32>}, {pipeline_mode = #tpu.pipeline_mode<synchronous>, transform_indices = @transform_3, window_bounds = array<i64: 1, 32>}, {pipeline_mode = #tpu.pipeline_mode<synchronous>, transform_indices = @transform_4, window_bounds = array<i64: 1, 32>}, {transform_indices = @transform_5, window_bounds = array<i64: 1, 72, 32>}]} {
    %c0 = arith.constant 0 : index
    %c0_0 = arith.constant 0 : index
    %c0_1 = arith.constant 0 : index
    %0 = vector.load %arg1[%c0, %c0_0, %c0_1] : memref<1x88x64xbf16, #tpu.memory_space<vmem>>, vector<1x72x64xbf16>
    %1 = vector.shape_cast %0 : vector<1x72x64xbf16> to vector<72x64xbf16>
    %c0_2 = arith.constant 0 : index
    %c0_3 = arith.constant 0 : index
    %c0_4 = arith.constant 0 : index
    %2 = vector.load %arg2[%c0_2, %c0_3, %c0_4] : memref<4x64x32xbf16, #tpu.memory_space<vmem>>, vector<1x64x32xbf16>
    %3 = vector.shape_cast %2 : vector<1x64x32xbf16> to vector<64x32xbf16>
    %cst = arith.constant dense<0.000000e+00> : vector<72x32xf32>
    %4 = tpu.matmul %1, %3, %cst {dimension_numbers = #tpu.dot_dimension_numbers<[1], [0], [0], [1], [0, 0, 1, 1], [], []>} : vector<72x64xbf16>, vector<64x32xbf16>, vector<72x32xf32> -> vector<72x32xf32>
    %c0_5 = arith.constant 0 : index
    %c1 = arith.constant 1 : index
    %c0_6 = arith.constant 0 : index
    %5 = vector.load %arg1[%c0_5, %c1, %c0_6] : memref<1x88x64xbf16, #tpu.memory_space<vmem>>, vector<1x72x64xbf16>
    %6 = vector.shape_cast %5 : vector<1x72x64xbf16> to vector<72x64xbf16>
    %c1_7 = arith.constant 1 : index
    %c0_8 = arith.constant 0 : index
    %c0_9 = arith.constant 0 : index
    %7 = vector.load %arg2[%c1_7, %c0_8, %c0_9] : memref<4x64x32xbf16, #tpu.memory_space<vmem>>, vector<1x64x32xbf16>
    %8 = vector.shape_cast %7 : vector<1x64x32xbf16> to vector<64x32xbf16>
    %cst_10 = arith.constant dense<0.000000e+00> : vector<72x32xf32>
    %9 = tpu.matmul %6, %8, %cst_10 {dimension_numbers = #tpu.dot_dimension_numbers<[1], [0], [0], [1], [0, 0, 1, 1], [], []>} : vector<72x64xbf16>, vector<64x32xbf16>, vector<72x32xf32> -> vector<72x32xf32>
    %10 = arith.addf %4, %9 : vector<72x32xf32>
    %c0_11 = arith.constant 0 : index
    %c9 = arith.constant 9 : index
    %c0_12 = arith.constant 0 : index
    %11 = vector.load %arg1[%c0_11, %c9, %c0_12] : memref<1x88x64xbf16, #tpu.memory_space<vmem>>, vector<1x72x64xbf16>
    %12 = vector.shape_cast %11 : vector<1x72x64xbf16> to vector<72x64xbf16>
    %c2 = arith.constant 2 : index
    %c0_13 = arith.constant 0 : index
    %c0_14 = arith.constant 0 : index
    %13 = vector.load %arg2[%c2, %c0_13, %c0_14] : memref<4x64x32xbf16, #tpu.memory_space<vmem>>, vector<1x64x32xbf16>
    %14 = vector.shape_cast %13 : vector<1x64x32xbf16> to vector<64x32xbf16>
    %cst_15 = arith.constant dense<0.000000e+00> : vector<72x32xf32>
    %15 = tpu.matmul %12, %14, %cst_15 {dimension_numbers = #tpu.dot_dimension_numbers<[1], [0], [0], [1], [0, 0, 1, 1], [], []>} : vector<72x64xbf16>, vector<64x32xbf16>, vector<72x32xf32> -> vector<72x32xf32>
    %16 = arith.addf %10, %15 : vector<72x32xf32>
    %c0_16 = arith.constant 0 : index
    %c10 = arith.constant 10 : index
    %c0_17 = arith.constant 0 : index
    %17 = vector.load %arg1[%c0_16, %c10, %c0_17] : memref<1x88x64xbf16, #tpu.memory_space<vmem>>, vector<1x72x64xbf16>
    %18 = vector.shape_cast %17 : vector<1x72x64xbf16> to vector<72x64xbf16>
    %c3 = arith.constant 3 : index
    %c0_18 = arith.constant 0 : index
    %c0_19 = arith.constant 0 : index
    %19 = vector.load %arg2[%c3, %c0_18, %c0_19] : memref<4x64x32xbf16, #tpu.memory_space<vmem>>, vector<1x64x32xbf16>
    %20 = vector.shape_cast %19 : vector<1x64x32xbf16> to vector<64x32xbf16>
    %cst_20 = arith.constant dense<0.000000e+00> : vector<72x32xf32>
    %21 = tpu.matmul %18, %20, %cst_20 {dimension_numbers = #tpu.dot_dimension_numbers<[1], [0], [0], [1], [0, 0, 1, 1], [], []>} : vector<72x64xbf16>, vector<64x32xbf16>, vector<72x32xf32> -> vector<72x32xf32>
    %22 = arith.addf %16, %21 : vector<72x32xf32>
    %c0_21 = arith.constant 0 : index
    %c0_22 = arith.constant 0 : index
    %23 = vector.load %arg3[%c0_21, %c0_22] : memref<1x32xf32, #tpu.memory_space<vmem>>, vector<1x32xf32>
    %24 = vector.broadcast %23 : vector<1x32xf32> to vector<72x32xf32>
    %25 = arith.addf %22, %24 : vector<72x32xf32>
    %cst_23 = arith.constant 2.000000e-01 : f32
    %26 = vector.broadcast %cst_23 : f32 to vector<72x32xf32>
    %27 = arith.mulf %26, %25 : vector<72x32xf32>
    %28 = arith.maximumf %25, %27 : vector<72x32xf32>
    %c0_24 = arith.constant 0 : index
    %c0_25 = arith.constant 0 : index
    %29 = vector.load %arg4[%c0_24, %c0_25] : memref<1x32xf32, #tpu.memory_space<vmem>>, vector<1x32xf32>
    %30 = vector.broadcast %29 : vector<1x32xf32> to vector<72x32xf32>
    %31 = arith.mulf %28, %30 : vector<72x32xf32>
    %c0_26 = arith.constant 0 : index
    %c0_27 = arith.constant 0 : index
    %32 = vector.load %arg5[%c0_26, %c0_27] : memref<1x32xf32, #tpu.memory_space<vmem>>, vector<1x32xf32>
    %33 = vector.broadcast %32 : vector<1x32xf32> to vector<72x32xf32>
    %34 = arith.addf %31, %33 : vector<72x32xf32>
    %35 = arith.truncf %34 : vector<72x32xf32> to vector<72x32xbf16>
    %c0_28 = arith.constant 0 : index
    %c0_29 = arith.constant 0 : index
    %c0_30 = arith.constant 0 : index
    %36 = vector.load %arg6[%c0_28, %c0_29, %c0_30] : memref<1x72x32xbf16, #tpu.memory_space<vmem>>, vector<1x72x32xbf16>
    %37 = vector.shape_cast %36 : vector<1x72x32xbf16> to vector<72x32xbf16>
    %38 = vector.shape_cast %35 : vector<72x32xbf16> to vector<1x72x32xbf16>
    tpu.vector_store %arg6[%c0_28, %c0_29, %c0_30], %38 {strides = array<i32>} : memref<1x72x32xbf16, #tpu.memory_space<vmem>>, vector<1x72x32xbf16>,
    return
  }
  func.func @transform_0(%arg0: i32) -> (i32, i32, i32) {
    %c0_i32 = arith.constant 0 : i32
    %c0_i32_0 = arith.constant 0 : i32
    %c0_i32_1 = arith.constant 0 : i32
    return %arg0, %c0_i32, %c0_i32_0 : i32, i32, i32
  }
  func.func @transform_1(%arg0: i32) -> (i32, i32, i32) {
    %c0_i32 = arith.constant 0 : i32
    %c0_i32_0 = arith.constant 0 : i32
    %c0_i32_1 = arith.constant 0 : i32
    %c0_i32_2 = arith.constant 0 : i32
    return %c0_i32, %c0_i32_0, %c0_i32_1 : i32, i32, i32
  }
  func.func @transform_2(%arg0: i32) -> (i32, i32) {
    %c0_i32 = arith.constant 0 : i32
    %c0_i32_0 = arith.constant 0 : i32
    %c0_i32_1 = arith.constant 0 : i32
    return %c0_i32, %c0_i32_0 : i32, i32
  }
  func.func @transform_3(%arg0: i32) -> (i32, i32) {
    %c0_i32 = arith.constant 0 : i32
    %c0_i32_0 = arith.constant 0 : i32
    %c0_i32_1 = arith.constant 0 : i32
    return %c0_i32, %c0_i32_0 : i32, i32
  }
  func.func @transform_4(%arg0: i32) -> (i32, i32) {
    %c0_i32 = arith.constant 0 : i32
    %c0_i32_0 = arith.constant 0 : i32
    %c0_i32_1 = arith.constant 0 : i32
    return %c0_i32, %c0_i32_0 : i32, i32
  }
  func.func @transform_5(%arg0: i32) -> (i32, i32, i32) {
    %c0_i32 = arith.constant 0 : i32
    %c0_i32_0 = arith.constant 0 : i32
    %c0_i32_1 = arith.constant 0 : i32
    return %arg0, %c0_i32, %c0_i32_0 : i32, i32, i32
  }
}

module attributes {stable_mosaic.version = 11 : i64} {
  func.func @kernel(%arg0: i32, %arg1: memref<1x32x128xbf16, #tpu.memory_space<vmem>>, %arg2: memref<4x128x64xbf16, #tpu.memory_space<vmem>>, %arg3: memref<1x64xf32, #tpu.memory_space<vmem>>, %arg4: memref<1x64xf32, #tpu.memory_space<vmem>>, %arg5: memref<1x64xf32, #tpu.memory_space<vmem>>, %arg6: memref<1x20x64xbf16, #tpu.memory_space<vmem>>) attributes {dimension_semantics = [#tpu.dimension_semantics<parallel>], iteration_bounds = array<i64: 2>, scalar_prefetch = 0 : i64, scratch_operands = 0 : i64, tpu.core_type = #tpu.core_type<tc>, window_params = [{transform_indices = @transform_0, window_bounds = array<i64: 1, 32, 128>}, {pipeline_mode = #tpu.pipeline_mode<synchronous>, transform_indices = @transform_1, window_bounds = array<i64: 4, 128, 64>}, {pipeline_mode = #tpu.pipeline_mode<synchronous>, transform_indices = @transform_2, window_bounds = array<i64: 1, 64>}, {pipeline_mode = #tpu.pipeline_mode<synchronous>, transform_indices = @transform_3, window_bounds = array<i64: 1, 64>}, {pipeline_mode = #tpu.pipeline_mode<synchronous>, transform_indices = @transform_4, window_bounds = array<i64: 1, 64>}, {transform_indices = @transform_5, window_bounds = array<i64: 1, 20, 64>}]} {
    %c0 = arith.constant 0 : index
    %c0_0 = arith.constant 0 : index
    %c0_1 = arith.constant 0 : index
    %0 = vector.load %arg1[%c0, %c0_0, %c0_1] : memref<1x32x128xbf16, #tpu.memory_space<vmem>>, vector<1x20x128xbf16>
    %1 = vector.shape_cast %0 : vector<1x20x128xbf16> to vector<20x128xbf16>
    %c0_2 = arith.constant 0 : index
    %c0_3 = arith.constant 0 : index
    %c0_4 = arith.constant 0 : index
    %2 = vector.load %arg2[%c0_2, %c0_3, %c0_4] : memref<4x128x64xbf16, #tpu.memory_space<vmem>>, vector<1x128x64xbf16>
    %3 = vector.shape_cast %2 : vector<1x128x64xbf16> to vector<128x64xbf16>
    %cst = arith.constant dense<0.000000e+00> : vector<20x64xf32>
    %4 = tpu.matmul %1, %3, %cst {dimension_numbers = #tpu.dot_dimension_numbers<[1], [0], [0], [1], [0, 0, 1, 1], [], []>} : vector<20x128xbf16>, vector<128x64xbf16>, vector<20x64xf32> -> vector<20x64xf32>
    %c0_5 = arith.constant 0 : index
    %c1 = arith.constant 1 : index
    %c0_6 = arith.constant 0 : index
    %5 = vector.load %arg1[%c0_5, %c1, %c0_6] : memref<1x32x128xbf16, #tpu.memory_space<vmem>>, vector<1x20x128xbf16>
    %6 = vector.shape_cast %5 : vector<1x20x128xbf16> to vector<20x128xbf16>
    %c1_7 = arith.constant 1 : index
    %c0_8 = arith.constant 0 : index
    %c0_9 = arith.constant 0 : index
    %7 = vector.load %arg2[%c1_7, %c0_8, %c0_9] : memref<4x128x64xbf16, #tpu.memory_space<vmem>>, vector<1x128x64xbf16>
    %8 = vector.shape_cast %7 : vector<1x128x64xbf16> to vector<128x64xbf16>
    %cst_10 = arith.constant dense<0.000000e+00> : vector<20x64xf32>
    %9 = tpu.matmul %6, %8, %cst_10 {dimension_numbers = #tpu.dot_dimension_numbers<[1], [0], [0], [1], [0, 0, 1, 1], [], []>} : vector<20x128xbf16>, vector<128x64xbf16>, vector<20x64xf32> -> vector<20x64xf32>
    %10 = arith.addf %4, %9 : vector<20x64xf32>
    %c0_11 = arith.constant 0 : index
    %c5 = arith.constant 5 : index
    %c0_12 = arith.constant 0 : index
    %11 = vector.load %arg1[%c0_11, %c5, %c0_12] : memref<1x32x128xbf16, #tpu.memory_space<vmem>>, vector<1x20x128xbf16>
    %12 = vector.shape_cast %11 : vector<1x20x128xbf16> to vector<20x128xbf16>
    %c2 = arith.constant 2 : index
    %c0_13 = arith.constant 0 : index
    %c0_14 = arith.constant 0 : index
    %13 = vector.load %arg2[%c2, %c0_13, %c0_14] : memref<4x128x64xbf16, #tpu.memory_space<vmem>>, vector<1x128x64xbf16>
    %14 = vector.shape_cast %13 : vector<1x128x64xbf16> to vector<128x64xbf16>
    %cst_15 = arith.constant dense<0.000000e+00> : vector<20x64xf32>
    %15 = tpu.matmul %12, %14, %cst_15 {dimension_numbers = #tpu.dot_dimension_numbers<[1], [0], [0], [1], [0, 0, 1, 1], [], []>} : vector<20x128xbf16>, vector<128x64xbf16>, vector<20x64xf32> -> vector<20x64xf32>
    %16 = arith.addf %10, %15 : vector<20x64xf32>
    %c0_16 = arith.constant 0 : index
    %c6 = arith.constant 6 : index
    %c0_17 = arith.constant 0 : index
    %17 = vector.load %arg1[%c0_16, %c6, %c0_17] : memref<1x32x128xbf16, #tpu.memory_space<vmem>>, vector<1x20x128xbf16>
    %18 = vector.shape_cast %17 : vector<1x20x128xbf16> to vector<20x128xbf16>
    %c3 = arith.constant 3 : index
    %c0_18 = arith.constant 0 : index
    %c0_19 = arith.constant 0 : index
    %19 = vector.load %arg2[%c3, %c0_18, %c0_19] : memref<4x128x64xbf16, #tpu.memory_space<vmem>>, vector<1x128x64xbf16>
    %20 = vector.shape_cast %19 : vector<1x128x64xbf16> to vector<128x64xbf16>
    %cst_20 = arith.constant dense<0.000000e+00> : vector<20x64xf32>
    %21 = tpu.matmul %18, %20, %cst_20 {dimension_numbers = #tpu.dot_dimension_numbers<[1], [0], [0], [1], [0, 0, 1, 1], [], []>} : vector<20x128xbf16>, vector<128x64xbf16>, vector<20x64xf32> -> vector<20x64xf32>
    %22 = arith.addf %16, %21 : vector<20x64xf32>
    %c0_21 = arith.constant 0 : index
    %c0_22 = arith.constant 0 : index
    %23 = vector.load %arg3[%c0_21, %c0_22] : memref<1x64xf32, #tpu.memory_space<vmem>>, vector<1x64xf32>
    %24 = vector.broadcast %23 : vector<1x64xf32> to vector<20x64xf32>
    %25 = arith.addf %22, %24 : vector<20x64xf32>
    %cst_23 = arith.constant 2.000000e-01 : f32
    %26 = vector.broadcast %cst_23 : f32 to vector<20x64xf32>
    %27 = arith.mulf %26, %25 : vector<20x64xf32>
    %28 = arith.maximumf %25, %27 : vector<20x64xf32>
    %c0_24 = arith.constant 0 : index
    %c0_25 = arith.constant 0 : index
    %29 = vector.load %arg4[%c0_24, %c0_25] : memref<1x64xf32, #tpu.memory_space<vmem>>, vector<1x64xf32>
    %30 = vector.broadcast %29 : vector<1x64xf32> to vector<20x64xf32>
    %31 = arith.mulf %28, %30 : vector<20x64xf32>
    %c0_26 = arith.constant 0 : index
    %c0_27 = arith.constant 0 : index
    %32 = vector.load %arg5[%c0_26, %c0_27] : memref<1x64xf32, #tpu.memory_space<vmem>>, vector<1x64xf32>
    %33 = vector.broadcast %32 : vector<1x64xf32> to vector<20x64xf32>
    %34 = arith.addf %31, %33 : vector<20x64xf32>
    %35 = arith.truncf %34 : vector<20x64xf32> to vector<20x64xbf16>
    %c0_28 = arith.constant 0 : index
    %c0_29 = arith.constant 0 : index
    %c0_30 = arith.constant 0 : index
    %36 = vector.load %arg6[%c0_28, %c0_29, %c0_30] : memref<1x20x64xbf16, #tpu.memory_space<vmem>>, vector<1x20x64xbf16>
    %37 = vector.shape_cast %36 : vector<1x20x64xbf16> to vector<20x64xbf16>
    %38 = vector.shape_cast %35 : vector<20x64xbf16> to vector<1x20x64xbf16>
    tpu.vector_store %arg6[%c0_28, %c0_29, %c0_30], %38 {strides = array<i32>} : memref<1x20x64xbf16, #tpu.memory_space<vmem>>, vector<1x20x64xbf16>,
    return
  }
  func.func @transform_0(%arg0: i32) -> (i32, i32, i32) {
    %c0_i32 = arith.constant 0 : i32
    %c0_i32_0 = arith.constant 0 : i32
    %c0_i32_1 = arith.constant 0 : i32
    return %arg0, %c0_i32, %c0_i32_0 : i32, i32, i32
  }
  func.func @transform_1(%arg0: i32) -> (i32, i32, i32) {
    %c0_i32 = arith.constant 0 : i32
    %c0_i32_0 = arith.constant 0 : i32
    %c0_i32_1 = arith.constant 0 : i32
    %c0_i32_2 = arith.constant 0 : i32
    return %c0_i32, %c0_i32_0, %c0_i32_1 : i32, i32, i32
  }
  func.func @transform_2(%arg0: i32) -> (i32, i32) {
    %c0_i32 = arith.constant 0 : i32
    %c0_i32_0 = arith.constant 0 : i32
    %c0_i32_1 = arith.constant 0 : i32
    return %c0_i32, %c0_i32_0 : i32, i32
  }
  func.func @transform_3(%arg0: i32) -> (i32, i32) {
    %c0_i32 = arith.constant 0 : i32
    %c0_i32_0 = arith.constant 0 : i32
    %c0_i32_1 = arith.constant 0 : i32
    return %c0_i32, %c0_i32_0 : i32, i32
  }
  func.func @transform_4(%arg0: i32) -> (i32, i32) {
    %c0_i32 = arith.constant 0 : i32
    %c0_i32_0 = arith.constant 0 : i32
    %c0_i32_1 = arith.constant 0 : i32
    return %c0_i32, %c0_i32_0 : i32, i32
  }
  func.func @transform_5(%arg0: i32) -> (i32, i32, i32) {
    %c0_i32 = arith.constant 0 : i32
    %c0_i32_0 = arith.constant 0 : i32
    %c0_i32_1 = arith.constant 0 : i32
    return %arg0, %c0_i32, %c0_i32_0 : i32, i32, i32
  }
}

module attributes {stable_mosaic.version = 11 : i64} {
  func.func @kernel(%arg0: i32, %arg1: memref<1x16x256xbf16, #tpu.memory_space<vmem>>, %arg2: memref<4x256x128xbf16, #tpu.memory_space<vmem>>, %arg3: memref<1x128xf32, #tpu.memory_space<vmem>>, %arg4: memref<1x128xf32, #tpu.memory_space<vmem>>, %arg5: memref<1x128xf32, #tpu.memory_space<vmem>>, %arg6: memref<1x6x128xbf16, #tpu.memory_space<vmem>>) attributes {dimension_semantics = [#tpu.dimension_semantics<parallel>], iteration_bounds = array<i64: 2>, scalar_prefetch = 0 : i64, scratch_operands = 0 : i64, tpu.core_type = #tpu.core_type<tc>, window_params = [{transform_indices = @transform_0, window_bounds = array<i64: 1, 16, 256>}, {pipeline_mode = #tpu.pipeline_mode<synchronous>, transform_indices = @transform_1, window_bounds = array<i64: 4, 256, 128>}, {pipeline_mode = #tpu.pipeline_mode<synchronous>, transform_indices = @transform_2, window_bounds = array<i64: 1, 128>}, {pipeline_mode = #tpu.pipeline_mode<synchronous>, transform_indices = @transform_3, window_bounds = array<i64: 1, 128>}, {pipeline_mode = #tpu.pipeline_mode<synchronous>, transform_indices = @transform_4, window_bounds = array<i64: 1, 128>}, {transform_indices = @transform_5, window_bounds = array<i64: 1, 6, 128>}]} {
    %c0 = arith.constant 0 : index
    %c0_0 = arith.constant 0 : index
    %c0_1 = arith.constant 0 : index
    %0 = vector.load %arg1[%c0, %c0_0, %c0_1] : memref<1x16x256xbf16, #tpu.memory_space<vmem>>, vector<1x6x256xbf16>
    %1 = vector.shape_cast %0 : vector<1x6x256xbf16> to vector<6x256xbf16>
    %c0_2 = arith.constant 0 : index
    %c0_3 = arith.constant 0 : index
    %c0_4 = arith.constant 0 : index
    %2 = vector.load %arg2[%c0_2, %c0_3, %c0_4] : memref<4x256x128xbf16, #tpu.memory_space<vmem>>, vector<1x256x128xbf16>
    %3 = vector.shape_cast %2 : vector<1x256x128xbf16> to vector<256x128xbf16>
    %cst = arith.constant dense<0.000000e+00> : vector<6x128xf32>
    %4 = tpu.matmul %1, %3, %cst {dimension_numbers = #tpu.dot_dimension_numbers<[1], [0], [0], [1], [0, 0, 1, 1], [], []>} : vector<6x256xbf16>, vector<256x128xbf16>, vector<6x128xf32> -> vector<6x128xf32>
    %c0_5 = arith.constant 0 : index
    %c1 = arith.constant 1 : index
    %c0_6 = arith.constant 0 : index
    %5 = vector.load %arg1[%c0_5, %c1, %c0_6] : memref<1x16x256xbf16, #tpu.memory_space<vmem>>, vector<1x6x256xbf16>
    %6 = vector.shape_cast %5 : vector<1x6x256xbf16> to vector<6x256xbf16>
    %c1_7 = arith.constant 1 : index
    %c0_8 = arith.constant 0 : index
    %c0_9 = arith.constant 0 : index
    %7 = vector.load %arg2[%c1_7, %c0_8, %c0_9] : memref<4x256x128xbf16, #tpu.memory_space<vmem>>, vector<1x256x128xbf16>
    %8 = vector.shape_cast %7 : vector<1x256x128xbf16> to vector<256x128xbf16>
    %cst_10 = arith.constant dense<0.000000e+00> : vector<6x128xf32>
    %9 = tpu.matmul %6, %8, %cst_10 {dimension_numbers = #tpu.dot_dimension_numbers<[1], [0], [0], [1], [0, 0, 1, 1], [], []>} : vector<6x256xbf16>, vector<256x128xbf16>, vector<6x128xf32> -> vector<6x128xf32>
    %10 = arith.addf %4, %9 : vector<6x128xf32>
    %c0_11 = arith.constant 0 : index
    %c3 = arith.constant 3 : index
    %c0_12 = arith.constant 0 : index
    %11 = vector.load %arg1[%c0_11, %c3, %c0_12] : memref<1x16x256xbf16, #tpu.memory_space<vmem>>, vector<1x6x256xbf16>
    %12 = vector.shape_cast %11 : vector<1x6x256xbf16> to vector<6x256xbf16>
    %c2 = arith.constant 2 : index
    %c0_13 = arith.constant 0 : index
    %c0_14 = arith.constant 0 : index
    %13 = vector.load %arg2[%c2, %c0_13, %c0_14] : memref<4x256x128xbf16, #tpu.memory_space<vmem>>, vector<1x256x128xbf16>
    %14 = vector.shape_cast %13 : vector<1x256x128xbf16> to vector<256x128xbf16>
    %cst_15 = arith.constant dense<0.000000e+00> : vector<6x128xf32>
    %15 = tpu.matmul %12, %14, %cst_15 {dimension_numbers = #tpu.dot_dimension_numbers<[1], [0], [0], [1], [0, 0, 1, 1], [], []>} : vector<6x256xbf16>, vector<256x128xbf16>, vector<6x128xf32> -> vector<6x128xf32>
    %16 = arith.addf %10, %15 : vector<6x128xf32>
    %c0_16 = arith.constant 0 : index
    %c4 = arith.constant 4 : index
    %c0_17 = arith.constant 0 : index
    %17 = vector.load %arg1[%c0_16, %c4, %c0_17] : memref<1x16x256xbf16, #tpu.memory_space<vmem>>, vector<1x6x256xbf16>
    %18 = vector.shape_cast %17 : vector<1x6x256xbf16> to vector<6x256xbf16>
    %c3_18 = arith.constant 3 : index
    %c0_19 = arith.constant 0 : index
    %c0_20 = arith.constant 0 : index
    %19 = vector.load %arg2[%c3_18, %c0_19, %c0_20] : memref<4x256x128xbf16, #tpu.memory_space<vmem>>, vector<1x256x128xbf16>
    %20 = vector.shape_cast %19 : vector<1x256x128xbf16> to vector<256x128xbf16>
    %cst_21 = arith.constant dense<0.000000e+00> : vector<6x128xf32>
    %21 = tpu.matmul %18, %20, %cst_21 {dimension_numbers = #tpu.dot_dimension_numbers<[1], [0], [0], [1], [0, 0, 1, 1], [], []>} : vector<6x256xbf16>, vector<256x128xbf16>, vector<6x128xf32> -> vector<6x128xf32>
    %22 = arith.addf %16, %21 : vector<6x128xf32>
    %c0_22 = arith.constant 0 : index
    %c0_23 = arith.constant 0 : index
    %23 = vector.load %arg3[%c0_22, %c0_23] : memref<1x128xf32, #tpu.memory_space<vmem>>, vector<1x128xf32>
    %24 = vector.broadcast %23 : vector<1x128xf32> to vector<6x128xf32>
    %25 = arith.addf %22, %24 : vector<6x128xf32>
    %cst_24 = arith.constant 2.000000e-01 : f32
    %26 = vector.broadcast %cst_24 : f32 to vector<6x128xf32>
    %27 = arith.mulf %26, %25 : vector<6x128xf32>
    %28 = arith.maximumf %25, %27 : vector<6x128xf32>
    %c0_25 = arith.constant 0 : index
    %c0_26 = arith.constant 0 : index
    %29 = vector.load %arg4[%c0_25, %c0_26] : memref<1x128xf32, #tpu.memory_space<vmem>>, vector<1x128xf32>
    %30 = vector.broadcast %29 : vector<1x128xf32> to vector<6x128xf32>
    %31 = arith.mulf %28, %30 : vector<6x128xf32>
    %c0_27 = arith.constant 0 : index
    %c0_28 = arith.constant 0 : index
    %32 = vector.load %arg5[%c0_27, %c0_28] : memref<1x128xf32, #tpu.memory_space<vmem>>, vector<1x128xf32>
    %33 = vector.broadcast %32 : vector<1x128xf32> to vector<6x128xf32>
    %34 = arith.addf %31, %33 : vector<6x128xf32>
    %35 = arith.truncf %34 : vector<6x128xf32> to vector<6x128xbf16>
    %c0_29 = arith.constant 0 : index
    %c0_30 = arith.constant 0 : index
    %c0_31 = arith.constant 0 : index
    %36 = vector.load %arg6[%c0_29, %c0_30, %c0_31] : memref<1x6x128xbf16, #tpu.memory_space<vmem>>, vector<1x6x128xbf16>
    %37 = vector.shape_cast %36 : vector<1x6x128xbf16> to vector<6x128xbf16>
    %38 = vector.shape_cast %35 : vector<6x128xbf16> to vector<1x6x128xbf16>
    tpu.vector_store %arg6[%c0_29, %c0_30, %c0_31], %38 {strides = array<i32>} : memref<1x6x128xbf16, #tpu.memory_space<vmem>>, vector<1x6x128xbf16>,
    return
  }
  func.func @transform_0(%arg0: i32) -> (i32, i32, i32) {
    %c0_i32 = arith.constant 0 : i32
    %c0_i32_0 = arith.constant 0 : i32
    %c0_i32_1 = arith.constant 0 : i32
    return %arg0, %c0_i32, %c0_i32_0 : i32, i32, i32
  }
  func.func @transform_1(%arg0: i32) -> (i32, i32, i32) {
    %c0_i32 = arith.constant 0 : i32
    %c0_i32_0 = arith.constant 0 : i32
    %c0_i32_1 = arith.constant 0 : i32
    %c0_i32_2 = arith.constant 0 : i32
    return %c0_i32, %c0_i32_0, %c0_i32_1 : i32, i32, i32
  }
  func.func @transform_2(%arg0: i32) -> (i32, i32) {
    %c0_i32 = arith.constant 0 : i32
    %c0_i32_0 = arith.constant 0 : i32
    %c0_i32_1 = arith.constant 0 : i32
    return %c0_i32, %c0_i32_0 : i32, i32
  }
  func.func @transform_3(%arg0: i32) -> (i32, i32) {
    %c0_i32 = arith.constant 0 : i32
    %c0_i32_0 = arith.constant 0 : i32
    %c0_i32_1 = arith.constant 0 : i32
    return %c0_i32, %c0_i32_0 : i32, i32
  }
  func.func @transform_4(%arg0: i32) -> (i32, i32) {
    %c0_i32 = arith.constant 0 : i32
    %c0_i32_0 = arith.constant 0 : i32
    %c0_i32_1 = arith.constant 0 : i32
    return %c0_i32, %c0_i32_0 : i32, i32
  }
  func.func @transform_5(%arg0: i32) -> (i32, i32, i32) {
    %c0_i32 = arith.constant 0 : i32
    %c0_i32_0 = arith.constant 0 : i32
    %c0_i32_1 = arith.constant 0 : i32
    return %arg0, %c0_i32, %c0_i32_0 : i32, i32, i32
  }
}

module attributes {stable_mosaic.version = 11 : i64} {
  func.func @_head_kernel(%arg0: i32, %arg1: memref<2x768xbf16, #tpu.memory_space<vmem>>, %arg2: memref<768x1xbf16, #tpu.memory_space<vmem>>, %arg3: memref<1x1xf32, #tpu.memory_space<vmem>>, %arg4: memref<2x1xf32, #tpu.memory_space<vmem>>, %arg5: memref<2x1xf32, #tpu.memory_space<vmem>>) attributes {dimension_semantics = [#tpu.dimension_semantics<arbitrary>], iteration_bounds = array<i64: 1>, scalar_prefetch = 0 : i64, scratch_operands = 1 : i64, tpu.core_type = #tpu.core_type<tc>, window_params = [{transform_indices = @transform_0, window_bounds = array<i64: 2, 768>}, {transform_indices = @transform_1, window_bounds = array<i64: 768, 1>}, {pipeline_mode = #tpu.pipeline_mode<synchronous>, transform_indices = @transform_2, window_bounds = array<i64: 1, 1>}, {pipeline_mode = #tpu.pipeline_mode<synchronous>, transform_indices = @transform_3, window_bounds = array<i64: 2, 1>}]} {
    %c0_i32 = arith.constant 0 : i32
    %0 = arith.cmpi eq, %arg0, %c0_i32 : i32
    %1 = arith.extui %0 : i1 to i32
    %c0_i32_0 = arith.constant 0 : i32
    %2 = arith.cmpi ne, %1, %c0_i32_0 : i32
    scf.if %2 {
      %cst_10 = arith.constant 0.000000e+00 : f32
      %12 = vector.broadcast %cst_10 : f32 to vector<2x1xf32>
      %c0_11 = arith.constant 0 : index
      %c0_12 = arith.constant 0 : index
      %13 = vector.load %arg5[%c0_11, %c0_12] : memref<2x1xf32, #tpu.memory_space<vmem>>, vector<2x1xf32>
      tpu.vector_store %arg5[%c0_11, %c0_12], %12 {strides = array<i32>} : memref<2x1xf32, #tpu.memory_space<vmem>>, vector<2x1xf32>,
    } else {
    }
    %c0 = arith.constant 0 : index
    %c0_1 = arith.constant 0 : index
    %3 = vector.load %arg5[%c0, %c0_1] : memref<2x1xf32, #tpu.memory_space<vmem>>, vector<2x1xf32>
    %c0_2 = arith.constant 0 : index
    %c0_3 = arith.constant 0 : index
    %4 = vector.load %arg1[%c0_2, %c0_3] : memref<2x768xbf16, #tpu.memory_space<vmem>>, vector<2x768xbf16>
    %c0_4 = arith.constant 0 : index
    %c0_5 = arith.constant 0 : index
    %5 = vector.load %arg2[%c0_4, %c0_5] : memref<768x1xbf16, #tpu.memory_space<vmem>>, vector<768x1xbf16>
    %cst = arith.constant dense<0.000000e+00> : vector<2x1xf32>
    %6 = tpu.matmul %4, %5, %cst {dimension_numbers = #tpu.dot_dimension_numbers<[1], [0], [0], [1], [0, 0, 1, 1], [], []>} : vector<2x768xbf16>, vector<768x1xbf16>, vector<2x1xf32> -> vector<2x1xf32>
    %7 = arith.addf %3, %6 : vector<2x1xf32>
    %c0_6 = arith.constant 0 : index
    %c0_7 = arith.constant 0 : index
    %8 = vector.load %arg5[%c0_6, %c0_7] : memref<2x1xf32, #tpu.memory_space<vmem>>, vector<2x1xf32>
    tpu.vector_store %arg5[%c0_6, %c0_7], %7 {strides = array<i32>} : memref<2x1xf32, #tpu.memory_space<vmem>>, vector<2x1xf32>,
    %c0_i32_8 = arith.constant 0 : i32
    %9 = arith.cmpi eq, %arg0, %c0_i32_8 : i32
    %10 = arith.extui %9 : i1 to i32
    %c0_i32_9 = arith.constant 0 : i32
    %11 = arith.cmpi ne, %10, %c0_i32_9 : i32
    scf.if %11 {
      %c0_10 = arith.constant 0 : index
      %c0_11 = arith.constant 0 : index
      %12 = vector.load %arg5[%c0_10, %c0_11] : memref<2x1xf32, #tpu.memory_space<vmem>>, vector<2x1xf32>
      %c0_12 = arith.constant 0 : index
      %c0_13 = arith.constant 0 : index
      %13 = vector.load %arg3[%c0_12, %c0_13] : memref<1x1xf32, #tpu.memory_space<vmem>>, vector<1x1xf32>
      %14 = vector.broadcast %13 : vector<1x1xf32> to vector<2x1xf32>
      %15 = arith.addf %12, %14 : vector<2x1xf32>
      %cst_14 = arith.constant 0.000000e+00 : f32
      %16 = vector.broadcast %cst_14 : f32 to vector<2x1xf32>
      %17 = arith.subf %16, %15 : vector<2x1xf32>
      %18 = math.exp %17 : vector<2x1xf32>
      %cst_15 = arith.constant 1.000000e+00 : f32
      %19 = vector.broadcast %cst_15 : f32 to vector<2x1xf32>
      %20 = arith.addf %19, %18 : vector<2x1xf32>
      %cst_16 = arith.constant 1.000000e+00 : f32
      %21 = vector.broadcast %cst_16 : f32 to vector<2x1xf32>
      %22 = arith.divf %21, %20 : vector<2x1xf32>
      %c0_17 = arith.constant 0 : index
      %c0_18 = arith.constant 0 : index
      %23 = vector.load %arg4[%c0_17, %c0_18] : memref<2x1xf32, #tpu.memory_space<vmem>>, vector<2x1xf32>
      tpu.vector_store %arg4[%c0_17, %c0_18], %22 {strides = array<i32>} : memref<2x1xf32, #tpu.memory_space<vmem>>, vector<2x1xf32>,
    } else {
    }
    return
  }
  func.func @transform_0(%arg0: i32) -> (i32, i32) {
    %c0_i32 = arith.constant 0 : i32
    %c0_i32_0 = arith.constant 0 : i32
    return %c0_i32, %arg0 : i32, i32
  }
  func.func @transform_1(%arg0: i32) -> (i32, i32) {
    %c0_i32 = arith.constant 0 : i32
    %c0_i32_0 = arith.constant 0 : i32
    return %arg0, %c0_i32 : i32, i32
  }
  func.func @transform_2(%arg0: i32) -> (i32, i32) {
    %c0_i32 = arith.constant 0 : i32
    %c0_i32_0 = arith.constant 0 : i32
    %c0_i32_1 = arith.constant 0 : i32
    return %c0_i32, %c0_i32_0 : i32, i32
  }
  func.func @transform_3(%arg0: i32) -> (i32, i32) {
    %c0_i32 = arith.constant 0 : i32
    %c0_i32_0 = arith.constant 0 : i32
    %c0_i32_1 = arith.constant 0 : i32
    return %c0_i32, %c0_i32_0 : i32, i32
  }
}

</mosaic_0001>

<bundles_post_ra>
// kernel: _lambda_.5
= control target key start
LH: loop header
LB: loop body
LE: loop exit
PB: predicated region body
PF: predicated region fallthrough
CT: control target
= control target key end

     0   :  { %s2826_s18 = smov 0   ;;  %s3451_s0 = inlined_call_operand.vmem [shape: bf16[2,296,12], index: 0, kind: input, shape index: {}]   ;;  %s3452_s1 = inlined_call_operand.vmem [shape: bf16[4,12,16], index: 1, kind: input, shape index: {}]   ;;  %s3453_s2 = inlined_call_operand.vmem [shape: f32[1,16], index: 2, kind: input, shape index: {}]   ;;  %s3454_s3 = inlined_call_operand.vmem [shape: f32[1,16], index: 3, kind: input, shape index: {}]   ;;  %s3455_s4 = inlined_call_operand.vmem [shape: f32[1,16], index: 4, kind: input, shape index: {}]   ;;  %s3456_s5 = inlined_call_operand.vmem [shape: bf16[2,272,16], index: 5, kind: output, shape index: {}]  }
   0x1 LB: > { %s2186_s19 = sadd.s32 4294967295, %s2792_s18   ;;  %p2190_p0 = scmp.ge.s32.totalorder %s2792_s18, 1  ;;  %s2792_s18 = sphi %s2826_s18, %s15_s18  }
   0x2   : > { %p187_p1 = scmp.lt.s32.totalorder %s2792_s18, 3 }
   0x4   : > { %p188_p2 = pnand %p2190_p0, %p187_p1 }
   0x5   : > { %p215_p3 = scmp.lt.s32.totalorder (!%p188_p2), %s2186_s19, 1 }
   0x6   : > { %191 = sbr.rel (%p188_p2) target bundleno = 501 (0x1f5), region = 40 }
   0xb   : > { %vm552_vm0 = vcmask 1045504   ;;  %v2794_v0 = vmov 0.0   ;;  %v2745_v1 = vld [vmem:[%s3452_s1] sm:$0x3f]   ;;  %vm2795_vm1 = vmmov 0   ;;  %s3458_s19 = smov (!%p215_p3, %s2186_s19), 1 }
   0xc   : > { %2523 = vmatprep.subr.bf16.mxu1 %v2794_v0  ;;  %2453 = vmatprep.subr.bf16.mxu0 %v2794_v0  ;;  %v2746_v2 = vld [vmem:[%s3452_s1 + $0x8] sm:$0x3f]   ;;  %v765_v3 = vsel %vm552_vm0, %v2745_v1, 0  ;;  %s2733_s24 = smul.u32 148, %s3458_s19  ;;  %v2750_v5 = vld [vmem:[%s3452_s1 + $0x18] sm:$0x3f]  }
   0xd   : > { %2525 = vmatprep.mubr.msk.bf16.mxu1 %vm2795_vm1, %v2794_v0  ;;  %2455 = vmatprep.mubr.msk.bf16.mxu0 %vm2795_vm1, %v2794_v0  ;;  %v554_v4 = vsel %vm552_vm0, %v2746_v2, 0  ;;  %vm500_vm2 = vcmask 97280   ;;  %v1564_v7 = vsel %vm552_vm0, %v2750_v5, 0  ;;  %v2749_v12 = vld [vmem:[%s3452_s1 + $0x10] sm:$0x3f]   ;;  %vm1471_vm4 = vcmask 1046528  }
   0xe   : > { %2524 = vmatpush3.bf16.msra.mxu1 %v765_v3  ;;  %2454 = vmatpush3.bf16.msra.mxu0 %v554_v4  ;;  %s2859_s29 = scalar_lea.vmem %s3451_s0, %s2733_s24  ;;  %vm354_vm3 = vsmask.f32 7424  ;;  %v1259_v19 = vsel %vm552_vm0, %v2749_v12, 0  ;;  %s2734_s11 = smul.u32 136, %s3458_s19  ;;  %vm2096_vm5 = vcmask 125952  }
   0xf   : > { %2663 = vmatprep.subr.bf16.mxu1 %v2794_v0  ;;  %2593 = vmatprep.subr.bf16.mxu0 %v2794_v0  ;;  %v2747_v6 = vld [vmem:[%s2859_s29] sm:$0xff]   ;;  %v2748_v8 = vld [vmem:[%s2859_s29 + $0x8] sm:$0xff]   ;;  %v2751_v13 = vld [vmem:[%s2859_s29 + $0x10] sm:$0xff]  }
  0x10   : > { %v356_v9 = vshrl.u32 %v2747_v6, 16  ;;  %v358_v10 = vshll.u32 %v2747_v6, 16  ;;  %v363_v11 = vshll.u32 %v2748_v8, 16  ;;  %v367_v17 = vshrl.u32 %v2748_v8, 16  ;;  %v2752_v23 = vld [vmem:[%s2859_s29 + $0x18] sm:$0xff]   ;;  %v2753_v29 = vld [vmem:[%s2859_s29 + $0x20] sm:$0xff]   ;;  %s3251_s16 = scalar_lea.vmem %s3456_s5, %s2734_s11 }
  0x11   : > { %2526 = vmatmul.mubr.msk.bf16.vlgmr.msra.gmra.mxu1 %vm500_vm2, %v2747_v6  ;;  %v371_v18 = vshll.u32 %v2751_v13, 16  ;;  %v375_v25 = vshrl.u32 %v2751_v13, 16  ;;  %v379_v26 = vshll.u32 %v2752_v23, 16  ;;  %v383_v31 = vshrl.u32 %v2752_v23, 16  ;;  %v2754_v35 = vld [vmem:[%s2859_s29 + $0x28] sm:$0xff]   ;;  %v2755_v39 = vld [vmem:[%s2859_s29 + $0x30] sm:$0xff]  }
  0x12   : > { %2664 = vmatpush3.bf16.msra.mxu1 %v1564_v7  ;;  %2529 = vmatprep.mubr.msk.bf16.mxu1 %vm2795_vm1, %v2794_v0  ;;  %v360_v14 = vrot.slane %v358_v10, 1  ;;  %v365_v15 = vrot.slane %v363_v11, 1  ;;  %v387_v32 = vshll.u32 %v2753_v29, 16  ;;  %v391_v37 = vshrl.u32 %v2753_v29, 16  ;;  %v2756_v47 = vld [vmem:[%s2859_s29 + $0x38] sm:$0xff]   ;;  %v2757_v53 = vld [vmem:[%s2859_s29 + $0x40] sm:$0xff]  }
  0x13   : > { %v373_v22 = vrot.slane %v371_v18, 1  ;;  %v381_v28 = vrot.slane %v379_v26, 1  ;;  %v395_v38 = vshll.u32 %v2754_v35, 16  ;;  %v399_v42 = vshrl.u32 %v2754_v35, 16  ;;  %v2758_v59 = vld [vmem:[%s2859_s29 + $0x48] sm:$0xff]   ;;  %v2759_v2 = vld [vmem:[%s2859_s29 + $0x50] sm:$0xff]  }
  0x14   : > { %v361_v16 = vor.u32 %v360_v14, %v356_v9  ;;  %v369_v21 = vor.u32 %v367_v17, %v365_v15  ;;  %v389_v34 = vrot.slane %v387_v32, 1  ;;  %v403_v43 = vshll.u32 %v2755_v39, 16  ;;  %v2761_v14 = vld [vmem:[%s2859_s29 + $0x60] sm:$0xff]   ;;  %v2763_v26 = vld [vmem:[%s2859_s29 + $0x70] sm:$0xff]   ;;  %v2764_v32 = vld [vmem:[%s2859_s29 + $0x78] sm:$0xff]  }
  0x15   : > { %v377_v27 = vor.u32 %v375_v25, %v373_v22  ;;  %v385_v33 = vor.u32 %v383_v31, %v381_v28  ;;  %v397_v41 = vrot.slane %v395_v38, 1  ;;  %v407_v49 = vshrl.u32 %v2755_v39, 16  ;;  %v2765_v38 = vld [vmem:[%s2859_s29 + $0x80] sm:$0xff]  }
  0x16   : > { %v366_v20 = vsel %vm354_vm3, %v361_v16, %v365_v15  ;;  %v374_v24 = vsel %vm354_vm3, %v369_v21, %v373_v22  ;;  %v393_v40 = vor.u32 %v391_v37, %v389_v34  ;;  %v405_v46 = vrot.slane %v403_v43, 1 }
  0x17   : > { %2456 = vmatmul.mubr.msk.bf16.vlgmr.msra.gmra.mxu0 %vm500_vm2, %v366_v20  ;;  %v382_v30 = vsel %vm354_vm3, %v377_v27, %v381_v28  ;;  %v390_v36 = vsel %vm354_vm3, %v385_v33, %v389_v34  ;;  %v401_v45 = vor.u32 %v399_v42, %v397_v41  ;;  %v411_v50 = vshll.u32 %v2756_v47, 16  ;;  %v2762_v20 = vld [vmem:[%s2859_s29 + $0x68] sm:$0xff]  }
  0x18   : > { %2594 = vmatpush3.bf16.msra.mxu0 %v1259_v19  ;;  %2459 = vmatprep.mubr.msk.bf16.mxu0 %vm2795_vm1, %v2794_v0  ;;  %v398_v44 = vsel %vm354_vm3, %v393_v40, %v397_v41  ;;  %v409_v51 = vor.u32 %v407_v49, %v405_v46  ;;  %v415_v55 = vshrl.u32 %v2756_v47, 16  ;;  %v419_v56 = vshll.u32 %v2757_v53, 16 }
  0x19   : > { %2530 = vmatmul.mubr.msk.bf16.gmra.mxu1 %vm500_vm2, %v2748_v8  ;;  %v406_v48 = vsel %vm354_vm3, %v401_v45, %v405_v46  ;;  %v413_v52 = vrot.slane %v411_v50, 1  ;;  %v423_v61 = vshrl.u32 %v2757_v53, 16  ;;  %v427_v62 = vshll.u32 %v2758_v59, 16  ;;  %v2760_v8 = vld [vmem:[%s2859_s29 + $0x58] sm:$0xff]   ;;  %v936_v45 = vld [vmem:[%s2859_s29 + $0x8] sm:$0xf] }
  0x1a   : > { %2533 = vmatprep.mubr.msk.bf16.mxu1 %vm2795_vm1, %v2794_v0  ;;  %v421_v58 = vrot.slane %v419_v56, 1  ;;  %v431_v4 = vshrl.u32 %v2758_v59, 16  ;;  %v435_v5 = vshll.u32 %v2759_v2, 16  ;;  %v439_v10 = vshrl.u32 %v2759_v2, 16  ;;  %v937_v46 = vld [vmem:[%s2859_s29 + $0xc] sm:$0xf] }
  0x1b   : > { %v414_v54 = vsel %vm354_vm3, %v409_v51, %v413_v52  ;;  %v417_v57 = vor.u32 %v415_v55, %v413_v52  ;;  %v429_v1 = vrot.slane %v427_v62, 1  ;;  %v443_v11 = vshll.u32 %v2760_v8, 16  ;;  %v2768_v52 = vld [vmem:[%s2859_s29 + $0x10] sm:$0xff]  }
  0x1c   : > { %v425_v63 = vor.u32 %v423_v61, %v421_v58  ;;  %v437_v7 = vrot.slane %v435_v5, 1  ;;  %v447_v16 = vshrl.u32 %v2760_v8, 16  ;;  %v451_v17 = vshll.u32 %v2761_v14, 16 }
  0x1d   : > { %v422_v60 = vsel %vm354_vm3, %v417_v57, %v421_v58  ;;  %v433_v6 = vor.u32 %v431_v4, %v429_v1  ;;  %v455_v22 = vshrl.u32 %v2761_v14, 16  ;;  %v463_v28 = vshrl.u32 %v2762_v20, 16 }
  0x1e   : > { %v430_v3 = vsel %vm354_vm3, %v425_v63, %v429_v1  ;;  %v441_v12 = vor.u32 %v439_v10, %v437_v7  ;;  %v453_v19 = vrot.slane %v451_v17, 1  ;;  %v471_v34 = vshrl.u32 %v2763_v26, 16  ;;  %v2770_v1 = vld [vmem:[%s2859_s29 + $0x18] sm:$0xff]   ;;  %v2772_v17 = vld [vmem:[%s2859_s29 + $0x28] sm:$0xff]  }
  0x1f   : > { %2460 = vmatmul.mubr.msk.bf16.gmra.mxu0 %vm500_vm2, %v374_v24  ;;  %v438_v9 = vsel %vm354_vm3, %v433_v6, %v437_v7  ;;  %v479_v40 = vshrl.u32 %v2764_v32, 16  ;;  %v483_v41 = vshll.u32 %v2765_v38, 16  ;;  %v487_v49 = vshrl.u32 %v2765_v38, 16 }
  0x20   : > { %2463 = vmatprep.mubr.msk.bf16.mxu0 %vm2795_vm1, %v2794_v0  ;;  %v457_v24 = vor.u32 %v455_v22, %v453_v19  ;;  %v2251_v51 = vcombine.low %v936_v45, %v937_v46  ;;  %v1473_v58 = vrot.slane %v2768_v52, 1  ;;  %v1070_v62 = vshll.u32 %v2768_v52, 16 }
  0x21   : > { %2534 = vmatmul.mubr.msk.bf16.gmra.mxu1 %vm500_vm2, %v2751_v13  ;;  %v445_v13 = vrot.slane %v443_v11, 1  ;;  %v485_v43 = vrot.slane %v483_v41, 1  ;;  %v1475_v4 = vrot.slane %v2770_v1, 1  ;;  %v1074_v6 = vshrl.u32 %v2768_v52, 16  ;;  %v2775_v41 = vld [vmem:[%s2859_s29 + $0x40] sm:$0xff]  }
  0x22   : > { %2537 = vmatprep.mubr.msk.bf16.mxu1 %vm2795_vm1, %v2794_v0  ;;  %v1065_v56 = vshll.u32 %v2251_v51, 16  ;;  %v1078_v7 = vshll.u32 %v2770_v1, 16 }
  0x23   : > { %v446_v15 = vsel %vm354_vm3, %v441_v12, %v445_v13  ;;  %v449_v18 = vor.u32 %v447_v16, %v445_v13 }
  0x24   : > { %v1067_v61 = vrot.slane %v1065_v56, 1  ;;  %v1080_v11 = vrot.slane %v1078_v7, 1 }
  0x25   : > { %v454_v21 = vsel %vm354_vm3, %v449_v18, %v453_v19 }
  0x27   : > { %2464 = vmatmul.mubr.msk.bf16.gmra.mxu0 %vm500_vm2, %v382_v30 }
  0x28   : > { %2467 = vmatprep.mubr.msk.bf16.mxu0 %vm2795_vm1, %v2794_v0 }
  0x29   : > { %2538 = vmatmul.mubr.msk.bf16.gmra.mxu1 %vm500_vm2, %v2752_v23  ;;  %v459_v23 = vshll.u32 %v2762_v20, 16 }
  0x2a   : > { %2541 = vmatprep.mubr.msk.bf16.mxu1 %vm2795_vm1, %v2794_v0 }
  0x2b   : > { %v461_v25 = vrot.slane %v459_v23, 1  ;;  %v1094_v23 = vshll.u32 %v2772_v17, 16 }
  0x2d   : > { %v462_v27 = vsel %vm354_vm3, %v457_v24, %v461_v25  ;;  %v465_v30 = vor.u32 %v463_v28, %v461_v25  ;;  %v2773_v25 = vld [vmem:[%s2859_s29 + $0x30] sm:$0xff]  }
  0x2e   : > { %v1481_v28 = vrot.slane %v2773_v25, 1 }
  0x2f   : > { %2468 = vmatmul.mubr.msk.bf16.gmra.mxu0 %vm500_vm2, %v390_v36 }
  0x30   : > { %2471 = vmatprep.mubr.msk.bf16.mxu0 %vm2795_vm1, %v2794_v0 }
  0x31   : > { %2542 = vmatmul.mubr.msk.bf16.gmra.mxu1 %vm500_vm2, %v2753_v29  ;;  %v467_v29 = vshll.u32 %v2763_v26, 16 }
  0x32   : > { %2545 = vmatprep.mubr.msk.bf16.mxu1 %vm2795_vm1, %v2794_v0 }
  0x33   : > { %v469_v31 = vrot.slane %v467_v29, 1 }
  0x35   : > { %v470_v33 = vsel %vm354_vm3, %v465_v30, %v469_v31  ;;  %v473_v36 = vor.u32 %v471_v34, %v469_v31  ;;  %v1098_v30 = vshrl.u32 %v2772_v17, 16  ;;  %v1102_v31 = vshll.u32 %v2773_v25, 16 }
  0x37   : > { %2472 = vmatmul.mubr.msk.bf16.gmra.mxu0 %vm500_vm2, %v398_v44  ;;  %v2766_v44 = vld [vmem:[%s2859_s29 + $0x88] ss:$0 sps:$4 sm:$0x11]  }
  0x38   : > { %2475 = vmatprep.mubr.msk.bf16.mxu0 %vm2795_vm1, %v2794_v0  ;;  %v491_v50 = vshll.u32 %v2766_v44, 16  ;;  %v1485_v44 = vrot.slane %v2775_v41, 1 }
  0x39   : > { %2546 = vmatmul.mubr.msk.bf16.gmra.mxu1 %vm500_vm2, %v2754_v35  ;;  %v475_v35 = vshll.u32 %v2764_v32, 16 }
  0x3a   : > { %2549 = vmatprep.mubr.msk.bf16.mxu1 %vm2795_vm1, %v2794_v0  ;;  %v493_v55 = vrot.slane %v491_v50, 1 }
  0x3b   : > { %v477_v37 = vrot.slane %v475_v35, 1  ;;  %v1104_v35 = vrot.slane %v1102_v31, 1 }
  0x3d   : > { %v481_v42 = vor.u32 %v479_v40, %v477_v37 }
  0x3f   : > { %2476 = vmatmul.mubr.msk.bf16.gmra.mxu0 %vm500_vm2, %v406_v48  ;;  %v486_v48 = vsel %vm354_vm3, %v481_v42, %v485_v43 }
  0x40   : > { %2479 = vmatprep.mubr.msk.bf16.mxu0 %vm2795_vm1, %v2794_v0 }
  0x41   : > { %2550 = vmatmul.mubr.msk.bf16.gmra.mxu1 %vm500_vm2, %v2755_v39  ;;  %v478_v39 = vsel %vm354_vm3, %v473_v36, %v477_v37 }
  0x42   : > { %2553 = vmatprep.mubr.msk.bf16.mxu1 %vm2795_vm1, %v2794_v0 }
  0x47   : > { %2480 = vmatmul.mubr.msk.bf16.gmra.mxu0 %vm500_vm2, %v414_v54  ;;  %v489_v54 = vor.u32 %v487_v49, %v485_v43  ;;  %v2776_v49 = vld [vmem:[%s2859_s29 + $0x48] sm:$0xff]  }
  0x48   : > { %2483 = vmatprep.mubr.msk.bf16.mxu0 %vm2795_vm1, %v2794_v0  ;;  %v1487_v52 = vrot.slane %v2776_v49, 1 }
  0x49   : > { %2554 = vmatmul.mubr.msk.bf16.gmra.mxu1 %vm500_vm2, %v2756_v47  ;;  %v1464_v47 = vld [vmem:[%s2859_s29 + $0x8] sm:$0xe] }
  0x4a   : > { %2557 = vmatprep.mubr.msk.bf16.mxu1 %vm2795_vm1, %v2794_v0  ;;  %v1488_v56 = vsel %vm1471_vm4, %v1485_v44, %v1487_v52 }
  0x4f   : > { %2484 = vmatmul.mubr.msk.bf16.gmra.mxu0 %vm500_vm2, %v422_v60  ;;  %v1063_v60 = vshrl.u32 %v2251_v51, 16 }
  0x50   : > { %2487 = vmatprep.mubr.msk.bf16.mxu0 %vm2795_vm1, %v2794_v0 }
  0x51   : > { %2558 = vmatmul.mubr.msk.bf16.gmra.mxu1 %vm500_vm2, %v2757_v53  ;;  %v2289_v53 = vcombine.low %v1464_v47, %v937_v46  ;;  %v1118_v47 = vshll.u32 %v2775_v41, 16 }
  0x52   : > { %2561 = vmatprep.mubr.msk.bf16.mxu1 %vm2795_vm1, %v2794_v0 }
  0x53   : > { %v1472_v57 = vrot.slane %v2289_v53, 1  ;;  %v1120_v51 = vrot.slane %v1118_v47, 1 }
  0x55   : > { %v1474_v63 = vsel %vm1471_vm4, %v1472_v57, %v1473_v58  ;;  %v2777_v57 = vld [vmem:[%s2859_s29 + $0x50] sm:$0xff]  }
  0x57   : > { %2488 = vmatmul.mubr.msk.bf16.gmra.mxu0 %vm500_vm2, %v430_v3  ;;  %v1072_v3 = vrot.slane %v1070_v62, 1 }
  0x58   : > { %2491 = vmatprep.mubr.msk.bf16.mxu0 %vm2795_vm1, %v2794_v0 }
  0x59   : > { %2562 = vmatmul.mubr.msk.bf16.gmra.mxu1 %vm500_vm2, %v2758_v59  ;;  %v494_v59 = vsel %vm354_vm3, %v489_v54, %v493_v55  ;;  %v1076_v10 = vor.u32 %v1074_v6, %v1072_v3  ;;  %v1122_v54 = vshrl.u32 %v2775_v41, 16  ;;  %v1126_v55 = vshll.u32 %v2776_v49, 16  ;;  %v2780_v41 = vld [vmem:[%s2859_s29 + $0x68] sm:$0xff]  }
  0x5a   : > { %2565 = vmatprep.mubr.msk.bf16.mxu1 %vm2795_vm1, %v2794_v0 }
  0x5b   : > { %v1081_v13 = vsel %vm354_vm3, %v1076_v10, %v1080_v11 }
  0x5f   : > { %2492 = vmatmul.mubr.msk.bf16.gmra.mxu0 %vm500_vm2, %v438_v9  ;;  %v2771_v9 = vld [vmem:[%s2859_s29 + $0x20] sm:$0xff]  }
  0x60   : > { %2495 = vmatprep.mubr.msk.bf16.mxu0 %vm2795_vm1, %v2794_v0  ;;  %v1477_v12 = vrot.slane %v2771_v9, 1  ;;  %v1090_v22 = vshrl.u32 %v2771_v9, 16 }
  0x61   : > { %2566 = vmatmul.mubr.msk.bf16.gmra.mxu1 %vm500_vm2, %v2759_v2  ;;  %v1068_v2 = vor.u32 %v1067_v61, %v1063_v60  ;;  %v1128_v60 = vrot.slane %v1126_v55, 1  ;;  %v1489_v61 = vrot.slane %v2777_v57, 1 }
  0x62   : > { %2569 = vmatprep.mubr.msk.bf16.mxu1 %vm2795_vm1, %v2794_v0  ;;  %v1478_v16 = vsel %vm1471_vm4, %v1475_v4, %v1477_v12 }
  0x63   : > { %v1073_v5 = vsel %vm354_vm3, %v1068_v2, %v1072_v3  ;;  %v1130_v2 = vshrl.u32 %v2776_v49, 16  ;;  %v1134_v3 = vshll.u32 %v2777_v57, 16  ;;  %v1495_v49 = vrot.slane %v2780_v41, 1 }
  0x65   : > { %v1132_v10 = vor.u32 %v1130_v2, %v1128_v60 }
  0x67   : > { %2496 = vmatmul.mubr.msk.bf16.gmra.mxu0 %vm500_vm2, %v446_v15  ;;  %v1086_v15 = vshll.u32 %v2771_v9, 16 }
  0x68   : > { %2499 = vmatprep.mubr.msk.bf16.mxu0 %vm2795_vm1, %v2794_v0 }
  0x69   : > { %2570 = vmatmul.mubr.msk.bf16.gmra.mxu1 %vm500_vm2, %v2760_v8  ;;  %v1476_v8 = vsel %vm1471_vm4, %v1473_v58, %v1475_v4  ;;  %v1088_v19 = vrot.slane %v1086_v15, 1  ;;  %v1490_v4 = vsel %vm1471_vm4, %v1487_v52, %v1489_v61 }
  0x6a   : > { %2573 = vmatprep.mubr.msk.bf16.mxu1 %vm2795_vm1, %v2794_v0 }
  0x6f   : > { %2500 = vmatmul.mubr.msk.bf16.gmra.mxu0 %vm500_vm2, %v454_v21 }
  0x70   : > { %2503 = vmatprep.mubr.msk.bf16.mxu0 %vm2795_vm1, %v2794_v0 }
  0x71   : > { %2574 = vmatmul.mubr.msk.bf16.gmra.mxu1 %vm500_vm2, %v2761_v14  ;;  %v1082_v14 = vshrl.u32 %v2770_v1, 16 }
  0x72   : > { %2577 = vmatprep.mubr.msk.bf16.mxu1 %vm2795_vm1, %v2794_v0 }
  0x73   : > { %v1084_v18 = vor.u32 %v1082_v14, %v1080_v11  ;;  %v1136_v11 = vrot.slane %v1134_v3, 1 }
  0x75   : > { %v1089_v21 = vsel %vm354_vm3, %v1084_v18, %v1088_v19  ;;  %v1137_v18 = vsel %vm354_vm3, %v1132_v10, %v1136_v11 }
  0x77   : > { %2504 = vmatmul.mubr.msk.bf16.gmra.mxu0 %vm500_vm2, %v462_v27  ;;  %v1096_v27 = vrot.slane %v1094_v23, 1  ;;  %v2779_v23 = vld [vmem:[%s2859_s29 + $0x60] sm:$0xff]  }
  0x78   : > { %2507 = vmatprep.mubr.msk.bf16.mxu0 %vm2795_vm1, %v2794_v0  ;;  %v1493_v31 = vrot.slane %v2779_v23, 1  ;;  %v1154_v55 = vshrl.u32 %v2779_v23, 16 }
  0x79   : > { %2578 = vmatmul.mubr.msk.bf16.gmra.mxu1 %vm500_vm2, %v2762_v20  ;;  %v1479_v20 = vrot.slane %v2772_v17, 1  ;;  %v1100_v34 = vor.u32 %v1098_v30, %v1096_v27 }
  0x7a   : > { %2581 = vmatprep.mubr.msk.bf16.mxu1 %vm2795_vm1, %v2794_v0 }
  0x7b   : > { %v1480_v24 = vsel %vm1471_vm4, %v1477_v12, %v1479_v20  ;;  %v1105_v37 = vsel %vm354_vm3, %v1100_v34, %v1104_v35 }
  0x7f   : > { %2508 = vmatmul.mubr.msk.bf16.gmra.mxu0 %vm500_vm2, %v470_v33  ;;  %v2774_v33 = vld [vmem:[%s2859_s29 + $0x38] sm:$0xff]  }
  0x80   : > { %2511 = vmatprep.mubr.msk.bf16.mxu0 %vm2795_vm1, %v2794_v0  ;;  %v1483_v36 = vrot.slane %v2774_v33, 1  ;;  %v1114_v46 = vshrl.u32 %v2774_v33, 16 }
  0x81   : > { %2582 = vmatmul.mubr.msk.bf16.gmra.mxu1 %vm500_vm2, %v2763_v26  ;;  %v1092_v26 = vor.u32 %v1090_v22, %v1088_v19  ;;  %v1138_v19 = vshrl.u32 %v2777_v57, 16 }
  0x82   : > { %2585 = vmatprep.mubr.msk.bf16.mxu1 %vm2795_vm1, %v2794_v0  ;;  %v1484_v40 = vsel %vm1471_vm4, %v1481_v28, %v1483_v36 }
  0x83   : > { %v1097_v29 = vsel %vm354_vm3, %v1092_v26, %v1096_v27 }
  0x87   : > { %2512 = vmatmul.mubr.msk.bf16.gmra.mxu0 %vm500_vm2, %v478_v39  ;;  %v1110_v39 = vshll.u32 %v2774_v33, 16 }
  0x88   : > { %2515 = vmatprep.mubr.msk.bf16.mxu0 %vm2795_vm1, %v2794_v0 }
  0x89   : > { %2586 = vmatmul.mubr.msk.bf16.gmra.mxu1 %vm500_vm2, %v2764_v32  ;;  %v1482_v32 = vsel %vm1471_vm4, %v1479_v20, %v1481_v28  ;;  %v1112_v43 = vrot.slane %v1110_v39, 1  ;;  %v1140_v28 = vor.u32 %v1138_v19, %v1136_v11  ;;  %v1162_v11 = vshrl.u32 %v2780_v41, 16 }
  0x8a   : > { %2589 = vmatprep.mubr.msk.bf16.mxu1 %vm2795_vm1, %v2794_v0 }
  0x8b   : > { %v1116_v50 = vor.u32 %v1114_v46, %v1112_v43 }
  0x8d   : > { %v1121_v53 = vsel %vm354_vm3, %v1116_v50, %v1120_v51 }
  0x8f   : > { %2516 = vmatmul.mubr.msk.bf16.gmra.mxu0 %vm500_vm2, %v486_v48  ;;  %v1486_v48 = vsel %vm1471_vm4, %v1483_v36, %v1485_v44 }
  0x90   : > { %2519 = vmatprep.mubr.msk.bf16.mxu0 %vm2795_vm1, %v2794_v0 }
  0x91   : > { %2590 = vmatmul.mubr.msk.bf16.gmra.mxu1 %vm500_vm2, %v2765_v38  ;;  %v1106_v38 = vshrl.u32 %v2773_v25, 16 }
  0x92   : > { %2665 = vmatprep.mubr.msk.bf16.mxu1 %vm2795_vm1, %v2794_v0 }
  0x93   : > { %v1108_v42 = vor.u32 %v1106_v38, %v1104_v35  ;;  %v1150_v38 = vshll.u32 %v2779_v23, 16 }
  0x95   : > { %v1113_v45 = vsel %vm354_vm3, %v1108_v42, %v1112_v43  ;;  %v1152_v47 = vrot.slane %v1150_v38, 1 }
  0x97   : > { %2520 = vmatmul.mubr.msk.bf16.gmra.mxu0 %vm500_vm2, %v494_v59  ;;  %v1124_v59 = vor.u32 %v1122_v54, %v1120_v51 }
  0x98   : > { %2595 = vmatprep.mubr.msk.bf16.mxu0 %vm2795_vm1, %v2794_v0 }
  0x99   : > { %2666 = vmatmul.mubr.msk.bf16.vlgmr.msra.gmra.mxu1 %vm500_vm2, %v1474_v63  ;;  %v1129_v1 = vsel %vm354_vm3, %v1124_v59, %v1128_v60  ;;  %v2781_v59 = vld [vmem:[%s2859_s29 + $0x70] sm:$0xff]  }
  0x9a   : > { %2669 = vmatprep.mubr.msk.bf16.mxu1 %vm2795_vm1, %v2794_v0 }
  0x9f   : > { %2596 = vmatmul.mubr.msk.bf16.vlgmr.msra.gmra.mxu0 %vm500_vm2, %v1073_v5  ;;  %v2778_v5 = vld [vmem:[%s2859_s29 + $0x58] sm:$0xff]  }
  0xa0   : > { %2599 = vmatprep.mubr.msk.bf16.mxu0 %vm2795_vm1, %v2794_v0  ;;  %v1142_v20 = vshll.u32 %v2778_v5, 16 }
  0xa1   : > { %2670 = vmatmul.mubr.msk.bf16.gmra.mxu1 %vm500_vm2, %v1476_v8 }
  0xa2   : > { %2673 = vmatprep.mubr.msk.bf16.mxu1 %vm2795_vm1, %v2794_v0 }
  0xa7   : > { %2600 = vmatmul.mubr.msk.bf16.gmra.mxu0 %vm500_vm2, %v1081_v13  ;;  %v1491_v13 = vrot.slane %v2778_v5, 1 }
  0xa8   : > { %2603 = vmatprep.mubr.msk.bf16.mxu0 %vm2795_vm1, %v2794_v0 }
  0xa9   : > { %2674 = vmatmul.mubr.msk.bf16.gmra.mxu1 %vm500_vm2, %v1478_v16  ;;  %v1492_v22 = vsel %vm1471_vm4, %v1489_v61, %v1491_v13 }
  0xaa   : > { %2677 = vmatprep.mubr.msk.bf16.mxu1 %vm2795_vm1, %v2794_v0 }
  0xaf   : > { %2604 = vmatmul.mubr.msk.bf16.gmra.mxu0 %vm500_vm2, %v1089_v21 }
  0xb0   : > { %2607 = vmatprep.mubr.msk.bf16.mxu0 %vm2795_vm1, %v2794_v0 }
  0xb1   : > { %2678 = vmatmul.mubr.msk.bf16.gmra.mxu1 %vm500_vm2, %v1480_v24 }
  0xb2   : > { %2681 = vmatprep.mubr.msk.bf16.mxu1 %vm2795_vm1, %v2794_v0 }
  0xb7   : > { %2608 = vmatmul.mubr.msk.bf16.gmra.mxu0 %vm500_vm2, %v1097_v29  ;;  %v1144_v29 = vrot.slane %v1142_v20, 1 }
  0xb8   : > { %2611 = vmatprep.mubr.msk.bf16.mxu0 %vm2795_vm1, %v2794_v0 }
  0xb9   : > { %2682 = vmatmul.mubr.msk.bf16.gmra.mxu1 %vm500_vm2, %v1482_v32  ;;  %v1145_v36 = vsel %vm354_vm3, %v1140_v28, %v1144_v29 }
  0xba   : > { %2685 = vmatprep.mubr.msk.bf16.mxu1 %vm2795_vm1, %v2794_v0 }
  0xbf   : > { %2612 = vmatmul.mubr.msk.bf16.gmra.mxu0 %vm500_vm2, %v1105_v37  ;;  %v1146_v37 = vshrl.u32 %v2778_v5, 16 }
  0xc0   : > { %2615 = vmatprep.mubr.msk.bf16.mxu0 %vm2795_vm1, %v2794_v0 }
  0xc1   : > { %2686 = vmatmul.mubr.msk.bf16.gmra.mxu1 %vm500_vm2, %v1484_v40  ;;  %v1494_v40 = vsel %vm1471_vm4, %v1491_v13, %v1493_v31  ;;  %v1148_v46 = vor.u32 %v1146_v37, %v1144_v29 }
  0xc2   : > { %2689 = vmatprep.mubr.msk.bf16.mxu1 %vm2795_vm1, %v2794_v0 }
  0xc3   : > { %v1153_v54 = vsel %vm354_vm3, %v1148_v46, %v1152_v47 }
  0xc7   : > { %2616 = vmatmul.mubr.msk.bf16.gmra.mxu0 %vm500_vm2, %v1113_v45 }
  0xc8   : > { %2619 = vmatprep.mubr.msk.bf16.mxu0 %vm2795_vm1, %v2794_v0 }
  0xc9   : > { %2690 = vmatmul.mubr.msk.bf16.gmra.mxu1 %vm500_vm2, %v1486_v48 }
  0xca   : > { %2693 = vmatprep.mubr.msk.bf16.mxu1 %vm2795_vm1, %v2794_v0 }
  0xcf   : > { %2620 = vmatmul.mubr.msk.bf16.gmra.mxu0 %vm500_vm2, %v1121_v53 }
  0xd0   : > { %2623 = vmatprep.mubr.msk.bf16.mxu0 %vm2795_vm1, %v2794_v0 }
  0xd1   : > { %v801_v58 = vpop.f32.mrf.mxu1  ;;  %2694 = vmatmul.mubr.msk.bf16.gmra.mxu1 %vm500_vm2, %v1488_v56  ;;  %v1158_v56 = vshll.u32 %v2780_v41, 16 }
  0xd2   : > { %2697 = vmatprep.mubr.msk.bf16.mxu1 %vm2795_vm1, %v2794_v0 }
  0xd3   : > { %v2527_v62 = vpop.f32.mrf.mxu1  ;;  %v1160_v2 = vrot.slane %v1158_v56, 1  ;;  %v2784_v56 = vld [vmem:[%s2859_s29 + $0x88] sm:$0xff]  }
  0xd5   : > { %v804_v63 = vpop.f32.mrf.mxu1 }
  0xd7   : > { %v2528_v6 = vpop.f32.mrf.mxu1  ;;  %v590_v7 = vpop.f32.mrf.mxu0  ;;  %2624 = vmatmul.mubr.msk.bf16.gmra.mxu0 %vm500_vm2, %v1129_v1 }
  0xd8   : > { %v3079_v8 = vadd.f32 %v801_v58, %v590_v7  ;;  %2627 = vmatprep.mubr.msk.bf16.mxu0 %vm2795_vm1, %v2794_v0  ;;  %v1496_v58 = vsel %vm1471_vm4, %v1493_v31, %v1495_v49  ;;  %v1170_v31 = vshrl.u32 %v2781_v59, 16 }
  0xd9   : > { %v809_v9 = vpop.f32.mrf.mxu1  ;;  %2698 = vmatmul.mubr.msk.bf16.gmra.mxu1 %vm500_vm2, %v1490_v4  ;;  %v2457_v12 = vpop.f32.mrf.mxu0  ;;  %v1497_v4 = vrot.slane %v2781_v59, 1 }
  0xda   : > { %2701 = vmatprep.mubr.msk.bf16.mxu1 %vm2795_vm1, %v2794_v0  ;;  %v1166_v12 = vshll.u32 %v2781_v59, 16 }
  0xdb   : > { %v2531_v14 = vpop.f32.mrf.mxu1  ;;  %v593_v15 = vpop.f32.mrf.mxu0 }
  0xdc   : > { %v3086_v16 = vadd.f32 %v804_v63, %v593_v15  ;;  %v1156_v63 = vor.u32 %v1154_v55, %v1152_v47  ;;  %v1498_v14 = vsel %vm1471_vm4, %v1495_v49, %v1497_v4  ;;  %v2782_v15 = vld [vmem:[%s2859_s29 + $0x78] sm:$0xff]  }
  0xdd   : > { %v812_v17 = vpop.f32.mrf.mxu1  ;;  %v2458_v21 = vpop.f32.mrf.mxu0 }
  0xde   : > { %v1161_v10 = vsel %vm354_vm3, %v1156_v63, %v1160_v2  ;;  %v1164_v21 = vor.u32 %v1162_v11, %v1160_v2  ;;  %v1503_v2 = vrot.slane %v2784_v56, 1  ;;  %v1190_v11 = vshll.u32 %v2784_v56, 16 }
  0xdf   : > { %v2532_v24 = vpop.f32.mrf.mxu1  ;;  %v598_v25 = vpop.f32.mrf.mxu0  ;;  %2628 = vmatmul.mubr.msk.bf16.gmra.mxu0 %vm500_vm2, %v1137_v18 }
  0xe0   : > { %v3092_v26 = vadd.f32 %v809_v9, %v598_v25  ;;  %2631 = vmatprep.mubr.msk.bf16.mxu0 %vm2795_vm1, %v2794_v0  ;;  %v1499_v24 = vrot.slane %v2782_v15, 1 }
  0xe1   : > { %v817_v27 = vpop.f32.mrf.mxu1  ;;  %2702 = vmatmul.mubr.msk.bf16.gmra.mxu1 %vm500_vm2, %v1492_v22  ;;  %v2461_v30 = vpop.f32.mrf.mxu0  ;;  %v1168_v22 = vrot.slane %v1166_v12, 1 }
  0xe2   : > { %2705 = vmatprep.mubr.msk.bf16.mxu1 %vm2795_vm1, %v2794_v0 }
  0xe3   : > { %v2535_v32 = vpop.f32.mrf.mxu1  ;;  %v601_v33 = vpop.f32.mrf.mxu0  ;;  %v1169_v30 = vsel %vm354_vm3, %v1164_v21, %v1168_v22  ;;  %v1172_v41 = vor.u32 %v1170_v31, %v1168_v22  ;;  %v1192_v22 = vrot.slane %v1190_v11, 1 }
  0xe4   : > { %v3099_v34 = vadd.f32 %v812_v17, %v601_v33  ;;  %v1174_v32 = vshll.u32 %v2782_v15, 16 }
  0xe5   : > { %v820_v35 = vpop.f32.mrf.mxu1  ;;  %v2462_v39 = vpop.f32.mrf.mxu0 }
  0xe7   : > { %v2536_v42 = vpop.f32.mrf.mxu1  ;;  %v606_v43 = vpop.f32.mrf.mxu0  ;;  %2632 = vmatmul.mubr.msk.bf16.gmra.mxu0 %vm500_vm2, %v1145_v36  ;;  %v2783_v36 = vld [vmem:[%s2859_s29 + $0x80] sm:$0xff]  }
  0xe8   : > { %v3105_v44 = vadd.f32 %v817_v27, %v606_v43  ;;  %2635 = vmatprep.mubr.msk.bf16.mxu0 %vm2795_vm1, %v2794_v0  ;;  %v1176_v42 = vrot.slane %v1174_v32, 1  ;;  %v1194_v32 = vshrl.u32 %v2784_v56, 16 }
  0xe9   : > { %v825_v45 = vpop.f32.mrf.mxu1  ;;  %2706 = vmatmul.mubr.msk.bf16.gmra.mxu1 %vm500_vm2, %v1494_v40  ;;  %v2465_v48 = vpop.f32.mrf.mxu0 }
  0xea   : > { %2709 = vmatprep.mubr.msk.bf16.mxu1 %vm2795_vm1, %v2794_v0 }
  0xeb   : > { %v2539_v50 = vpop.f32.mrf.mxu1  ;;  %v609_v51 = vpop.f32.mrf.mxu0 }
  0xec   : > { %v3112_v52 = vadd.f32 %v820_v35, %v609_v51  ;;  %v1500_v35 = vsel %vm1471_vm4, %v1497_v4, %v1499_v24  ;;  %v1177_v50 = vsel %vm354_vm3, %v1172_v41, %v1176_v42  ;;  %v1178_v51 = vshrl.u32 %v2782_v15, 16 }
  0xed   : > { %v828_v53 = vpop.f32.mrf.mxu1  ;;  %v2466_v57 = vpop.f32.mrf.mxu0 }
  0xef   : > { %v2540_v60 = vpop.f32.mrf.mxu1  ;;  %v614_v61 = vpop.f32.mrf.mxu0  ;;  %2636 = vmatmul.mubr.msk.bf16.gmra.mxu0 %vm500_vm2, %v1153_v54 }
  0xf0   : > { %v3118_v62 = vadd.f32 %v825_v45, %v614_v61  ;;  %2639 = vmatprep.mubr.msk.bf16.mxu0 %vm2795_vm1, %v2794_v0  ;;  %v1501_v45 = vrot.slane %v2783_v36, 1  ;;  %v1180_v61 = vor.u32 %v1178_v51, %v1176_v42  ;;  %v1196_v42 = vor.u32 %v1194_v32, %v1192_v22 }
  0xf1   : > { %v833_v1 = vpop.f32.mrf.mxu1  ;;  %2710 = vmatmul.mubr.msk.bf16.gmra.mxu1 %vm500_vm2, %v1496_v58  ;;  %v2469_v3 = vpop.f32.mrf.mxu0 }
  0xf2   : > { %2713 = vmatprep.mubr.msk.bf16.mxu1 %vm2795_vm1, %v2794_v0  ;;  %v1502_v55 = vsel %vm1471_vm4, %v1499_v24, %v1501_v45 }
  0xf3   : > { %v2543_v5 = vpop.f32.mrf.mxu1  ;;  %v617_v6 = vpop.f32.mrf.mxu0 }
  0xf4   : > { %v3125_v7 = vadd.f32 %v828_v53, %v617_v6  ;;  %v1182_v53 = vshll.u32 %v2783_v36, 16 }
  0xf5   : > { %v836_v9 = vpop.f32.mrf.mxu1  ;;  %v2470_v13 = vpop.f32.mrf.mxu0 }
  0xf6   : > { %v1184_v63 = vrot.slane %v1182_v53, 1  ;;  %v1504_v13 = vsel %vm1471_vm4, %v1501_v45, %v1503_v2 }
  0xf7   : > { %v2544_v17 = vpop.f32.mrf.mxu1  ;;  %v622_v18 = vpop.f32.mrf.mxu0  ;;  %2640 = vmatmul.mubr.msk.bf16.gmra.mxu0 %vm500_vm2, %v1161_v10  ;;  %v1186_v10 = vshrl.u32 %v2783_v36, 16 }
  0xf8   : > { %v3131_v19 = vadd.f32 %v833_v1, %v622_v18  ;;  %2643 = vmatprep.mubr.msk.bf16.mxu0 %vm2795_vm1, %v2794_v0 }
  0xf9   : > { %v841_v20 = vpop.f32.mrf.mxu1  ;;  %2714 = vmatmul.mubr.msk.bf16.gmra.mxu1 %vm500_vm2, %v1498_v14  ;;  %v2473_v23 = vpop.f32.mrf.mxu0  ;;  %v2785_v14 = vld [vmem:[%s2859_s29 + $0x90] ss:$0 sps:$4 sm:$0x11]   ;;  %v1188_v21 = vor.u32 %v1186_v10, %v1184_v63 }
  0xfa   : > { %2717 = vmatprep.mubr.msk.bf16.mxu1 %vm2795_vm1, %v2794_v0  ;;  %v1505_v24 = vrot.slane %v2785_v14, 1 }
  0xfb   : > { %v2547_v25 = vpop.f32.mrf.mxu1  ;;  %v625_v27 = vpop.f32.mrf.mxu0  ;;  %v1193_v31 = vsel %vm354_vm3, %v1188_v21, %v1192_v22 }
  0xfc   : > { %v3138_v28 = vadd.f32 %v836_v9, %v625_v27  ;;  %v1185_v9 = vsel %vm354_vm3, %v1180_v61, %v1184_v63  ;;  %v1506_v36 = vsel %vm1471_vm4, %v1503_v2, %v1505_v24 }
  0xfd   : > { %v844_v29 = vpop.f32.mrf.mxu1  ;;  %v2474_v33 = vpop.f32.mrf.mxu0 }
  0xfe   : > { %v1198_v33 = vshll.u32 %v2785_v14, 16 }
  0xff   : > { %v2548_v37 = vpop.f32.mrf.mxu1  ;;  %v630_v38 = vpop.f32.mrf.mxu0  ;;  %2644 = vmatmul.mubr.msk.bf16.gmra.mxu0 %vm500_vm2, %v1169_v30 }
 0x100   : > { %v3144_v39 = vadd.f32 %v841_v20, %v630_v38  ;;  %2647 = vmatprep.mubr.msk.bf16.mxu0 %vm2795_vm1, %v2794_v0 }
 0x101   : > { %v849_v40 = vpop.f32.mrf.mxu1  ;;  %2718 = vmatmul.mubr.msk.bf16.gmra.mxu1 %vm500_vm2, %v1500_v35  ;;  %v2477_v43 = vpop.f32.mrf.mxu0 }
 0x102   : > { %2721 = vmatprep.mubr.msk.bf16.mxu1 %vm2795_vm1, %v2794_v0  ;;  %v1200_v43 = vrot.slane %v1198_v33, 1 }
 0x103   : > { %v2551_v46 = vpop.f32.mrf.mxu1  ;;  %v633_v47 = vpop.f32.mrf.mxu0 }
 0x104   : > { %v3151_v48 = vadd.f32 %v844_v29, %v633_v47  ;;  %v1201_v51 = vsel %vm354_vm3, %v1196_v42, %v1200_v43 }
 0x105   : > { %v852_v49 = vpop.f32.mrf.mxu1  ;;  %v2478_v54 = vpop.f32.mrf.mxu0 }
 0x107   : > { %v2552_v57 = vpop.f32.mrf.mxu1  ;;  %v638_v58 = vpop.f32.mrf.mxu0  ;;  %2648 = vmatmul.mubr.msk.bf16.gmra.mxu0 %vm500_vm2, %v1177_v50 }
 0x108   : > { %v3157_v59 = vadd.f32 %v849_v40, %v638_v58  ;;  %2651 = vmatprep.mubr.msk.bf16.mxu0 %vm2795_vm1, %v2794_v0 }
 0x109   : > { %v857_v60 = vpop.f32.mrf.mxu1  ;;  %2722 = vmatmul.mubr.msk.bf16.gmra.mxu1 %vm500_vm2, %v1502_v55  ;;  %v2481_v1 = vpop.f32.mrf.mxu0 }
 0x10a   : > { %2725 = vmatprep.mubr.msk.bf16.mxu1 %vm2795_vm1, %v2794_v0 }
 0x10b   : > { %v2555_v3 = vpop.f32.mrf.mxu1  ;;  %v641_v4 = vpop.f32.mrf.mxu0 }
 0x10c   : > { %v3164_v5 = vadd.f32 %v852_v49, %v641_v4 }
 0x10d   : > { %v860_v6 = vpop.f32.mrf.mxu1  ;;  %v2482_v12 = vpop.f32.mrf.mxu0 }
 0x10f   : > { %v2556_v15 = vpop.f32.mrf.mxu1  ;;  %v646_v17 = vpop.f32.mrf.mxu0  ;;  %2652 = vmatmul.mubr.msk.bf16.gmra.mxu0 %vm500_vm2, %v1185_v9 }
 0x110   : > { %v3170_v18 = vadd.f32 %v857_v60, %v646_v17  ;;  %2655 = vmatprep.mubr.msk.bf16.mxu0 %vm2795_vm1, %v2794_v0 }
 0x111   : > { %v865_v20 = vpop.f32.mrf.mxu1  ;;  %2726 = vmatmul.mubr.msk.bf16.gmra.mxu1 %vm500_vm2, %v1504_v13  ;;  %v2485_v23 = vpop.f32.mrf.mxu0 }
 0x112   : > { %2729 = vmatprep.mubr.msk.bf16.mxu1 %vm2795_vm1, %v2794_v0 }
 0x113   : > { %v2559_v25 = vpop.f32.mrf.mxu1  ;;  %v649_v27 = vpop.f32.mrf.mxu0 }
 0x114   : > { %v3177_v29 = vadd.f32 %v860_v6, %v649_v27 }
 0x115   : > { %v868_v30 = vpop.f32.mrf.mxu1  ;;  %v2486_v35 = vpop.f32.mrf.mxu0 }
 0x117   : > { %v2560_v37 = vpop.f32.mrf.mxu1  ;;  %v654_v38 = vpop.f32.mrf.mxu0  ;;  %2656 = vmatmul.mubr.msk.bf16.gmra.mxu0 %vm500_vm2, %v1193_v31 }
 0x118   : > { %v3182_v40 = vadd.f32 %v865_v20, %v654_v38  ;;  %2659 = vmatprep.mubr.msk.bf16.mxu0 %vm2795_vm1, %v2794_v0 }
 0x119   : > { %v873_v41 = vpop.f32.mrf.mxu1  ;;  %2730 = vmatmul.mubr.msk.bf16.gmra.mxu1 %vm500_vm2, %v1506_v36  ;;  %v2489_v45 = vpop.f32.mrf.mxu0 }
 0x11b   : > { %v2563_v46 = vpop.f32.mrf.mxu1  ;;  %v657_v47 = vpop.f32.mrf.mxu0 }
 0x11c   : > { %v3187_v49 = vadd.f32 %v868_v30, %v657_v47 }
 0x11d   : > { %v876_v50 = vpop.f32.mrf.mxu1  ;;  %v2490_v53 = vpop.f32.mrf.mxu0 }
 0x11f   : > { %v2564_v54 = vpop.f32.mrf.mxu1  ;;  %v662_v55 = vpop.f32.mrf.mxu0  ;;  %2660 = vmatmul.mubr.msk.bf16.gmra.mxu0 %vm500_vm2, %v1201_v51 }
 0x120   : > { %v3191_v56 = vadd.f32 %v873_v41, %v662_v55 }
 0x121   : > { %v881_v57 = vpop.f32.mrf.mxu1  ;;  %v2493_v58 = vpop.f32.mrf.mxu0 }
 0x123   : > { %v2567_v0 = vpop.f32.mrf.mxu1  ;;  %v665_v60 = vpop.f32.mrf.mxu0 }
 0x124   : > { %v3193_v61 = vadd.f32 %v876_v50, %v665_v60 }
 0x125   : > { %v884_v63 = vpop.f32.mrf.mxu1  ;;  %v2494_v1 = vpop.f32.mrf.mxu0 }
 0x127   : > { %v2568_v2 = vpop.f32.mrf.mxu1  ;;  %v670_v3 = vpop.f32.mrf.mxu0 }
 0x128   : > { %v3195_v4 = vadd.f32 %v881_v57, %v670_v3 }
 0x129   : > { %v889_v6 = vpop.f32.mrf.mxu1  ;;  %v2497_v9 = vpop.f32.mrf.mxu0 }
 0x12b   : > { %v2571_v10 = vpop.f32.mrf.mxu1  ;;  %v673_v11 = vpop.f32.mrf.mxu0 }
 0x12c   : > { %v3197_v12 = vadd.f32 %v884_v63, %v673_v11 }
 0x12d   : > { %v892_v13 = vpop.f32.mrf.mxu1  ;;  %v2498_v14 = vpop.f32.mrf.mxu0 }
 0x12f   : > { %v2572_v15 = vpop.f32.mrf.mxu1  ;;  %v678_v17 = vpop.f32.mrf.mxu0 }
 0x130   : > { %v3199_v20 = vadd.f32 %v889_v6, %v678_v17 }
 0x131   : > { %v897_v21 = vpop.f32.mrf.mxu1  ;;  %v2501_v22 = vpop.f32.mrf.mxu0 }
 0x133   : > { %v2575_v23 = vpop.f32.mrf.mxu1  ;;  %v681_v24 = vpop.f32.mrf.mxu0 }
 0x134   : > { %v3201_v25 = vadd.f32 %v892_v13, %v681_v24 }
 0x135   : > { %v900_v27 = vpop.f32.mrf.mxu1  ;;  %v2502_v30 = vpop.f32.mrf.mxu0 }
 0x137   : > { %v2576_v31 = vpop.f32.mrf.mxu1  ;;  %v686_v32 = vpop.f32.mrf.mxu0 }
 0x138   : > { %v3203_v33 = vadd.f32 %v897_v21, %v686_v32 }
 0x139   : > { %v905_v35 = vpop.f32.mrf.mxu1  ;;  %v2505_v36 = vpop.f32.mrf.mxu0 }
 0x13b   : > { %v2579_v37 = vpop.f32.mrf.mxu1  ;;  %v689_v38 = vpop.f32.mrf.mxu0 }
 0x13c   : > { %v3205_v41 = vadd.f32 %v900_v27, %v689_v38 }
 0x13d   : > { %v908_v42 = vpop.f32.mrf.mxu1  ;;  %v2506_v43 = vpop.f32.mrf.mxu0 }
 0x13f   : > { %v2580_v45 = vpop.f32.mrf.mxu1  ;;  %v694_v46 = vpop.f32.mrf.mxu0 }
 0x140   : > { %v3207_v47 = vadd.f32 %v905_v35, %v694_v46 }
 0x141   : > { %v913_v50 = vpop.f32.mrf.mxu1  ;;  %v2509_v51 = vpop.f32.mrf.mxu0 }
 0x143   : > { %v2583_v53 = vpop.f32.mrf.mxu1  ;;  %v697_v54 = vpop.f32.mrf.mxu0 }
 0x144   : > { %v3209_v55 = vadd.f32 %v908_v42, %v697_v54 }
 0x145   : > { %v916_v57 = vpop.f32.mrf.mxu1  ;;  %v2510_v58 = vpop.f32.mrf.mxu0 }
 0x147   : > { %v2584_v0 = vpop.f32.mrf.mxu1  ;;  %v702_v60 = vpop.f32.mrf.mxu0 }
 0x148   : > { %v3211_v63 = vadd.f32 %v913_v50, %v702_v60 }
 0x149   : > { %v921_v1 = vpop.f32.mrf.mxu1  ;;  %v2513_v2 = vpop.f32.mrf.mxu0 }
 0x14b   : > { %v2587_v3 = vpop.f32.mrf.mxu1  ;;  %v705_v6 = vpop.f32.mrf.mxu0 }
 0x14c   : > { %v3213_v9 = vadd.f32 %v916_v57, %v705_v6  ;;  %v3227_v57 = vld [vmem:[%s3453_s2] ss:$0 sm:$0xff] }
 0x14d   : > { %v924_v10 = vpop.f32.mrf.mxu1  ;;  %v2514_v11 = vpop.f32.mrf.mxu0 }
 0x14f   : > { %v2588_v13 = vpop.f32.mrf.mxu1  ;;  %v710_v14 = vpop.f32.mrf.mxu0 }
 0x150   : > { %v3215_v15 = vadd.f32 %v921_v1, %v710_v14  ;;  %v3234_v14 = vld [vmem:[%s3454_s3] ss:$0 sm:$0xff] }
 0x151   : > { %v929_v17 = vpop.f32.mrf.mxu1  ;;  %v2517_v21 = vpop.f32.mrf.mxu0 }
 0x153   : > { %v2591_v22 = vpop.f32.mrf.mxu1  ;;  %v713_v23 = vpop.f32.mrf.mxu0 }
 0x154   : > { %v3217_v24 = vadd.f32 %v924_v10, %v713_v23 }
 0x155   : > { %v932_v27 = vpop.f32.mrf.mxu1  ;;  %v2518_v30 = vpop.f32.mrf.mxu0 }
 0x157   : > { %v2592_v31 = vpop.f32.mrf.mxu1  ;;  %v718_v32 = vpop.f32.mrf.mxu0 }
 0x158   : > { %v3219_v35 = vadd.f32 %v929_v17, %v718_v32 }
 0x159   : > { %v1600_v36 = vpop.f32.mrf.mxu1  ;;  %v2521_v37 = vpop.f32.mrf.mxu0 }
 0x15b   : > { %v2667_v38 = vpop.f32.mrf.mxu1  ;;  %v721_v42 = vpop.f32.mrf.mxu0 }
 0x15c   : > { %v3221_v43 = vadd.f32 %v932_v27, %v721_v42 }
 0x15d   : > { %v1603_v45 = vpop.f32.mrf.mxu1  ;;  %v2522_v46 = vpop.f32.mrf.mxu0 }
 0x15f   : > { %v2668_v50 = vpop.f32.mrf.mxu1  ;;  %v1295_v51 = vpop.f32.mrf.mxu0 }
 0x160   : > { %v1430_v53 = vadd.f32 %v1295_v51, %v3079_v8 }
 0x161   : > { %v1608_v54 = vpop.f32.mrf.mxu1  ;;  %v2597_v58 = vpop.f32.mrf.mxu0 }
 0x162   : > { %v1735_v0 = vadd.f32 %v1600_v36, %v1430_v53 }
 0x163   : > { %v2671_v60 = vpop.f32.mrf.mxu1  ;;  %v1298_v1 = vpop.f32.mrf.mxu0 }
 0x164   : > { %v1776_v2 = vadd.f32 %v3227_v57, %v1735_v0  ;;  %v1431_v3 = vadd.f32 %v1298_v1, %v3086_v16  ;;  %v3242_v16 = vld [vmem:[%s3455_s4] ss:$0 sm:$0xff] }
 0x165   : > { %v1611_v6 = vpop.f32.mrf.mxu1  ;;  %v2598_v10 = vpop.f32.mrf.mxu0 }
 0x166   : > { %v1810_v11 = vmul.f32 0.2, %v1776_v2  ;;  %v1736_v13 = vadd.f32 %v1603_v45, %v1431_v3 }
 0x167   : > { %v2672_v8 = vpop.f32.mrf.mxu1  ;;  %v1303_v17 = vpop.f32.mrf.mxu0 }
 0x168   : > { %v1844_v21 = vmax.f32 %v1776_v2, %v1810_v11  ;;  %v1777_v22 = vadd.f32 %v3227_v57, %v1736_v13  ;;  %v1432_v23 = vadd.f32 %v1303_v17, %v3092_v26 }
 0x169   : > { %v1616_v27 = vpop.f32.mrf.mxu1  ;;  %v2601_v30 = vpop.f32.mrf.mxu0 }
 0x16a   : > { %v1885_v31 = vmul.f32 %v3234_v14, %v1844_v21  ;;  %v1811_v32 = vmul.f32 0.2, %v1777_v22  ;;  %v1737_v36 = vadd.f32 %v1608_v54, %v1432_v23 }
 0x16b   : > { %v2675_v37 = vpop.f32.mrf.mxu1  ;;  %v1306_v38 = vpop.f32.mrf.mxu0 }
 0x16c   : > { %v1926_v42 = vadd.f32 %v3242_v16, %v1885_v31  ;;  %v1845_v45 = vmax.f32 %v1777_v22, %v1811_v32  ;;  %v1778_v46 = vadd.f32 %v3227_v57, %v1737_v36  ;;  %v1433_v26 = vadd.f32 %v1306_v38, %v3099_v34 }
 0x16d   : > { %v1619_v50 = vpop.f32.mrf.mxu1  ;;  %v2602_v51 = vpop.f32.mrf.mxu0 }
 0x16e   : > { %v2347_v53 = vpack.c.bf16 %v1926_v42, %v1926_v42  ;;  %v1886_v54 = vmul.f32 %v3234_v14, %v1845_v45  ;;  %v1812_v58 = vmul.f32 0.2, %v1778_v46  ;;  %v1738_v0 = vadd.f32 %v1611_v6, %v1433_v26 }
 0x16f   : > { %v2676_v60 = vpop.f32.mrf.mxu1  ;;  %v1311_v1 = vpop.f32.mrf.mxu0 }
 0x170   : > { %2097 = vst.msk [vmem:[%s3251_s16] sm:$0xf] %vm2096_vm5, %v2347_v53  ;;  %v1927_v34 = vadd.f32 %v3242_v16, %v1886_v54  ;;  %v1846_v2 = vmax.f32 %v1778_v46, %v1812_v58  ;;  %v1779_v3 = vadd.f32 %v3227_v57, %v1738_v0  ;;  %v1434_v10 = vadd.f32 %v1311_v1, %v3105_v44 }
 0x171   : > { %v1624_v11 = vpop.f32.mrf.mxu1  ;;  %v2605_v13 = vpop.f32.mrf.mxu0 }
 0x172   : > { %v2348_v8 = vpack.c.bf16 %v1927_v34, %v1927_v34  ;;  %v1887_v17 = vmul.f32 %v3234_v14, %v1846_v2  ;;  %v1813_v21 = vmul.f32 0.2, %v1779_v3  ;;  %v1739_v22 = vadd.f32 %v1616_v27, %v1434_v10 }
 0x173   : > { %v2679_v6 = vpop.f32.mrf.mxu1  ;;  %v1314_v23 = vpop.f32.mrf.mxu0 }
 0x174   : > { %2098 = vst.msk [vmem:[%s3251_s16 + $0x4] sm:$0xf] %vm2096_vm5, %v2348_v8  ;;  %v1928_v30 = vadd.f32 %v3242_v16, %v1887_v17  ;;  %v1847_v31 = vmax.f32 %v1779_v3, %v1813_v21  ;;  %v1780_v32 = vadd.f32 %v3227_v57, %v1739_v22  ;;  %v1435_v36 = vadd.f32 %v1314_v23, %v3112_v52 }
 0x175   : > { %v1627_v44 = vpop.f32.mrf.mxu1  ;;  %v2606_v37 = vpop.f32.mrf.mxu0 }
 0x176   : > { %v2349_v38 = vpack.c.bf16 %v1928_v30, %v1928_v30  ;;  %v1888_v42 = vmul.f32 %v3234_v14, %v1847_v31  ;;  %v1814_v45 = vmul.f32 0.2, %v1780_v32  ;;  %v1740_v46 = vadd.f32 %v1619_v50, %v1435_v36 }
 0x177   : > { %v2680_v27 = vpop.f32.mrf.mxu1  ;;  %v1319_v26 = vpop.f32.mrf.mxu0 }
 0x178   : > { %2099 = vst.msk [vmem:[%s3251_s16 + $0x8] sm:$0xf] %vm2096_vm5, %v2349_v38  ;;  %v1929_v51 = vadd.f32 %v3242_v16, %v1888_v42  ;;  %v1848_v53 = vmax.f32 %v1780_v32, %v1814_v45  ;;  %v1781_v54 = vadd.f32 %v3227_v57, %v1740_v46  ;;  %v1436_v58 = vadd.f32 %v1319_v26, %v3118_v62 }
 0x179   : > { %v1632_v52 = vpop.f32.mrf.mxu1  ;;  %v2609_v0 = vpop.f32.mrf.mxu0 }
 0x17a   : > { %v2350_v60 = vpack.c.bf16 %v1929_v51, %v1929_v51  ;;  %v1889_v1 = vmul.f32 %v3234_v14, %v1848_v53  ;;  %v1815_v34 = vmul.f32 0.2, %v1781_v54  ;;  %v1741_v2 = vadd.f32 %v1624_v11, %v1436_v58 }
 0x17b   : > { %v2683_v50 = vpop.f32.mrf.mxu1  ;;  %v1322_v3 = vpop.f32.mrf.mxu0 }
 0x17c   : > { %2100 = vst.msk [vmem:[%s3251_s16 + $0xc] sm:$0xf] %vm2096_vm5, %v2350_v60  ;;  %v1930_v10 = vadd.f32 %v3242_v16, %v1889_v1  ;;  %v1849_v13 = vmax.f32 %v1781_v54, %v1815_v34  ;;  %v1782_v8 = vadd.f32 %v3227_v57, %v1741_v2  ;;  %v1437_v17 = vadd.f32 %v1322_v3, %v3125_v7 }
 0x17d   : > { %v1635_v62 = vpop.f32.mrf.mxu1  ;;  %v2610_v21 = vpop.f32.mrf.mxu0 }
 0x17e   : > { %v2351_v22 = vpack.c.bf16 %v1930_v10, %v1930_v10  ;;  %v1890_v6 = vmul.f32 %v3234_v14, %v1849_v13  ;;  %v1816_v23 = vmul.f32 0.2, %v1782_v8  ;;  %v1742_v30 = vadd.f32 %v1627_v44, %v1437_v17 }
 0x17f   : > { %v2684_v11 = vpop.f32.mrf.mxu1  ;;  %v1327_v31 = vpop.f32.mrf.mxu0 }
 0x180   : > { %2101 = vst.msk [vmem:[%s3251_s16 + $0x10] sm:$0xf] %vm2096_vm5, %v2351_v22  ;;  %v1931_v32 = vadd.f32 %v3242_v16, %v1890_v6  ;;  %v1850_v36 = vmax.f32 %v1782_v8, %v1816_v23  ;;  %v1783_v37 = vadd.f32 %v3227_v57, %v1742_v30  ;;  %v1438_v38 = vadd.f32 %v1327_v31, %v3131_v19 }
 0x181   : > { %v1640_v7 = vpop.f32.mrf.mxu1  ;;  %v2613_v42 = vpop.f32.mrf.mxu0 }
 0x182   : > { %v2352_v45 = vpack.c.bf16 %v1931_v32, %v1931_v32  ;;  %v1891_v46 = vmul.f32 %v3234_v14, %v1850_v36  ;;  %v1817_v27 = vmul.f32 0.2, %v1783_v37  ;;  %v1743_v26 = vadd.f32 %v1632_v52, %v1438_v38 }
 0x183   : > { %v2687_v44 = vpop.f32.mrf.mxu1  ;;  %v1330_v51 = vpop.f32.mrf.mxu0 }
 0x184   : > { %2102 = vst.msk [vmem:[%s3251_s16 + $0x14] sm:$0xf] %vm2096_vm5, %v2352_v45  ;;  %v1932_v53 = vadd.f32 %v3242_v16, %v1891_v46  ;;  %v1851_v54 = vmax.f32 %v1783_v37, %v1817_v27  ;;  %v1784_v58 = vadd.f32 %v3227_v57, %v1743_v26  ;;  %v1439_v0 = vadd.f32 %v1330_v51, %v3138_v28 }
 0x185   : > { %v1643_v19 = vpop.f32.mrf.mxu1  ;;  %v2614_v60 = vpop.f32.mrf.mxu0 }
 0x186   : > { %v2353_v1 = vpack.c.bf16 %v1932_v53, %v1932_v53  ;;  %v1892_v34 = vmul.f32 %v3234_v14, %v1851_v54  ;;  %v1818_v2 = vmul.f32 0.2, %v1784_v58  ;;  %v1744_v50 = vadd.f32 %v1635_v62, %v1439_v0 }
 0x187   : > { %v2688_v52 = vpop.f32.mrf.mxu1  ;;  %v1335_v3 = vpop.f32.mrf.mxu0 }
 0x188   : > { %2103 = vst.msk [vmem:[%s3251_s16 + $0x18] sm:$0xf] %vm2096_vm5, %v2353_v1  ;;  %v1933_v10 = vadd.f32 %v3242_v16, %v1892_v34  ;;  %v1852_v13 = vmax.f32 %v1784_v58, %v1818_v2  ;;  %v1785_v8 = vadd.f32 %v3227_v57, %v1744_v50  ;;  %v1440_v17 = vadd.f32 %v1335_v3, %v3144_v39 }
 0x189   : > { %v1648_v28 = vpop.f32.mrf.mxu1  ;;  %v2617_v21 = vpop.f32.mrf.mxu0 }
 0x18a   : > { %v2354_v22 = vpack.c.bf16 %v1933_v10, %v1933_v10  ;;  %v1893_v6 = vmul.f32 %v3234_v14, %v1852_v13  ;;  %v1819_v23 = vmul.f32 0.2, %v1785_v8  ;;  %v1745_v30 = vadd.f32 %v1640_v7, %v1440_v17 }
 0x18b   : > { %v2691_v62 = vpop.f32.mrf.mxu1  ;;  %v1338_v11 = vpop.f32.mrf.mxu0 }
 0x18c   : > { %2104 = vst.msk [vmem:[%s3251_s16 + $0x1c] sm:$0xf] %vm2096_vm5, %v2354_v22  ;;  %v1934_v31 = vadd.f32 %v3242_v16, %v1893_v6  ;;  %v1853_v32 = vmax.f32 %v1785_v8, %v1819_v23  ;;  %v1786_v36 = vadd.f32 %v3227_v57, %v1745_v30  ;;  %v1441_v37 = vadd.f32 %v1338_v11, %v3151_v48 }
 0x18d   : > { %v1651_v39 = vpop.f32.mrf.mxu1  ;;  %v2618_v38 = vpop.f32.mrf.mxu0 }
 0x18e   : > { %v2355_v42 = vpack.c.bf16 %v1934_v31, %v1934_v31  ;;  %v1894_v45 = vmul.f32 %v3234_v14, %v1853_v32  ;;  %v1820_v46 = vmul.f32 0.2, %v1786_v36  ;;  %v1746_v27 = vadd.f32 %v1643_v19, %v1441_v37 }
 0x18f   : > { %v2692_v7 = vpop.f32.mrf.mxu1  ;;  %v1343_v26 = vpop.f32.mrf.mxu0 }
 0x190   : > { %2105 = vst.msk [vmem:[%s3251_s16 + $0x20] sm:$0xf] %vm2096_vm5, %v2355_v42  ;;  %v1935_v44 = vadd.f32 %v3242_v16, %v1894_v45  ;;  %v1854_v51 = vmax.f32 %v1786_v36, %v1820_v46  ;;  %v1787_v53 = vadd.f32 %v3227_v57, %v1746_v27  ;;  %v1442_v54 = vadd.f32 %v1343_v26, %v3157_v59 }
 0x191   : > { %v1656_v48 = vpop.f32.mrf.mxu1  ;;  %v2621_v58 = vpop.f32.mrf.mxu0 }
 0x192   : > { %v2356_v0 = vpack.c.bf16 %v1935_v44, %v1935_v44  ;;  %v1895_v60 = vmul.f32 %v3234_v14, %v1854_v51  ;;  %v1821_v1 = vmul.f32 0.2, %v1787_v53  ;;  %v1747_v34 = vadd.f32 %v1648_v28, %v1442_v54 }
 0x193   : > { %v2695_v19 = vpop.f32.mrf.mxu1  ;;  %v1346_v2 = vpop.f32.mrf.mxu0 }
 0x194   : > { %2106 = vst.msk [vmem:[%s3251_s16 + $0x24] sm:$0xf] %vm2096_vm5, %v2356_v0  ;;  %v1936_v50 = vadd.f32 %v3242_v16, %v1895_v60  ;;  %v1855_v52 = vmax.f32 %v1787_v53, %v1821_v1  ;;  %v1788_v3 = vadd.f32 %v3227_v57, %v1747_v34  ;;  %v1443_v10 = vadd.f32 %v1346_v2, %v3164_v5 }
 0x195   : > { %v1659_v59 = vpop.f32.mrf.mxu1  ;;  %v2622_v13 = vpop.f32.mrf.mxu0 }
 0x196   : > { %v2357_v8 = vpack.c.bf16 %v1936_v50, %v1936_v50  ;;  %v1896_v17 = vmul.f32 %v3234_v14, %v1855_v52  ;;  %v1822_v21 = vmul.f32 0.2, %v1788_v3  ;;  %v1748_v22 = vadd.f32 %v1651_v39, %v1443_v10 }
 0x197   : > { %v2696_v28 = vpop.f32.mrf.mxu1  ;;  %v1351_v6 = vpop.f32.mrf.mxu0 }
 0x198   : > { %2107 = vst.msk [vmem:[%s3251_s16 + $0x28] sm:$0xf] %vm2096_vm5, %v2357_v8  ;;  %v1937_v23 = vadd.f32 %v3242_v16, %v1896_v17  ;;  %v1856_v30 = vmax.f32 %v1788_v3, %v1822_v21  ;;  %v1789_v62 = vadd.f32 %v3227_v57, %v1748_v22  ;;  %v1444_v11 = vadd.f32 %v1351_v6, %v3170_v18 }
 0x199   : > { %v1664_v5 = vpop.f32.mrf.mxu1  ;;  %v2625_v31 = vpop.f32.mrf.mxu0 }
 0x19a   : > { %v2358_v32 = vpack.c.bf16 %v1937_v23, %v1937_v23  ;;  %v1897_v36 = vmul.f32 %v3234_v14, %v1856_v30  ;;  %v1823_v37 = vmul.f32 0.2, %v1789_v62  ;;  %v1749_v38 = vadd.f32 %v1656_v48, %v1444_v11 }
 0x19b   : > { %v2699_v39 = vpop.f32.mrf.mxu1  ;;  %v1354_v42 = vpop.f32.mrf.mxu0 }
 0x19c   : > { %2108 = vst.msk [vmem:[%s3251_s16 + $0x2c] sm:$0xf] %vm2096_vm5, %v2358_v32  ;;  %v1938_v45 = vadd.f32 %v3242_v16, %v1897_v36  ;;  %v1857_v46 = vmax.f32 %v1789_v62, %v1823_v37  ;;  %v1790_v27 = vadd.f32 %v3227_v57, %v1749_v38  ;;  %v1445_v7 = vadd.f32 %v1354_v42, %v3177_v29 }
 0x19d   : > { %v1667_v18 = vpop.f32.mrf.mxu1  ;;  %v2626_v26 = vpop.f32.mrf.mxu0 }
 0x19e   : > { %v2359_v44 = vpack.c.bf16 %v1938_v45, %v1938_v45  ;;  %v1898_v51 = vmul.f32 %v3234_v14, %v1857_v46  ;;  %v1824_v53 = vmul.f32 0.2, %v1790_v27  ;;  %v1750_v54 = vadd.f32 %v1659_v59, %v1445_v7 }
 0x19f   : > { %v2700_v48 = vpop.f32.mrf.mxu1  ;;  %v1359_v58 = vpop.f32.mrf.mxu0 }
 0x1a0   : > { %2109 = vst.msk [vmem:[%s3251_s16 + $0x30] sm:$0xf] %vm2096_vm5, %v2359_v44  ;;  %v1939_v0 = vadd.f32 %v3242_v16, %v1898_v51  ;;  %v1858_v60 = vmax.f32 %v1790_v27, %v1824_v53  ;;  %v1791_v1 = vadd.f32 %v3227_v57, %v1750_v54  ;;  %v1446_v34 = vadd.f32 %v1359_v58, %v3182_v40 }
 0x1a1   : > { %v1672_v29 = vpop.f32.mrf.mxu1  ;;  %v2629_v19 = vpop.f32.mrf.mxu0 }
 0x1a2   : > { %v2360_v2 = vpack.c.bf16 %v1939_v0, %v1939_v0  ;;  %v1899_v50 = vmul.f32 %v3234_v14, %v1858_v60  ;;  %v1825_v52 = vmul.f32 0.2, %v1791_v1  ;;  %v1751_v3 = vadd.f32 %v1664_v5, %v1446_v34 }
 0x1a3   : > { %v2703_v10 = vpop.f32.mrf.mxu1  ;;  %v1362_v59 = vpop.f32.mrf.mxu0 }
 0x1a4   : > { %2110 = vst.msk [vmem:[%s3251_s16 + $0x34] sm:$0xf] %vm2096_vm5, %v2360_v2  ;;  %v1940_v13 = vadd.f32 %v3242_v16, %v1899_v50  ;;  %v1859_v8 = vmax.f32 %v1791_v1, %v1825_v52  ;;  %v1792_v17 = vadd.f32 %v3227_v57, %v1751_v3  ;;  %v1447_v21 = vadd.f32 %v1362_v59, %v3187_v49 }
 0x1a5   : > { %v1675_v40 = vpop.f32.mrf.mxu1  ;;  %v2630_v22 = vpop.f32.mrf.mxu0 }
 0x1a6   : > { %v2361_v28 = vpack.c.bf16 %v1940_v13, %v1940_v13  ;;  %v1900_v6 = vmul.f32 %v3234_v14, %v1859_v8  ;;  %v1826_v23 = vmul.f32 0.2, %v1792_v17  ;;  %v1752_v30 = vadd.f32 %v1667_v18, %v1447_v21 }
 0x1a7   : > { %v2704_v62 = vpop.f32.mrf.mxu1  ;;  %v1367_v11 = vpop.f32.mrf.mxu0 }
 0x1a8   : > { %2111 = vst.msk [vmem:[%s3251_s16 + $0x38] sm:$0xf] %vm2096_vm5, %v2361_v28  ;;  %v1941_v5 = vadd.f32 %v3242_v16, %v1900_v6  ;;  %v1860_v31 = vmax.f32 %v1792_v17, %v1826_v23  ;;  %v1793_v32 = vadd.f32 %v3227_v57, %v1752_v30  ;;  %v1448_v36 = vadd.f32 %v1367_v11, %v3191_v56 }
 0x1a9   : > { %v1680_v49 = vpop.f32.mrf.mxu1  ;;  %v2633_v37 = vpop.f32.mrf.mxu0 }
 0x1aa   : > { %v2362_v38 = vpack.c.bf16 %v1941_v5, %v1941_v5  ;;  %v1901_v39 = vmul.f32 %v3234_v14, %v1860_v31  ;;  %v1827_v42 = vmul.f32 0.2, %v1793_v32  ;;  %v1753_v45 = vadd.f32 %v1672_v29, %v1448_v36 }
 0x1ab   : > { %v2707_v46 = vpop.f32.mrf.mxu1  ;;  %v1370_v27 = vpop.f32.mrf.mxu0 }
 0x1ac   : > { %2112 = vst.msk [vmem:[%s3251_s16 + $0x3c] sm:$0xf] %vm2096_vm5, %v2362_v38  ;;  %v1942_v7 = vadd.f32 %v3242_v16, %v1901_v39  ;;  %v1861_v18 = vmax.f32 %v1793_v32, %v1827_v42  ;;  %v1794_v26 = vadd.f32 %v3227_v57, %v1753_v45  ;;  %v1449_v44 = vadd.f32 %v1370_v27, %v3193_v61 }
 0x1ad   : > { %v1683_v56 = vpop.f32.mrf.mxu1  ;;  %v2634_v51 = vpop.f32.mrf.mxu0 }
 0x1ae   : > { %v2363_v53 = vpack.c.bf16 %v1942_v7, %v1942_v7  ;;  %v1902_v54 = vmul.f32 %v3234_v14, %v1861_v18  ;;  %v1828_v48 = vmul.f32 0.2, %v1794_v26  ;;  %v1754_v58 = vadd.f32 %v1675_v40, %v1449_v44 }
 0x1af   : > { %v2708_v0 = vpop.f32.mrf.mxu1  ;;  %v1375_v60 = vpop.f32.mrf.mxu0 }
 0x1b0   : > { %2113 = vst.msk [vmem:[%s3251_s16 + $0x40] sm:$0xf] %vm2096_vm5, %v2363_v53  ;;  %v1943_v1 = vadd.f32 %v3242_v16, %v1902_v54  ;;  %v1862_v34 = vmax.f32 %v1794_v26, %v1828_v48  ;;  %v1795_v29 = vadd.f32 %v3227_v57, %v1754_v58  ;;  %v1450_v19 = vadd.f32 %v1375_v60, %v3195_v4 }
 0x1b1   : > { %v1688_v61 = vpop.f32.mrf.mxu1  ;;  %v2637_v2 = vpop.f32.mrf.mxu0 }
 0x1b2   : > { %v2364_v50 = vpack.c.bf16 %v1943_v1, %v1943_v1  ;;  %v1903_v52 = vmul.f32 %v3234_v14, %v1862_v34  ;;  %v1829_v3 = vmul.f32 0.2, %v1795_v29  ;;  %v1755_v10 = vadd.f32 %v1680_v49, %v1450_v19 }
 0x1b3   : > { %v2711_v59 = vpop.f32.mrf.mxu1  ;;  %v1378_v13 = vpop.f32.mrf.mxu0 }
 0x1b4   : > { %2114 = vst.msk [vmem:[%s3251_s16 + $0x44] sm:$0xf] %vm2096_vm5, %v2364_v50  ;;  %v1944_v8 = vadd.f32 %v3242_v16, %v1903_v52  ;;  %v1863_v17 = vmax.f32 %v1795_v29, %v1829_v3  ;;  %v1796_v21 = vadd.f32 %v3227_v57, %v1755_v10  ;;  %v1451_v40 = vadd.f32 %v1378_v13, %v3197_v12 }
 0x1b5   : > { %v1691_v4 = vpop.f32.mrf.mxu1  ;;  %v2638_v22 = vpop.f32.mrf.mxu0 }
 0x1b6   : > { %v2365_v28 = vpack.c.bf16 %v1944_v8, %v1944_v8  ;;  %v1904_v6 = vmul.f32 %v3234_v14, %v1863_v17  ;;  %v1830_v23 = vmul.f32 0.2, %v1796_v21  ;;  %v1756_v30 = vadd.f32 %v1683_v56, %v1451_v40 }
 0x1b7   : > { %v2712_v62 = vpop.f32.mrf.mxu1  ;;  %v1383_v11 = vpop.f32.mrf.mxu0 }
 0x1b8   : > { %2115 = vst.msk [vmem:[%s3251_s16 + $0x48] sm:$0xf] %vm2096_vm5, %v2365_v28  ;;  %v1945_v5 = vadd.f32 %v3242_v16, %v1904_v6  ;;  %v1864_v31 = vmax.f32 %v1796_v21, %v1830_v23  ;;  %v1797_v32 = vadd.f32 %v3227_v57, %v1756_v30  ;;  %v1452_v36 = vadd.f32 %v1383_v11, %v3199_v20 }
 0x1b9   : > { %v1696_v12 = vpop.f32.mrf.mxu1  ;;  %v2641_v49 = vpop.f32.mrf.mxu0 }
 0x1ba   : > { %v2366_v37 = vpack.c.bf16 %v1945_v5, %v1945_v5  ;;  %v1905_v38 = vmul.f32 %v3234_v14, %v1864_v31  ;;  %v1831_v39 = vmul.f32 0.2, %v1797_v32  ;;  %v1757_v42 = vadd.f32 %v1688_v61, %v1452_v36 }
 0x1bb   : > { %v2715_v45 = vpop.f32.mrf.mxu1  ;;  %v1386_v46 = vpop.f32.mrf.mxu0 }
 0x1bc   : > { %2116 = vst.msk [vmem:[%s3251_s16 + $0x4c] sm:$0xf] %vm2096_vm5, %v2366_v37  ;;  %v1946_v27 = vadd.f32 %v3242_v16, %v1905_v38  ;;  %v1865_v7 = vmax.f32 %v1797_v32, %v1831_v39  ;;  %v1798_v18 = vadd.f32 %v3227_v57, %v1757_v42  ;;  %v1453_v26 = vadd.f32 %v1386_v46, %v3201_v25 }
 0x1bd   : > { %v1699_v20 = vpop.f32.mrf.mxu1  ;;  %v2642_v44 = vpop.f32.mrf.mxu0 }
 0x1be   : > { %v2367_v56 = vpack.c.bf16 %v1946_v27, %v1946_v27  ;;  %v1906_v51 = vmul.f32 %v3234_v14, %v1865_v7  ;;  %v1832_v53 = vmul.f32 0.2, %v1798_v18  ;;  %v1758_v54 = vadd.f32 %v1691_v4, %v1453_v26 }
 0x1bf   : > { %v2716_v48 = vpop.f32.mrf.mxu1  ;;  %v1391_v58 = vpop.f32.mrf.mxu0 }
 0x1c0   : > { %2117 = vst.msk [vmem:[%s3251_s16 + $0x50] sm:$0xf] %vm2096_vm5, %v2367_v56  ;;  %v1947_v0 = vadd.f32 %v3242_v16, %v1906_v51  ;;  %v1866_v60 = vmax.f32 %v1798_v18, %v1832_v53  ;;  %v1799_v1 = vadd.f32 %v3227_v57, %v1758_v54  ;;  %v1454_v34 = vadd.f32 %v1391_v58, %v3203_v33 }
 0x1c1   : > { %v1704_v25 = vpop.f32.mrf.mxu1  ;;  %v2645_v29 = vpop.f32.mrf.mxu0 }
 0x1c2   : > { %v2368_v19 = vpack.c.bf16 %v1947_v0, %v1947_v0  ;;  %v1907_v61 = vmul.f32 %v3234_v14, %v1866_v60  ;;  %v1833_v2 = vmul.f32 0.2, %v1799_v1  ;;  %v1759_v50 = vadd.f32 %v1696_v12, %v1454_v34 }
 0x1c3   : > { %v2719_v52 = vpop.f32.mrf.mxu1  ;;  %v1394_v3 = vpop.f32.mrf.mxu0 }
 0x1c4   : > { %2118 = vst.msk [vmem:[%s3251_s16 + $0x54] sm:$0xf] %vm2096_vm5, %v2368_v19  ;;  %v1948_v10 = vadd.f32 %v3242_v16, %v1907_v61  ;;  %v1867_v59 = vmax.f32 %v1799_v1, %v1833_v2  ;;  %v1800_v13 = vadd.f32 %v3227_v57, %v1759_v50  ;;  %v1455_v8 = vadd.f32 %v1394_v3, %v3205_v41 }
 0x1c5   : > { %v1707_v33 = vpop.f32.mrf.mxu1  ;;  %v2646_v17 = vpop.f32.mrf.mxu0 }
 0x1c6   : > { %v2369_v21 = vpack.c.bf16 %v1948_v10, %v1948_v10  ;;  %v1908_v40 = vmul.f32 %v3234_v14, %v1867_v59  ;;  %v1834_v4 = vmul.f32 0.2, %v1800_v13  ;;  %v1760_v22 = vadd.f32 %v1699_v20, %v1455_v8 }
 0x1c7   : > { %v2720_v28 = vpop.f32.mrf.mxu1  ;;  %v1399_v6 = vpop.f32.mrf.mxu0 }
 0x1c8   : > { %2119 = vst.msk [vmem:[%s3251_s16 + $0x58] sm:$0xf] %vm2096_vm5, %v2369_v21  ;;  %v1949_v23 = vadd.f32 %v3242_v16, %v1908_v40  ;;  %v1868_v30 = vmax.f32 %v1800_v13, %v1834_v4  ;;  %v1801_v62 = vadd.f32 %v3227_v57, %v1760_v22  ;;  %v1456_v11 = vadd.f32 %v1399_v6, %v3207_v47 }
 0x1c9   : > { %v1712_v41 = vpop.f32.mrf.mxu1  ;;  %v2649_v5 = vpop.f32.mrf.mxu0 }
 0x1ca   : > { %v2370_v31 = vpack.c.bf16 %v1949_v23, %v1949_v23  ;;  %v1909_v32 = vmul.f32 %v3234_v14, %v1868_v30  ;;  %v1835_v36 = vmul.f32 0.2, %v1801_v62  ;;  %v1761_v12 = vadd.f32 %v1704_v25, %v1456_v11 }
 0x1cb   : > { %v2723_v49 = vpop.f32.mrf.mxu1  ;;  %v1402_v37 = vpop.f32.mrf.mxu0 }
 0x1cc   : > { %2120 = vst.msk [vmem:[%s3251_s16 + $0x5c] sm:$0xf] %vm2096_vm5, %v2370_v31  ;;  %v1950_v38 = vadd.f32 %v3242_v16, %v1909_v32  ;;  %v1869_v39 = vmax.f32 %v1801_v62, %v1835_v36  ;;  %v1802_v42 = vadd.f32 %v3227_v57, %v1761_v12  ;;  %v1457_v45 = vadd.f32 %v1402_v37, %v3209_v55 }
 0x1cd   : > { %v1715_v47 = vpop.f32.mrf.mxu1  ;;  %v2650_v46 = vpop.f32.mrf.mxu0 }
 0x1ce   : > { %v2371_v27 = vpack.c.bf16 %v1950_v38, %v1950_v38  ;;  %v1910_v7 = vmul.f32 %v3234_v14, %v1869_v39  ;;  %v1836_v18 = vmul.f32 0.2, %v1802_v42  ;;  %v1762_v26 = vadd.f32 %v1707_v33, %v1457_v45 }
 0x1cf   : > { %v2724_v20 = vpop.f32.mrf.mxu1  ;;  %v1407_v44 = vpop.f32.mrf.mxu0 }
 0x1d0   : > { %2121 = vst.msk [vmem:[%s3251_s16 + $0x60] sm:$0xf] %vm2096_vm5, %v2371_v27  ;;  %v1951_v56 = vadd.f32 %v3242_v16, %v1910_v7  ;;  %v1870_v51 = vmax.f32 %v1802_v42, %v1836_v18  ;;  %v1803_v53 = vadd.f32 %v3227_v57, %v1762_v26  ;;  %v1458_v54 = vadd.f32 %v1407_v44, %v3211_v63 }
 0x1d1   : > { %v1720_v55 = vpop.f32.mrf.mxu1  ;;  %v2653_v48 = vpop.f32.mrf.mxu0 }
 0x1d2   : > { %v2372_v58 = vpack.c.bf16 %v1951_v56, %v1951_v56  ;;  %v1911_v0 = vmul.f32 %v3234_v14, %v1870_v51  ;;  %v1837_v60 = vmul.f32 0.2, %v1803_v53  ;;  %v1763_v1 = vadd.f32 %v1712_v41, %v1458_v54 }
 0x1d3   : > { %v2727_v34 = vpop.f32.mrf.mxu1  ;;  %v1410_v25 = vpop.f32.mrf.mxu0 }
 0x1d4   : > { %2122 = vst.msk [vmem:[%s3251_s16 + $0x64] sm:$0xf] %vm2096_vm5, %v2372_v58  ;;  %v1952_v29 = vadd.f32 %v3242_v16, %v1911_v0  ;;  %v1871_v19 = vmax.f32 %v1803_v53, %v1837_v60  ;;  %v1804_v61 = vadd.f32 %v3227_v57, %v1763_v1  ;;  %v1459_v2 = vadd.f32 %v1410_v25, %v3213_v9 }
 0x1d5   : > { %v1723_v63 = vpop.f32.mrf.mxu1  ;;  %v2654_v50 = vpop.f32.mrf.mxu0 }
 0x1d6   : > { %v2373_v52 = vpack.c.bf16 %v1952_v29, %v1952_v29  ;;  %v1912_v3 = vmul.f32 %v3234_v14, %v1871_v19  ;;  %v1838_v10 = vmul.f32 0.2, %v1804_v61  ;;  %v1764_v59 = vadd.f32 %v1715_v47, %v1459_v2 }
 0x1d7   : > { %v2728_v13 = vpop.f32.mrf.mxu1  ;;  %v1415_v8 = vpop.f32.mrf.mxu0 }
 0x1d8   : > { %2123 = vst.msk [vmem:[%s3251_s16 + $0x68] sm:$0xf] %vm2096_vm5, %v2373_v52  ;;  %v1953_v33 = vadd.f32 %v3242_v16, %v1912_v3  ;;  %v1872_v17 = vmax.f32 %v1804_v61, %v1838_v10  ;;  %v1805_v21 = vadd.f32 %v3227_v57, %v1764_v59  ;;  %v1460_v40 = vadd.f32 %v1415_v8, %v3215_v15 }
 0x1d9   : > { %v1728_v9 = vpop.f32.mrf.mxu1  ;;  %v2657_v4 = vpop.f32.mrf.mxu0 }
 0x1da   : > { %v2374_v22 = vpack.c.bf16 %v1953_v33, %v1953_v33  ;;  %v1913_v28 = vmul.f32 %v3234_v14, %v1872_v17  ;;  %v1839_v6 = vmul.f32 0.2, %v1805_v21  ;;  %v1765_v23 = vadd.f32 %v1720_v55, %v1460_v40 }
 0x1db   : > { %v2731_v30 = vpop.f32.mrf.mxu1  ;;  %v1418_v62 = vpop.f32.mrf.mxu0 }
 0x1dc   : > { %2124 = vst.msk [vmem:[%s3251_s16 + $0x6c] sm:$0xf] %vm2096_vm5, %v2374_v22  ;;  %v1954_v11 = vadd.f32 %v3242_v16, %v1913_v28  ;;  %v1873_v41 = vmax.f32 %v1805_v21, %v1839_v6  ;;  %v1806_v5 = vadd.f32 %v3227_v57, %v1765_v23  ;;  %v1461_v31 = vadd.f32 %v1418_v62, %v3217_v24 }
 0x1dd   : > { %v1731_v15 = vpop.f32.mrf.mxu1  ;;  %v2658_v32 = vpop.f32.mrf.mxu0 }
 0x1de   : > { %v2375_v36 = vpack.c.bf16 %v1954_v11, %v1954_v11  ;;  %v1914_v12 = vmul.f32 %v3234_v14, %v1873_v41  ;;  %v1840_v49 = vmul.f32 0.2, %v1806_v5  ;;  %v1766_v37 = vadd.f32 %v1723_v63, %v1461_v31 }
 0x1df   : > { %v2732_v38 = vpop.f32.mrf.mxu1  ;;  %v1423_v39 = vpop.f32.mrf.mxu0 }
 0x1e0   : > { %2125 = vst.msk [vmem:[%s3251_s16 + $0x70] sm:$0xf] %vm2096_vm5, %v2375_v36  ;;  %v1955_v42 = vadd.f32 %v3242_v16, %v1914_v12  ;;  %v1874_v45 = vmax.f32 %v1806_v5, %v1840_v49  ;;  %v1807_v47 = vadd.f32 %v3227_v57, %v1766_v37  ;;  %v1462_v46 = vadd.f32 %v1423_v39, %v3219_v35 }
 0x1e1   : > { %v2661_v24 = vpop.f32.mrf.mxu0 }
 0x1e2   : > { %v2376_v27 = vpack.c.bf16 %v1955_v42, %v1955_v42  ;;  %v1915_v7 = vmul.f32 %v3234_v14, %v1874_v45  ;;  %v1841_v18 = vmul.f32 0.2, %v1807_v47  ;;  %v1767_v26 = vadd.f32 %v1728_v9, %v1462_v46 }
 0x1e3   : > { %v1426_v20 = vpop.f32.mrf.mxu0 }
 0x1e4   : > { %2126 = vst.msk [vmem:[%s3251_s16 + $0x74] sm:$0xf] %vm2096_vm5, %v2376_v27  ;;  %v1956_v44 = vadd.f32 %v3242_v16, %v1915_v7  ;;  %v1875_v56 = vmax.f32 %v1807_v47, %v1841_v18  ;;  %v1808_v51 = vadd.f32 %v3227_v57, %v1767_v26  ;;  %v1463_v53 = vadd.f32 %v1426_v20, %v3221_v43 }
 0x1e5   : > { %v2662_v54 = vpop.f32.mrf.mxu0 }
 0x1e6   : > { %v2377_v35 = vpack.c.bf16 %v1956_v44, %v1956_v44  ;;  %v1916_v55 = vmul.f32 %v3234_v14, %v1875_v56  ;;  %v1842_v48 = vmul.f32 0.2, %v1808_v51  ;;  %v1768_v58 = vadd.f32 %v1731_v15, %v1463_v53 }
 0x1e8   : > { %2127 = vst.msk [vmem:[%s3251_s16 + $0x78] sm:$0xf] %vm2096_vm5, %v2377_v35  ;;  %v1957_v0 = vadd.f32 %v3242_v16, %v1916_v55  ;;  %v1876_v60 = vmax.f32 %v1808_v51, %v1842_v48  ;;  %v1809_v1 = vadd.f32 %v3227_v57, %v1768_v58 }
 0x1ea   : > { %v2378_v34 = vpack.c.bf16 %v1957_v0, %v1957_v0  ;;  %v1917_v25 = vmul.f32 %v3234_v14, %v1876_v60  ;;  %v1843_v29 = vmul.f32 0.2, %v1809_v1 }
 0x1ec   : > { %2128 = vst.msk [vmem:[%s3251_s16 + $0x7c] sm:$0xf] %vm2096_vm5, %v2378_v34  ;;  %v1958_v43 = vadd.f32 %v3242_v16, %v1917_v25  ;;  %v1877_v19 = vmax.f32 %v1809_v1, %v1843_v29 }
 0x1ee   : > { %v2379_v61 = vpack.c.bf16 %v1958_v43, %v1958_v43  ;;  %v1918_v2 = vmul.f32 %v3234_v14, %v1877_v19 }
 0x1f0   : > { %2129 = vst.msk [vmem:[%s3251_s16 + $0x80] sm:$0xf] %vm2096_vm5, %v2379_v61  ;;  %v1959_v63 = vadd.f32 %v3242_v16, %v1918_v2 }
 0x1f2   : > { %v2380_v50 = vpack.c.bf16 %v1959_v63, %v1959_v63 }
 0x1f4   : > { %2130 = vst.msk [vmem:[%s3251_s16 + $0x84] sm:$0xf] %vm2096_vm5, %v2380_v50 }
 0x1f5 PF: > { %s15_s18 = sadd.s32 1, %s2792_s18  }
 0x1f6   : > { %p12_p4 = scmp.ge.s32.totalorder %s15_s18, 4  }
 0x1f8   :  { %14 = sbr.rel (!%p12_p4) target bundleno = 1 (0x1), region = 73 }

// kernel: _lambda_.6
= control target key start
LH: loop header
LB: loop body
LE: loop exit
PB: predicated region body
PF: predicated region fallthrough
CT: control target
= control target key end

     0   :  { %s1382_s18 = smov 0   ;;  %s1666_s0 = inlined_call_operand.vmem [shape: bf16[2,88,64], index: 0, kind: input, shape index: {}]   ;;  %s1667_s1 = inlined_call_operand.vmem [shape: bf16[4,64,32], index: 1, kind: input, shape index: {}]   ;;  %s1668_s2 = inlined_call_operand.vmem [shape: f32[1,32], index: 2, kind: input, shape index: {}]   ;;  %s1669_s3 = inlined_call_operand.vmem [shape: f32[1,32], index: 3, kind: input, shape index: {}]   ;;  %s1670_s4 = inlined_call_operand.vmem [shape: f32[1,32], index: 4, kind: input, shape index: {}]   ;;  %s1671_s5 = inlined_call_operand.vmem [shape: bf16[2,72,32], index: 5, kind: output, shape index: {}]  }
   0x1 LB: > { %s1052_s19 = sadd.s32 4294967295, %s1348_s18   ;;  %p1056_p0 = scmp.ge.s32.totalorder %s1348_s18, 1  ;;  %s1348_s18 = sphi %s1382_s18, %s15_s18  }
   0x2   : > { %p187_p1 = scmp.lt.s32.totalorder %s1348_s18, 3 }
   0x4   : > { %p188_p2 = pnand %p1056_p0, %p187_p1 }
   0x5   : > { %p215_p3 = scmp.lt.s32.totalorder (!%p188_p2), %s1052_s19, 1 }
   0x6   : > { %191 = sbr.rel (%p188_p2) target bundleno = 310 (0x136), region = 40 }
   0xb   : > { %v1314_v0 = vld [vmem:[%s1667_s1 + $0x38] sm:$0xff]   ;;  %v1350_v1 = vmov 0.0   ;;  %v1316_v3 = vld [vmem:[%s1667_s1 + $0x30] sm:$0xff]   ;;  %vm1351_vm0 = vmmov 0   ;;  %s1673_s19 = smov (!%p215_p3, %s1052_s19), 1  ;;  %v1318_v5 = vld [vmem:[%s1667_s1 + $0x28] sm:$0xff]  }
   0xc   : > { %1190 = vmatprep.subr.bf16.mxu0 %v1350_v1  ;;  %1218 = vmatprep.subr.bf16.mxu1 %v1350_v1  ;;  %v1315_v2 = vld [vmem:[%s1667_s1 + $0x18] sm:$0xff]   ;;  %v1317_v4 = vld [vmem:[%s1667_s1 + $0x10] sm:$0xff]   ;;  %s1302_s30 = smul.u32 44, %s1673_s19  ;;  %v1319_v6 = vld [vmem:[%s1667_s1 + $0x8] sm:$0xff]   ;;  %vm342_vm1 = vcmask 523264   ;;  %vm754_vm3 = vcmask 1046528  }
   0xd   : > { %1191 = vmatpush3.bf16.msra.mxu0 %v1314_v0  ;;  %1198 = vmatprep.mubr.msk.bf16.mxu0 %vm1351_vm0, %v1350_v1  ;;  %v1320_v7 = vld [vmem:[%s1667_s1 + $0x20] sm:$0xff]   ;;  %vm278_vm2 = vsmask.f32 7424  ;;  %v1325_v17 = vld [vmem:[%s1667_s1 + $0x78] sm:$0xff]   ;;  %v1327_v24 = vld [vmem:[%s1667_s1 + $0x50] sm:$0xff]   ;;  %vm987_vm4 = vcmask 257024  }
   0xe   : > { %1219 = vmatpush3.bf16.msra.mxu1 %v1315_v2  ;;  %1192 = vmatprep.subr.bf16.mxu0 %v1350_v1  ;;  %s1427_s12 = scalar_lea.vmem %s1666_s0, %s1302_s30  ;;  %v1321_v10 = vld [vmem:[%s1667_s1] sm:$0xff]   ;;  %v1324_v20 = vld [vmem:[%s1667_s1 + $0x58] sm:$0xff]   ;;  %v1328_v25 = vld [vmem:[%s1667_s1 + $0x70] sm:$0xff]  }
   0xf   : > { %1220 = vmatprep.subr.bf16.mxu1 %v1350_v1  ;;  %1226 = vmatprep.mubr.msk.bf16.mxu1 %vm1351_vm0, %v1350_v1  ;;  %v1322_v8 = vld [vmem:[%s1427_s12] sm:$0xff]   ;;  %v1323_v9 = vld [vmem:[%s1427_s12 + $0x8] sm:$0xff]   ;;  %v1437_v14 = vld [vmem:[%s1427_s12 + $0x10] sm:$0xff]  }
  0x10   : > { %v280_v11 = vshrl.u32 %v1322_v8, 16  ;;  %v282_v12 = vshll.u32 %v1322_v8, 16  ;;  %v287_v13 = vshll.u32 %v1323_v9, 16  ;;  %v295_v18 = vshll.u32 %v1437_v14, 16  ;;  %v1329_v26 = vld [vmem:[%s1427_s12 + $0x18] sm:$0xff]   ;;  %v1330_v29 = vld [vmem:[%s1667_s1 + $0x48] sm:$0xff]  }
  0x11   : > { %1193 = vmatpush3.bf16.msra.mxu0 %v1316_v3  ;;  %v291_v21 = vshrl.u32 %v1323_v9, 16  ;;  %v299_v28 = vshrl.u32 %v1437_v14, 16  ;;  %v303_v31 = vshll.u32 %v1329_v26, 16  ;;  %v1331_v32 = vld [vmem:[%s1667_s1 + $0x68] sm:$0xff]   ;;  %v234_v33 = vld [vmem:[%s1427_s12 + $0x20] sm:$0xf] }
  0x12   : > { %1221 = vmatpush3.bf16.msra.mxu1 %v1317_v4  ;;  %1194 = vmatprep.subr.bf16.mxu0 %v1350_v1  ;;  %v284_v15 = vrot.slane %v282_v12, 1  ;;  %v289_v16 = vrot.slane %v287_v13, 1  ;;  %v297_v23 = vrot.slane %v295_v18, 1  ;;  %v243_v34 = vld [vmem:[%s1427_s12 + $0x24] sm:$0x1]  ;;  %v1478_v35 = vld [vmem:[%s1427_s12 + $0x1c] sm:$0xff]   ;;  %v1081_v62 = vcombine.low %v234_v33, %v234_v33 }
  0x13   : > { %1222 = vmatprep.subr.bf16.mxu1 %v1350_v1  ;;  %v305_v37 = vrot.slane %v303_v31, 1  ;;  %v1071_v38 = vcombine.low %v234_v33, %v243_v34  ;;  %v1333_v39 = vld [vmem:[%s1667_s1 + $0x40] sm:$0xff]   ;;  %v606_v40 = vshll.u32 %v1478_v35, 16  ;;  %v610_v44 = vshrl.u32 %v1478_v35, 16  ;;  %v539_v55 = vld [vmem:[%s1427_s12 + $0x8] sm:$0xf] }
  0x14   : > { %v285_v19 = vor.u32 %v284_v15, %v280_v11  ;;  %v293_v27 = vor.u32 %v291_v21, %v289_v16  ;;  %v301_v36 = vor.u32 %v299_v28, %v297_v23  ;;  %v1335_v41 = vld [vmem:[%s1667_s1 + $0x60] sm:$0xff]   ;;  %v307_v47 = vshrl.u32 %v1329_v26, 16  ;;  %v1337_v59 = vld [vmem:[%s1427_s12 + $0xc] sm:$0xff]  }
  0x15   : > { %1195 = vmatpush3.bf16.msra.mxu0 %v1318_v5  ;;  %v1494_v42 = vld [vmem:[%s1427_s12 + $0x24] sm:$0x1f]   ;;  %v1497_v43 = vrot.slane %v606_v40, 1  ;;  %v311_v48 = vshll.u32 %v1071_v38, 16  ;;  %v315_v58 = vshrl.u32 %v1071_v38, 16  ;;  %v590_v4 = vshll.u32 %v1337_v59, 16 }
  0x16   : > { %1223 = vmatpush3.bf16.msra.mxu1 %v1319_v6  ;;  %1196 = vmatprep.subr.bf16.mxu0 %v1350_v1  ;;  %v290_v22 = vsel %vm278_vm2, %v285_v19, %v289_v16  ;;  %v298_v30 = vsel %vm278_vm2, %v293_v27, %v297_v23  ;;  %v614_v45 = vshll.u32 %v1494_v42, 16  ;;  %v306_v46 = vsel %vm278_vm2, %v301_v36, %v305_v37  ;;  %v538_v54 = vld [vmem:[%s1427_s12 + $0x4] sm:$0xf] }
  0x17   : > { %1224 = vmatprep.subr.bf16.mxu1 %v1350_v1  ;;  %v612_v49 = vor.u32 %v610_v44, %v1497_v43  ;;  %v309_v52 = vor.u32 %v307_v47, %v305_v37  ;;  %v313_v53 = vrot.slane %v311_v48, 1  ;;  %v1099_v57 = vcombine.low %v538_v54, %v539_v55  ;;  %v741_v61 = vld [vmem:[%s1427_s12 + $0x4] sm:$0xe] }
  0x18   : > { %v1503_v50 = vrot.slane %v614_v45, 1  ;;  %v1121_v0 = vcombine.low %v741_v61, %v539_v55  ;;  %v756_v6 = vrot.slane %v1337_v59, 1  ;;  %v594_v12 = vshrl.u32 %v1337_v59, 16 }
  0x19   : > { %1197 = vmatpush3.bf16.msra.mxu0 %v1320_v7  ;;  %v314_v56 = vsel %vm278_vm2, %v309_v52, %v313_v53  ;;  %v585_v60 = vshll.u32 %v1099_v57, 16  ;;  %v317_v63 = vor.u32 %v315_v58, %v313_v53  ;;  %v583_v2 = vshrl.u32 %v1099_v57, 16 }
  0x1a   : > { %1225 = vmatpush3.bf16.msra.mxu1 %v1321_v10  ;;  %1246 = vmatprep.subr.bf16.mxu0 %v1350_v1  ;;  %v617_v51 = vsel %vm278_vm2, %v612_v49, %v1503_v50  ;;  %v755_v5 = vrot.slane %v1121_v0, 1 }
  0x1b   : > { %1274 = vmatprep.subr.bf16.mxu1 %v1350_v1  ;;  %v587_v3 = vrot.slane %v585_v60, 1 }
  0x1c   : > { %1199 = vmatmul.mubr.msk.bf16.vlgmr.msra.gmra.mxu0 %vm342_vm1, %v290_v22  ;;  %v757_v10 = vsel %vm754_vm3, %v755_v5, %v756_v6 }
  0x1d   : > { %1227 = vmatmul.mubr.msk.bf16.vlgmr.msra.gmra.mxu1 %vm342_vm1, %v1322_v8  ;;  %1247 = vmatpush3.bf16.msra.mxu0 %v1324_v20  ;;  %v588_v7 = vor.u32 %v587_v3, %v583_v2  ;;  %v592_v8 = vrot.slane %v590_v4, 1  ;;  %v760_v20 = vrot.slane %v1478_v35, 1 }
  0x1e   : > { %1275 = vmatpush3.bf16.msra.mxu1 %v1325_v17  ;;  %1202 = vmatprep.mubr.msk.bf16.mxu0 %vm1351_vm0, %v1350_v1 }
  0x1f   : > { %1230 = vmatprep.mubr.msk.bf16.mxu1 %vm1351_vm0, %v1350_v1  ;;  %1248 = vmatprep.subr.bf16.mxu0 %v1350_v1  ;;  %v593_v11 = vsel %vm278_vm2, %v588_v7, %v592_v8  ;;  %v596_v15 = vor.u32 %v594_v12, %v592_v8 }
  0x20   : > { %1276 = vmatprep.subr.bf16.mxu1 %v1350_v1 }
  0x21   : > { %1249 = vmatpush3.bf16.msra.mxu0 %v1327_v24  ;;  %v762_v24 = vrot.slane %v1494_v42, 1 }
  0x22   : > { %1277 = vmatpush3.bf16.msra.mxu1 %v1328_v25  ;;  %1250 = vmatprep.subr.bf16.mxu0 %v1350_v1 }
  0x23   : > { %1278 = vmatprep.subr.bf16.mxu1 %v1350_v1  ;;  %v763_v25 = vsel %vm754_vm3, %v760_v20, %v762_v24 }
  0x24   : > { %1203 = vmatmul.mubr.msk.bf16.gmra.mxu0 %vm342_vm1, %v298_v30 }
  0x25   : > { %1231 = vmatmul.mubr.msk.bf16.gmra.mxu1 %vm342_vm1, %v1323_v9  ;;  %1206 = vmatprep.mubr.msk.bf16.mxu0 %vm1351_vm0, %v1350_v1  ;;  %v1339_v9 = vld [vmem:[%s1427_s12 + $0x14] sm:$0xff]   ;;  %s1303_s12 = smul.u32 36, %s1673_s19 }
  0x26   : > { %1234 = vmatprep.mubr.msk.bf16.mxu1 %vm1351_vm0, %v1350_v1  ;;  %1251 = vmatpush3.bf16.msra.mxu0 %v1330_v29  ;;  %v598_v13 = vshll.u32 %v1339_v9, 16  ;;  %v602_v19 = vshrl.u32 %v1339_v9, 16 }
  0x27   : > { %1279 = vmatpush3.bf16.msra.mxu1 %v1331_v32  ;;  %1252 = vmatprep.subr.bf16.mxu0 %v1350_v1  ;;  %s1613_s16 = scalar_lea.vmem %s1671_s5, %s1303_s12 }
  0x28   : > { %1280 = vmatprep.subr.bf16.mxu1 %v1350_v1  ;;  %v600_v16 = vrot.slane %v598_v13, 1 }
  0x2a   : > { %1253 = vmatpush3.bf16.msra.mxu0 %v1333_v39  ;;  %v601_v18 = vsel %vm278_vm2, %v596_v15, %v600_v16  ;;  %v604_v21 = vor.u32 %v602_v19, %v600_v16 }
  0x2b   : > { %1281 = vmatpush3.bf16.msra.mxu1 %v1335_v41 }
  0x2c   : > { %1207 = vmatmul.mubr.msk.bf16.gmra.mxu0 %vm342_vm1, %v306_v46  ;;  %v609_v23 = vsel %vm278_vm2, %v604_v21, %v1497_v43 }
  0x2d   : > { %1235 = vmatmul.mubr.msk.bf16.gmra.mxu1 %vm342_vm1, %v1437_v14  ;;  %1210 = vmatprep.mubr.msk.bf16.mxu0 %vm1351_vm0, %v1350_v1  ;;  %v758_v14 = vrot.slane %v1339_v9, 1  ;;  %v1591_v9 = vld [vmem:[%s1668_s2] ss:$0 sm:$0xff] }
  0x2e   : > { %1238 = vmatprep.mubr.msk.bf16.mxu1 %vm1351_vm0, %v1350_v1 }
  0x2f   : > { %v759_v17 = vsel %vm754_vm3, %v756_v6, %v758_v14  ;;  %v761_v22 = vsel %vm754_vm3, %v758_v14, %v760_v20 }
  0x34   : > { %1211 = vmatmul.mubr.msk.bf16.gmra.mxu0 %vm342_vm1, %v314_v56 }
  0x35   : > { %1239 = vmatmul.mubr.msk.bf16.gmra.mxu1 %vm342_vm1, %v1329_v26  ;;  %1214 = vmatprep.mubr.msk.bf16.mxu0 %vm1351_vm0, %v1350_v1  ;;  %v618_v26 = vshrl.u32 %v1494_v42, 16 }
  0x36   : > { %1242 = vmatprep.mubr.msk.bf16.mxu1 %vm1351_vm0, %v1350_v1 }
  0x37   : > { %v620_v27 = vor.u32 %v618_v26, %v1503_v50 }
  0x3c   : > { %1215 = vmatmul.mubr.msk.bf16.gmra.mxu0 %vm342_vm1, %v317_v63 }
  0x3d   : > { %1243 = vmatmul.mubr.msk.bf16.gmra.mxu1 %vm342_vm1, %v1081_v62  ;;  %1254 = vmatprep.mubr.msk.bf16.mxu0 %vm1351_vm0, %v1350_v1 }
  0x3e   : > { %1282 = vmatprep.mubr.msk.bf16.mxu1 %vm1351_vm0, %v1350_v1 }
  0x44   : > { %1255 = vmatmul.mubr.msk.bf16.vlgmr.msra.gmra.mxu0 %vm342_vm1, %v593_v11 }
  0x45   : > { %1283 = vmatmul.mubr.msk.bf16.vlgmr.msra.gmra.mxu1 %vm342_vm1, %v757_v10  ;;  %1258 = vmatprep.mubr.msk.bf16.mxu0 %vm1351_vm0, %v1350_v1 }
  0x46   : > { %1286 = vmatprep.mubr.msk.bf16.mxu1 %vm1351_vm0, %v1350_v1 }
  0x4c   : > { %1259 = vmatmul.mubr.msk.bf16.gmra.mxu0 %vm342_vm1, %v601_v18 }
  0x4d   : > { %1287 = vmatmul.mubr.msk.bf16.gmra.mxu1 %vm342_vm1, %v759_v17  ;;  %1262 = vmatprep.mubr.msk.bf16.mxu0 %vm1351_vm0, %v1350_v1 }
  0x4e   : > { %1290 = vmatprep.mubr.msk.bf16.mxu1 %vm1351_vm0, %v1350_v1 }
  0x54   : > { %1263 = vmatmul.mubr.msk.bf16.gmra.mxu0 %vm342_vm1, %v609_v23  ;;  %v1597_v23 = vld [vmem:[%s1669_s3] ss:$0 sm:$0xff] }
  0x55   : > { %1291 = vmatmul.mubr.msk.bf16.gmra.mxu1 %vm342_vm1, %v761_v22  ;;  %1266 = vmatprep.mubr.msk.bf16.mxu0 %vm1351_vm0, %v1350_v1 }
  0x56   : > { %1294 = vmatprep.mubr.msk.bf16.mxu1 %vm1351_vm0, %v1350_v1 }
  0x5c   : > { %1267 = vmatmul.mubr.msk.bf16.gmra.mxu0 %vm342_vm1, %v617_v51 }
  0x5d   : > { %1295 = vmatmul.mubr.msk.bf16.gmra.mxu1 %vm342_vm1, %v763_v25  ;;  %1270 = vmatprep.mubr.msk.bf16.mxu0 %vm1351_vm0, %v1350_v1 }
  0x5e   : > { %1298 = vmatprep.mubr.msk.bf16.mxu1 %vm1351_vm0, %v1350_v1 }
  0x64   : > { %1271 = vmatmul.mubr.msk.bf16.gmra.mxu0 %vm342_vm1, %v620_v27 }
  0x65   : > { %1299 = vmatmul.mubr.msk.bf16.gmra.mxu1 %vm342_vm1, %v762_v24 }
  0xdc   : > { %v392_v29 = vpop.f32.mrf.mxu0 }
  0xdd   : > { %v500_v28 = vpop.f32.mrf.mxu1 }
  0xde   : > { %v1200_v31 = vpop.f32.mrf.mxu0  ;;  %v501_v4 = vadd.f32 %v500_v28, %v392_v29  ;;  %v1604_v29 = vld [vmem:[%s1670_s4] ss:$0 sm:$0xff] }
  0xdf   : > { %v1228_v30 = vpop.f32.mrf.mxu1 }
  0xe0   : > { %v395_v33 = vpop.f32.mrf.mxu0 }
  0xe1   : > { %v503_v32 = vpop.f32.mrf.mxu1 }
  0xe2   : > { %v1201_v35 = vpop.f32.mrf.mxu0  ;;  %v504_v11 = vadd.f32 %v503_v32, %v395_v33 }
  0xe3   : > { %v1229_v34 = vpop.f32.mrf.mxu1 }
  0xe4   : > { %v400_v37 = vpop.f32.mrf.mxu0 }
  0xe5   : > { %v508_v36 = vpop.f32.mrf.mxu1 }
  0xe6   : > { %v1204_v39 = vpop.f32.mrf.mxu0  ;;  %v509_v19 = vadd.f32 %v508_v36, %v400_v37 }
  0xe7   : > { %v1232_v38 = vpop.f32.mrf.mxu1 }
  0xe8   : > { %v403_v1 = vpop.f32.mrf.mxu0 }
  0xe9   : > { %v511_v40 = vpop.f32.mrf.mxu1 }
  0xea   : > { %v1205_v42 = vpop.f32.mrf.mxu0  ;;  %v512_v31 = vadd.f32 %v511_v40, %v403_v1 }
  0xeb   : > { %v1233_v41 = vpop.f32.mrf.mxu1 }
  0xec   : > { %v408_v44 = vpop.f32.mrf.mxu0 }
  0xed   : > { %v1570_v43 = vpop.f32.mrf.mxu1 }
  0xee   : > { %v1208_v46 = vpop.f32.mrf.mxu0 }
  0xef   : > { %v1236_v45 = vpop.f32.mrf.mxu1 }
  0xf0   : > { %v1574_v48 = vpop.f32.mrf.mxu0  ;;  %v517_v45 = vadd.f32 %v1570_v43, %v408_v44 }
  0xf1   : > { %v1572_v47 = vpop.f32.mrf.mxu1 }
  0xf2   : > { %v1209_v50 = vpop.f32.mrf.mxu0 }
  0xf3   : > { %v1237_v49 = vpop.f32.mrf.mxu1 }
  0xf4   : > { %v1578_v52 = vpop.f32.mrf.mxu0 }
  0xf5   : > { %v1576_v51 = vpop.f32.mrf.mxu1 }
  0xf6   : > { %v1212_v54 = vpop.f32.mrf.mxu0 }
  0xf7   : > { %v1240_v53 = vpop.f32.mrf.mxu1 }
  0xf8   : > { %v1582_v56 = vpop.f32.mrf.mxu0 }
  0xf9   : > { %v1580_v55 = vpop.f32.mrf.mxu1 }
  0xfa   : > { %v1213_v58 = vpop.f32.mrf.mxu0 }
  0xfb   : > { %v1241_v57 = vpop.f32.mrf.mxu1 }
  0xfc   : > { %v1586_v60 = vpop.f32.mrf.mxu0 }
  0xfd   : > { %v1584_v59 = vpop.f32.mrf.mxu1 }
  0xfe   : > { %v1216_v62 = vpop.f32.mrf.mxu0 }
  0xff   : > { %v1244_v61 = vpop.f32.mrf.mxu1  ;;  %v520_v62 = vadd.f32 %v1572_v47, %v1574_v48  ;;  %v525_v47 = vadd.f32 %v1576_v51, %v1578_v52  ;;  %v528_v51 = vadd.f32 %v1580_v55, %v1582_v56  ;;  %v533_v55 = vadd.f32 %v1584_v59, %v1586_v60 }
 0x100   : > { %v427_v0 = vpop.f32.mrf.mxu0 }
 0x101   : > { %v535_v63 = vpop.f32.mrf.mxu1 }
 0x102   : > { %v1217_v3 = vpop.f32.mrf.mxu0 }
 0x103   : > { %v1245_v2 = vpop.f32.mrf.mxu1 }
 0x104   : > { %v694_v6 = vpop.f32.mrf.mxu0 }
 0x105   : > { %v837_v5 = vpop.f32.mrf.mxu1  ;;  %v732_v7 = vadd.f32 %v694_v6, %v501_v4 }
 0x106   : > { %v1256_v10 = vpop.f32.mrf.mxu0 }
 0x107   : > { %v1284_v8 = vpop.f32.mrf.mxu1  ;;  %v875_v12 = vadd.f32 %v837_v5, %v732_v7 }
 0x108   : > { %v697_v14 = vpop.f32.mrf.mxu0 }
 0x109   : > { %v840_v13 = vpop.f32.mrf.mxu1  ;;  %v891_v15 = vadd.f32 %v1591_v9, %v875_v12  ;;  %v733_v16 = vadd.f32 %v697_v14, %v504_v11 }
 0x10a   : > { %v1257_v18 = vpop.f32.mrf.mxu0 }
 0x10b   : > { %v1285_v17 = vpop.f32.mrf.mxu1  ;;  %v900_v20 = vmul.f32 0.2, %v891_v15  ;;  %v876_v21 = vadd.f32 %v840_v13, %v733_v16 }
 0x10c   : > { %v702_v24 = vpop.f32.mrf.mxu0 }
 0x10d   : > { %v845_v22 = vpop.f32.mrf.mxu1  ;;  %v909_v25 = vmax.f32 %v891_v15, %v900_v20  ;;  %v892_v26 = vadd.f32 %v1591_v9, %v876_v21  ;;  %v734_v27 = vadd.f32 %v702_v24, %v509_v19 }
 0x10e   : > { %v1260_v30 = vpop.f32.mrf.mxu0 }
 0x10f   : > { %v1288_v28 = vpop.f32.mrf.mxu1  ;;  %v925_v32 = vmul.f32 %v1597_v23, %v909_v25  ;;  %v901_v33 = vmul.f32 0.2, %v892_v26  ;;  %v877_v34 = vadd.f32 %v845_v22, %v734_v27 }
 0x110   : > { %v705_v36 = vpop.f32.mrf.mxu0 }
 0x111   : > { %v848_v35 = vpop.f32.mrf.mxu1  ;;  %v941_v37 = vadd.f32 %v1604_v29, %v925_v32  ;;  %v910_v38 = vmax.f32 %v892_v26, %v901_v33  ;;  %v893_v39 = vadd.f32 %v1591_v9, %v877_v34  ;;  %v735_v41 = vadd.f32 %v705_v36, %v512_v31 }
 0x112   : > { %v1261_v40 = vpop.f32.mrf.mxu0 }
 0x113   : > { %v1289_v42 = vpop.f32.mrf.mxu1  ;;  %v1145_v1 = vpack.c.bf16 %v941_v37, %v941_v37  ;;  %v926_v46 = vmul.f32 %v1597_v23, %v910_v38  ;;  %v902_v49 = vmul.f32 0.2, %v893_v39  ;;  %v878_v50 = vadd.f32 %v848_v35, %v735_v41 }
 0x114   : > { %v710_v54 = vpop.f32.mrf.mxu0 }
 0x115   : > { %v853_v53 = vpop.f32.mrf.mxu1  ;;  %988 = vst.msk [vmem:[%s1613_s16] sm:$0xf] %vm987_vm4, %v1145_v1  ;;  %v942_v43 = vadd.f32 %v1604_v29, %v926_v46  ;;  %v911_v44 = vmax.f32 %v893_v39, %v902_v49  ;;  %v894_v57 = vadd.f32 %v1591_v9, %v878_v50  ;;  %v736_v58 = vadd.f32 %v710_v54, %v517_v45 }
 0x116   : > { %v1264_v63 = vpop.f32.mrf.mxu0 }
 0x117   : > { %v1292_v61 = vpop.f32.mrf.mxu1  ;;  %v1146_v0 = vpack.c.bf16 %v942_v43, %v942_v43  ;;  %v927_v2 = vmul.f32 %v1597_v23, %v911_v44  ;;  %v903_v3 = vmul.f32 0.2, %v894_v57  ;;  %v879_v4 = vadd.f32 %v853_v53, %v736_v58 }
 0x118   : > { %v713_v6 = vpop.f32.mrf.mxu0 }
 0x119   : > { %v856_v5 = vpop.f32.mrf.mxu1  ;;  %989 = vst.msk [vmem:[%s1613_s16 + $0x4] sm:$0xf] %vm987_vm4, %v1146_v0  ;;  %v943_v7 = vadd.f32 %v1604_v29, %v927_v2  ;;  %v912_v8 = vmax.f32 %v894_v57, %v903_v3  ;;  %v895_v10 = vadd.f32 %v1591_v9, %v879_v4  ;;  %v737_v11 = vadd.f32 %v713_v6, %v520_v62 }
 0x11a   : > { %v1265_v48 = vpop.f32.mrf.mxu0 }
 0x11b   : > { %v1293_v12 = vpop.f32.mrf.mxu1  ;;  %v1147_v13 = vpack.c.bf16 %v943_v7, %v943_v7  ;;  %v928_v14 = vmul.f32 %v1597_v23, %v912_v8  ;;  %v904_v15 = vmul.f32 0.2, %v895_v10  ;;  %v880_v16 = vadd.f32 %v856_v5, %v737_v11 }
 0x11c   : > { %v718_v18 = vpop.f32.mrf.mxu0 }
 0x11d   : > { %v861_v17 = vpop.f32.mrf.mxu1  ;;  %990 = vst.msk [vmem:[%s1613_s16 + $0x8] sm:$0xf] %vm987_vm4, %v1147_v13  ;;  %v944_v19 = vadd.f32 %v1604_v29, %v928_v14  ;;  %v913_v20 = vmax.f32 %v895_v10, %v904_v15  ;;  %v896_v21 = vadd.f32 %v1591_v9, %v880_v16  ;;  %v738_v22 = vadd.f32 %v718_v18, %v525_v47 }
 0x11e   : > { %v1268_v52 = vpop.f32.mrf.mxu0 }
 0x11f   : > { %v1296_v24 = vpop.f32.mrf.mxu1  ;;  %v1148_v25 = vpack.c.bf16 %v944_v19, %v944_v19  ;;  %v929_v26 = vmul.f32 %v1597_v23, %v913_v20  ;;  %v905_v27 = vmul.f32 0.2, %v896_v21  ;;  %v881_v28 = vadd.f32 %v861_v17, %v738_v22 }
 0x120   : > { %v721_v31 = vpop.f32.mrf.mxu0 }
 0x121   : > { %v864_v30 = vpop.f32.mrf.mxu1  ;;  %991 = vst.msk [vmem:[%s1613_s16 + $0xc] sm:$0xf] %vm987_vm4, %v1148_v25  ;;  %v945_v32 = vadd.f32 %v1604_v29, %v929_v26  ;;  %v914_v33 = vmax.f32 %v896_v21, %v905_v27  ;;  %v897_v34 = vadd.f32 %v1591_v9, %v881_v28  ;;  %v739_v35 = vadd.f32 %v721_v31, %v528_v51 }
 0x122   : > { %v1269_v56 = vpop.f32.mrf.mxu0 }
 0x123   : > { %v1297_v36 = vpop.f32.mrf.mxu1  ;;  %v1149_v37 = vpack.c.bf16 %v945_v32, %v945_v32  ;;  %v930_v38 = vmul.f32 %v1597_v23, %v914_v33  ;;  %v906_v39 = vmul.f32 0.2, %v897_v34  ;;  %v882_v41 = vadd.f32 %v864_v30, %v739_v35 }
 0x124   : > { %v726_v45 = vpop.f32.mrf.mxu0 }
 0x125   : > { %v869_v42 = vpop.f32.mrf.mxu1  ;;  %992 = vst.msk [vmem:[%s1613_s16 + $0x10] sm:$0xf] %vm987_vm4, %v1149_v37  ;;  %v946_v40 = vadd.f32 %v1604_v29, %v930_v38  ;;  %v915_v1 = vmax.f32 %v897_v34, %v906_v39  ;;  %v898_v46 = vadd.f32 %v1591_v9, %v882_v41  ;;  %v740_v49 = vadd.f32 %v726_v45, %v533_v55 }
 0x126   : > { %v1272_v53 = vpop.f32.mrf.mxu0 }
 0x127   : > { %v1300_v50 = vpop.f32.mrf.mxu1  ;;  %v1150_v59 = vpack.c.bf16 %v946_v40, %v946_v40  ;;  %v931_v60 = vmul.f32 %v1597_v23, %v915_v1  ;;  %v907_v54 = vmul.f32 0.2, %v898_v46  ;;  %v883_v43 = vadd.f32 %v869_v42, %v740_v49 }
 0x128   : > { %v729_v57 = vpop.f32.mrf.mxu0 }
 0x129   : > { %v872_v44 = vpop.f32.mrf.mxu1  ;;  %993 = vst.msk [vmem:[%s1613_s16 + $0x14] sm:$0xf] %vm987_vm4, %v1150_v59  ;;  %v947_v58 = vadd.f32 %v1604_v29, %v931_v60  ;;  %v916_v61 = vmax.f32 %v898_v46, %v907_v54  ;;  %v899_v62 = vadd.f32 %v1591_v9, %v883_v43 }
 0x12a   : > { %v1273_v0 = vpop.f32.mrf.mxu0 }
 0x12b   : > { %v1301_v63 = vpop.f32.mrf.mxu1  ;;  %v1151_v2 = vpack.c.bf16 %v947_v58, %v947_v58  ;;  %v932_v3 = vmul.f32 %v1597_v23, %v916_v61  ;;  %v908_v4 = vmul.f32 0.2, %v899_v62 }
 0x12d   : > { %994 = vst.msk [vmem:[%s1613_s16 + $0x18] sm:$0xf] %vm987_vm4, %v1151_v2  ;;  %v948_v5 = vadd.f32 %v1604_v29, %v932_v3  ;;  %v917_v6 = vmax.f32 %v899_v62, %v908_v4 }
 0x12f   : > { %v1152_v7 = vpack.c.bf16 %v948_v5, %v948_v5  ;;  %v933_v8 = vmul.f32 %v1597_v23, %v917_v6 }
 0x131   : > { %995 = vst.msk [vmem:[%s1613_s16 + $0x1c] sm:$0xf] %vm987_vm4, %v1152_v7  ;;  %v949_v10 = vadd.f32 %v1604_v29, %v933_v8 }
 0x133   : > { %v1153_v11 = vpack.c.bf16 %v949_v10, %v949_v10 }
 0x135   : > { %996 = vst.msk [vmem:[%s1613_s16 + $0x20] sm:$0xf] %vm987_vm4, %v1153_v11 }
 0x136 PF: > { %s15_s18 = sadd.s32 1, %s1348_s18  }
 0x137   : > { %p12_p4 = scmp.ge.s32.totalorder %s15_s18, 4  }
 0x139   :  { %14 = sbr.rel (!%p12_p4) target bundleno = 1 (0x1), region = 73 }

// kernel: _lambda_.7
= control target key start
LH: loop header
LB: loop body
LE: loop exit
PB: predicated region body
PF: predicated region fallthrough
CT: control target
= control target key end

     0   :  { %s1182_s18 = smov 0   ;;  %s1318_s0 = inlined_call_operand.vmem [shape: bf16[2,32,128], index: 0, kind: input, shape index: {}]   ;;  %s1319_s1 = inlined_call_operand.vmem [shape: bf16[4,128,64], index: 1, kind: input, shape index: {}]   ;;  %s1320_s2 = inlined_call_operand.vmem [shape: f32[1,64], index: 2, kind: input, shape index: {}]   ;;  %s1321_s3 = inlined_call_operand.vmem [shape: f32[1,64], index: 3, kind: input, shape index: {}]   ;;  %s1322_s4 = inlined_call_operand.vmem [shape: f32[1,64], index: 4, kind: input, shape index: {}]   ;;  %s1323_s5 = inlined_call_operand.vmem [shape: bf16[2,20,64], index: 5, kind: output, shape index: {}]  }
   0x1 LB: > { %s871_s19 = sadd.s32 4294967295, %s1150_s18   ;;  %p875_p0 = scmp.ge.s32.totalorder %s1150_s18, 1  ;;  %s1150_s18 = sphi %s1182_s18, %s15_s18  }
   0x2   : > { %p187_p1 = scmp.lt.s32.totalorder %s1150_s18, 3 }
   0x4   : > { %p188_p2 = pnand %p875_p0, %p187_p1 }
   0x5   : > { %p215_p3 = scmp.lt.s32.totalorder (!%p188_p2), %s871_s19, 1 }
   0x6   : > { %191 = sbr.rel (%p188_p2) target bundleno = 292 (0x124), region = 40 }
   0xb   : > { %v1106_v0 = vld [vmem:[%s1319_s1 + $0x78] sm:$0xff]   ;;  %v1108_v2 = vld [vmem:[%s1319_s1 + $0x70] sm:$0xff]   ;;  %v1110_v4 = vld [vmem:[%s1319_s1 + $0x68] sm:$0xff]   ;;  %s1325_s19 = smov (!%p215_p3, %s871_s19), 1  ;;  %vm271_vm0 = vsmask.f32 7424 }
   0xc   : > { %v1107_v1 = vld [vmem:[%s1319_s1 + $0x38] sm:$0xff]   ;;  %1017 = vmatprep.subr.bf16.mxu0 %v1106_v0  ;;  %v1109_v3 = vld [vmem:[%s1319_s1 + $0x30] sm:$0xff]   ;;  %v1111_v5 = vld [vmem:[%s1319_s1 + $0x28] sm:$0xff]   ;;  %s973_s11 = sshll.u32 %s1325_s19, 4  ;;  %vm657_vm1 = vcmask 1044480   ;;  %s1097_s24 = smul.u32 12, %s1325_s19 }
   0xd   : > { %1037 = vmatprep.subr.bf16.mxu1 %v1107_v1  ;;  %1018 = vmatpush3.bf16.msra.mxu0 %v1106_v0  ;;  %v1112_v6 = vld [vmem:[%s1319_s1 + $0x60] sm:$0xff]   ;;  %v1114_v8 = vld [vmem:[%s1319_s1 + $0x58] sm:$0xff]   ;;  %s1226_s20 = scalar_lea.vmem %s1318_s0, %s973_s11  ;;  %v1116_v10 = vld [vmem:[%s1319_s1 + $0x50] sm:$0xff]   ;;  %vm517_vm2 = vsmask.f32 5376  ;;  %vm814_vm3 = vcmask 517120  }
   0xe   : > { %1038 = vmatpush3.bf16.msra.mxu1 %v1107_v1  ;;  %1019 = vmatprep.subr.bf16.mxu0 %v1108_v2  ;;  %v1113_v7 = vld [vmem:[%s1319_s1 + $0x20] sm:$0xff]   ;;  %v1115_v9 = vld [vmem:[%s1319_s1 + $0x18] sm:$0xff]   ;;  %v1117_v11 = vld [vmem:[%s1319_s1 + $0x10] sm:$0xff]   ;;  %s224_s28 = scalar_lea.vmem %s1323_s5, %s1097_s24  ;;  %vm811_vm4 = vcmask 519168  }
   0xf   : > { %1039 = vmatprep.subr.bf16.mxu1 %v1109_v3  ;;  %v1122_v12 = vld [vmem:[%s1226_s20] sm:$0xff]   ;;  %v1123_v13 = vld [vmem:[%s1226_s20 + $0x8] ss:$0 sps:$4 sm:$0x77]   ;;  %v1125_v26 = vld [vmem:[%s1319_s1 + $0xb8] sm:$0xff]  }
  0x10   : > { %v1118_v14 = vld [vmem:[%s1319_s1 + $0x48] sm:$0xff]   ;;  %v273_v16 = vshrl.u32 %v1122_v12, 16  ;;  %v275_v17 = vshll.u32 %v1122_v12, 16  ;;  %v280_v18 = vshll.u32 %v1123_v13, 16  ;;  %1053 = vmatprep.mubr.bf16.mxu1 %v1122_v12  ;;  %v1120_v22 = vld [vmem:[%s1319_s1 + $0x40] sm:$0xff]   ;;  %v284_v25 = vshrl.u32 %v1123_v13, 16 }
  0x11   : > { %1020 = vmatpush3.bf16.msra.mxu0 %v1108_v2  ;;  %v1119_v15 = vld [vmem:[%s1319_s1 + $0x8] sm:$0xff]   ;;  %v1121_v23 = vld [vmem:[%s1319_s1] sm:$0xff]   ;;  %v1126_v28 = vld [vmem:[%s1319_s1 + $0xf8] sm:$0xff]  }
  0x12   : > { %1040 = vmatpush3.bf16.msra.mxu1 %v1109_v3  ;;  %1021 = vmatprep.subr.bf16.mxu0 %v1110_v4  ;;  %v277_v19 = vrot.slane %v275_v17, 1  ;;  %v282_v20 = vrot.slane %v280_v18, 1  ;;  %v1124_v27 = vld [vmem:[%s1226_s20 + $0x8] ss:$0 sps:$4 sm:$0x33]   ;;  %v1127_v30 = vld [vmem:[%s1319_s1 + $0xb0] sm:$0xff]  }
  0x13   : > { %1041 = vmatprep.subr.bf16.mxu1 %v1111_v5  ;;  %v1128_v31 = vld [vmem:[%s1319_s1 + $0xf0] sm:$0xff]   ;;  %v1129_v32 = vld [vmem:[%s1319_s1 + $0xa8] sm:$0xff]   ;;  %v486_v33 = vld [vmem:[%s1226_s20] sm:$0xc] }
  0x14   : > { %v278_v21 = vor.u32 %v277_v19, %v273_v16  ;;  %v286_v29 = vor.u32 %v284_v25, %v282_v20  ;;  %v487_v34 = vld [vmem:[%s1226_s20 + $0x4] sm:$0xf]  ;;  %v1142_v36 = vld [vmem:[%s1226_s20 + $0x8] sm:$0x1f]   ;;  %v636_v38 = vld [vmem:[%s1226_s20] sm:$0x8] }
  0x15   : > { %1022 = vmatpush3.bf16.msra.mxu0 %v1110_v4  ;;  %v930_v35 = vcombine.low %v486_v33, %v487_v34  ;;  %v1130_v37 = vld [vmem:[%s1319_s1 + $0xe8] sm:$0xff]   ;;  %v527_v41 = vshrl.u32 %v1142_v36, 16  ;;  %v530_v42 = vshll.u32 %v1142_v36, 16  ;;  %v956_v43 = vcombine.low %v636_v38, %v487_v34  ;;  %v1131_v45 = vld [vmem:[%s1319_s1 + $0xa0] sm:$0xff]   ;;  %v1133_v55 = vld [vmem:[%s1319_s1 + $0x98] sm:$0xff]  }
  0x16   : > { %1042 = vmatpush3.bf16.msra.mxu1 %v1111_v5  ;;  %1023 = vmatprep.subr.bf16.mxu0 %v1112_v6  ;;  %v283_v24 = vsel %vm271_vm0, %v278_v21, %v282_v20  ;;  %v659_v44 = vrot.slane %v1142_v36, 3  ;;  %v1132_v50 = vld [vmem:[%s1319_s1 + $0xe0] sm:$0xff]   ;;  %v1134_v57 = vld [vmem:[%s1319_s1 + $0xd8] sm:$0xff]   ;;  %v1135_v58 = vld [vmem:[%s1319_s1 + $0x90] sm:$0xff]  }
  0x17   : > { %1043 = vmatprep.subr.bf16.mxu1 %v1113_v7  ;;  %1033 = vmatprep.mubr.bf16.mxu0 %v283_v24  ;;  %v519_v39 = vshrl.u32 %v930_v35, 16  ;;  %v522_v40 = vshll.u32 %v930_v35, 16  ;;  %v529_v48 = vrot.slane %v527_v41, 2  ;;  %v532_v49 = vrot.slane %v530_v42, 3  ;;  %v1136_v59 = vld [vmem:[%s1319_s1 + $0xd0] sm:$0xff]   ;;  %v1137_v60 = vld [vmem:[%s1319_s1 + $0x88] sm:$0xff]  }
  0x18   : > { %v658_v51 = vrot.slane %v956_v43, 3  ;;  %v1138_v61 = vld [vmem:[%s1319_s1 + $0xc8] sm:$0xff]   ;;  %v1139_v62 = vld [vmem:[%s1319_s1 + $0x80] sm:$0xff]  }
  0x19   : > { %1024 = vmatpush3.bf16.msra.mxu0 %v1112_v6  ;;  %v521_v46 = vrot.slane %v519_v39, 2  ;;  %v524_v47 = vrot.slane %v522_v40, 3  ;;  %v533_v53 = vor.u32 %v532_v49, %v529_v48  ;;  %v1140_v63 = vld [vmem:[%s1319_s1 + $0xc0] sm:$0xff]  }
  0x1a   : > { %1044 = vmatpush3.bf16.msra.mxu1 %v1113_v7  ;;  %1025 = vmatprep.subr.bf16.mxu0 %v1114_v8  ;;  %v660_v54 = vsel %vm657_vm1, %v658_v51, %v659_v44  ;;  %v965_v13 = vld [vmem:[%s1320_s2] ss:$0 sm:$0xff] }
  0x1b   : > { %1045 = vmatprep.subr.bf16.mxu1 %v1115_v9  ;;  %v525_v52 = vor.u32 %v524_v47, %v521_v46 }
  0x1d   : > { %1026 = vmatpush3.bf16.msra.mxu0 %v1114_v8  ;;  %v534_v56 = vsel %vm517_vm2, %v525_v52, %v533_v53 }
  0x1e   : > { %1046 = vmatpush3.bf16.msra.mxu1 %v1115_v9  ;;  %1027 = vmatprep.subr.bf16.mxu0 %v1116_v10 }
  0x1f   : > { %1047 = vmatprep.subr.bf16.mxu1 %v1117_v11 }
  0x21   : > { %1028 = vmatpush3.bf16.msra.mxu0 %v1116_v10 }
  0x22   : > { %1048 = vmatpush3.bf16.msra.mxu1 %v1117_v11  ;;  %1029 = vmatprep.subr.bf16.mxu0 %v1118_v14 }
  0x23   : > { %1049 = vmatprep.subr.bf16.mxu1 %v1119_v15 }
  0x25   : > { %1030 = vmatpush3.bf16.msra.mxu0 %v1118_v14 }
  0x26   : > { %1050 = vmatpush3.bf16.msra.mxu1 %v1119_v15  ;;  %1031 = vmatprep.subr.bf16.mxu0 %v1120_v22 }
  0x27   : > { %1051 = vmatprep.subr.bf16.mxu1 %v1121_v23 }
  0x29   : > { %1032 = vmatpush3.bf16.msra.mxu0 %v1120_v22 }
  0x2a   : > { %1052 = vmatpush3.bf16.msra.mxu1 %v1121_v23  ;;  %1057 = vmatprep.subr.bf16.mxu0 %v1125_v26 }
  0x2b   : > { %1077 = vmatprep.subr.bf16.mxu1 %v1126_v28 }
  0x2c   : > { %1034 = vmatmul.mubr.bf16.vlgmr.msra.gmra.mxu0 %v286_v29 }
  0x2d   : > { %1054 = vmatmul.mubr.bf16.vlgmr.msra.gmra.mxu1 %v1124_v27  ;;  %1058 = vmatpush3.bf16.msra.mxu0 %v1125_v26  ;;  %v966_v27 = vld [vmem:[%s1321_s3] ss:$0 sm:$0xff] }
  0x2e   : > { %1078 = vmatpush3.bf16.msra.mxu1 %v1126_v28  ;;  %1059 = vmatprep.subr.bf16.mxu0 %v1127_v30 }
  0x2f   : > { %1079 = vmatprep.subr.bf16.mxu1 %v1128_v31  ;;  %1073 = vmatprep.mubr.bf16.mxu0 %v534_v56 }
  0x30   : > { %1093 = vmatprep.mubr.bf16.mxu1 %v660_v54 }
  0x31   : > { %1060 = vmatpush3.bf16.msra.mxu0 %v1127_v30 }
  0x32   : > { %1080 = vmatpush3.bf16.msra.mxu1 %v1128_v31  ;;  %1061 = vmatprep.subr.bf16.mxu0 %v1129_v32 }
  0x33   : > { %1081 = vmatprep.subr.bf16.mxu1 %v1130_v37 }
  0x35   : > { %1062 = vmatpush3.bf16.msra.mxu0 %v1129_v32  ;;  %v967_v32 = vld [vmem:[%s1322_s4] ss:$0 sm:$0xff] }
  0x36   : > { %1082 = vmatpush3.bf16.msra.mxu1 %v1130_v37  ;;  %1063 = vmatprep.subr.bf16.mxu0 %v1131_v45 }
  0x37   : > { %1083 = vmatprep.subr.bf16.mxu1 %v1132_v50 }
  0x39   : > { %1064 = vmatpush3.bf16.msra.mxu0 %v1131_v45 }
  0x3a   : > { %1084 = vmatpush3.bf16.msra.mxu1 %v1132_v50  ;;  %1065 = vmatprep.subr.bf16.mxu0 %v1133_v55 }
  0x3b   : > { %1085 = vmatprep.subr.bf16.mxu1 %v1134_v57 }
  0x3d   : > { %1066 = vmatpush3.bf16.msra.mxu0 %v1133_v55 }
  0x3e   : > { %1086 = vmatpush3.bf16.msra.mxu1 %v1134_v57  ;;  %1067 = vmatprep.subr.bf16.mxu0 %v1135_v58 }
  0x3f   : > { %1087 = vmatprep.subr.bf16.mxu1 %v1136_v59 }
  0x41   : > { %1068 = vmatpush3.bf16.msra.mxu0 %v1135_v58 }
  0x42   : > { %1088 = vmatpush3.bf16.msra.mxu1 %v1136_v59  ;;  %1069 = vmatprep.subr.bf16.mxu0 %v1137_v60 }
  0x43   : > { %1089 = vmatprep.subr.bf16.mxu1 %v1138_v61 }
  0x45   : > { %1070 = vmatpush3.bf16.msra.mxu0 %v1137_v60 }
  0x46   : > { %1090 = vmatpush3.bf16.msra.mxu1 %v1138_v61  ;;  %1071 = vmatprep.subr.bf16.mxu0 %v1139_v62 }
  0x47   : > { %1091 = vmatprep.subr.bf16.mxu1 %v1140_v63 }
  0x49   : > { %1072 = vmatpush3.bf16.msra.mxu0 %v1139_v62 }
  0x4a   : > { %1092 = vmatpush3.bf16.msra.mxu1 %v1140_v63 }
  0x4c   : > { %1074 = vmatmul.mubr.bf16.vlgmr.msra.gmra.mxu0 %v533_v53 }
  0x4d   : > { %1094 = vmatmul.mubr.bf16.vlgmr.msra.gmra.mxu1 %v659_v44 }
  0xec   : > { %v1035_v0 = vpop.f32.mrf.mxu0 }
  0xed   : > { %v1055_v1 = vpop.f32.mrf.mxu1 }
  0xee   : > { %v371_v2 = vpop.f32.mrf.mxu0  ;;  %v481_v7 = vadd.f32 %v1055_v1, %v1035_v0 }
  0xef   : > { %v472_v3 = vpop.f32.mrf.mxu1 }
  0xf0   : > { %v1036_v4 = vpop.f32.mrf.mxu0  ;;  %v473_v10 = vadd.f32 %v472_v3, %v371_v2 }
  0xf1   : > { %v1056_v5 = vpop.f32.mrf.mxu1 }
  0xf2   : > { %v374_v6 = vpop.f32.mrf.mxu0 }
  0xf3   : > { %v475_v8 = vpop.f32.mrf.mxu1 }
  0xf4   : > { %v476_v19 = vadd.f32 %v475_v8, %v374_v6 }
 0x10c   : > { %v1075_v9 = vpop.f32.mrf.mxu0 }
 0x10d   : > { %v635_v11 = vadd.f32 %v1075_v9, %v481_v7  ;;  %v1095_v12 = vpop.f32.mrf.mxu1 }
 0x10e   : > { %v619_v14 = vpop.f32.mrf.mxu0 }
 0x10f   : > { %v761_v15 = vadd.f32 %v1095_v12, %v635_v11  ;;  %v633_v16 = vadd.f32 %v619_v14, %v473_v10  ;;  %v745_v17 = vpop.f32.mrf.mxu1 }
 0x110   : > { %v1076_v18 = vpop.f32.mrf.mxu0 }
 0x111   : > { %v771_v20 = vadd.f32 %v965_v13, %v761_v15  ;;  %v759_v21 = vadd.f32 %v745_v17, %v633_v16  ;;  %v1096_v22 = vpop.f32.mrf.mxu1 }
 0x112   : > { %v622_v23 = vpop.f32.mrf.mxu0 }
 0x113   : > { %v774_v24 = vmul.f32 0.2, %v771_v20  ;;  %v769_v25 = vadd.f32 %v965_v13, %v759_v21  ;;  %v634_v26 = vadd.f32 %v622_v23, %v476_v19  ;;  %v748_v28 = vpop.f32.mrf.mxu1 }
 0x115   : > { %v777_v29 = vmax.f32 %v771_v20, %v774_v24  ;;  %v772_v30 = vmul.f32 0.2, %v769_v25  ;;  %v760_v31 = vadd.f32 %v748_v28, %v634_v26 }
 0x117   : > { %v787_v33 = vmul.f32 %v966_v27, %v777_v29  ;;  %v775_v34 = vmax.f32 %v769_v25, %v772_v30  ;;  %v770_v35 = vadd.f32 %v965_v13, %v760_v31 }
 0x119   : > { %v797_v36 = vadd.f32 %v967_v32, %v787_v33  ;;  %v785_v37 = vmul.f32 %v966_v27, %v775_v34  ;;  %v773_v38 = vmul.f32 0.2, %v770_v35 }
 0x11b   : > { %v976_v39 = vpack.c.bf16 %v797_v36, %v797_v36  ;;  %v795_v40 = vadd.f32 %v967_v32, %v785_v37  ;;  %v776_v41 = vmax.f32 %v770_v35, %v773_v38 }
 0x11d   : > { %815 = vst.msk [vmem:[%s224_s28 + $0x8] sm:$0x3] %vm814_vm3, %v976_v39  ;;  %v974_v42 = vpack.c.bf16 %v795_v40, %v795_v40  ;;  %v786_v43 = vmul.f32 %v966_v27, %v776_v41 }
 0x11f   : > { %812 = vst.msk [vmem:[%s224_s28] sm:$0xf] %vm811_vm4, %v974_v42  ;;  %v796_v44 = vadd.f32 %v967_v32, %v786_v43 }
 0x121   : > { %v975_v45 = vpack.c.bf16 %v796_v44, %v796_v44 }
 0x123   : > { %813 = vst.msk [vmem:[%s224_s28 + $0x4] sm:$0xf] %vm811_vm4, %v975_v45 }
 0x124 PF: > { %s15_s18 = sadd.s32 1, %s1150_s18  }
 0x125   : > { %p12_p4 = scmp.ge.s32.totalorder %s15_s18, 4  }
 0x127   :  { %14 = sbr.rel (!%p12_p4) target bundleno = 1 (0x1), region = 73 }

// kernel: _lambda_.8
= control target key start
LH: loop header
LB: loop body
LE: loop exit
PB: predicated region body
PF: predicated region fallthrough
CT: control target
= control target key end

     0   :  { %s1438_s18 = smov 0   ;;  %s1671_s0 = inlined_call_operand.vmem [shape: bf16[2,16,256], index: 0, kind: input, shape index: {}]   ;;  %s1672_s1 = inlined_call_operand.vmem [shape: bf16[4,256,128], index: 1, kind: input, shape index: {}]   ;;  %s1673_s2 = inlined_call_operand.vmem [shape: f32[1,128], index: 2, kind: input, shape index: {}]   ;;  %s1674_s3 = inlined_call_operand.vmem [shape: f32[1,128], index: 3, kind: input, shape index: {}]   ;;  %s1675_s4 = inlined_call_operand.vmem [shape: f32[1,128], index: 4, kind: input, shape index: {}]   ;;  %s1676_s5 = inlined_call_operand.vmem [shape: bf16[2,6,128], index: 5, kind: output, shape index: {}]  }
   0x1 LB: > { %s1050_s19 = sadd.s32 4294967295, %s1406_s18   ;;  %p1054_p0 = scmp.ge.s32.totalorder %s1406_s18, 1  ;;  %s1406_s18 = sphi %s1438_s18, %s15_s18  }
   0x2   : > { %p187_p1 = scmp.lt.s32.totalorder %s1406_s18, 3 }
   0x4   : > { %p188_p2 = pnand %p1054_p0, %p187_p1 }
   0x5   : > { %p214_p3 = scmp.lt.s32.totalorder (!%p188_p2), %s1050_s19, 1 }
   0x6   : > { %191 = sbr.rel (%p188_p2) target bundleno = 291 (0x123), region = 40 }
   0xb   : > { %v1328_v0 = vld [vmem:[%s1672_s1 + $0xf8] sm:$0xff]   ;;  %v1332_v4 = vld [vmem:[%s1672_s1 + $0xf0] sm:$0xff]   ;;  %v1336_v8 = vld [vmem:[%s1672_s1 + $0xe8] sm:$0xff]   ;;  %s1678_s19 = smov (!%p214_p3, %s1050_s19), 1 }
   0xc   : > { %v1329_v1 = vld [vmem:[%s1672_s1 + $0x78] sm:$0xff]   ;;  %1232 = vmatprep.subr.bf16.mxu0 %v1328_v0  ;;  %v1333_v5 = vld [vmem:[%s1672_s1 + $0x70] sm:$0xff]   ;;  %v1337_v9 = vld [vmem:[%s1672_s1 + $0x68] sm:$0xff]   ;;  %s1231_s28 = sshll.u32 %s1678_s19, 4  ;;  %s1057_s22 = sshll.u32 %s1678_s19, 2 }
   0xd   : > { %v1330_v2 = vld [vmem:[%s1672_s1 + $0xb8] sm:$0xff]   ;;  %1254 = vmatprep.subr.bf16.mxu1 %v1329_v1  ;;  %v1334_v6 = vld [vmem:[%s1672_s1 + $0xb0] sm:$0xff]   ;;  %v1338_v10 = vld [vmem:[%s1672_s1 + $0xa8] sm:$0xff]   ;;  %s1546_s12 = scalar_lea.vmem %s1671_s0, %s1231_s28  ;;  %s222_s25 = scalar_lea.vmem %s1676_s5, %s1057_s22 }
   0xe   : > { %v1331_v3 = vld [vmem:[%s1672_s1 + $0x38] sm:$0xff]   ;;  %1233 = vmatpush3.bf16.msra.mxu0 %v1330_v2  ;;  %v1335_v7 = vld [vmem:[%s1672_s1 + $0x30] sm:$0xff]   ;;  %v1339_v11 = vld [vmem:[%s1672_s1 + $0x28] sm:$0xff]  }
   0xf   : > { %1255 = vmatpush3.bf16.msra.mxu1 %v1331_v3  ;;  %1234 = vmatprep.subr.bf16.mxu0 %v1332_v4  ;;  %v1340_v12 = vld [vmem:[%s1672_s1 + $0xe0] sm:$0xff]   ;;  %v1344_v16 = vld [vmem:[%s1672_s1 + $0xd8] sm:$0xff]   ;;  %v1348_v20 = vld [vmem:[%s1672_s1 + $0xd0] sm:$0xff]  }
  0x10   : > { %1256 = vmatprep.subr.bf16.mxu1 %v1333_v5  ;;  %v1341_v13 = vld [vmem:[%s1672_s1 + $0x60] sm:$0xff]   ;;  %v1345_v17 = vld [vmem:[%s1672_s1 + $0x58] sm:$0xff]   ;;  %v1349_v21 = vld [vmem:[%s1672_s1 + $0x50] sm:$0xff]  }
  0x11   : > { %v1342_v14 = vld [vmem:[%s1672_s1 + $0xa0] sm:$0xff]   ;;  %v1346_v18 = vld [vmem:[%s1672_s1 + $0x98] sm:$0xff]   ;;  %v1350_v22 = vld [vmem:[%s1672_s1 + $0x90] sm:$0xff]  }
  0x12   : > { %1235 = vmatpush3.bf16.msra.mxu0 %v1334_v6  ;;  %v1343_v15 = vld [vmem:[%s1672_s1 + $0x20] sm:$0xff]   ;;  %v1347_v19 = vld [vmem:[%s1672_s1 + $0x18] sm:$0xff]   ;;  %v1351_v23 = vld [vmem:[%s1672_s1 + $0x10] sm:$0xff]  }
  0x13   : > { %1257 = vmatpush3.bf16.msra.mxu1 %v1335_v7  ;;  %1236 = vmatprep.subr.bf16.mxu0 %v1336_v8  ;;  %v1352_v24 = vld [vmem:[%s1672_s1 + $0xc8] sm:$0xff]   ;;  %v1356_v28 = vld [vmem:[%s1672_s1 + $0xc0] sm:$0xff]   ;;  %v1364_v38 = vld [vmem:[%s1672_s1 + $0x178] sm:$0xff]  }
  0x14   : > { %1258 = vmatprep.subr.bf16.mxu1 %v1337_v9  ;;  %v1353_v25 = vld [vmem:[%s1672_s1 + $0x48] sm:$0xff]   ;;  %v1357_v29 = vld [vmem:[%s1672_s1 + $0x40] sm:$0xff]   ;;  %v1365_v39 = vld [vmem:[%s1672_s1 + $0x1f8] sm:$0xff]  }
  0x15   : > { %v1354_v26 = vld [vmem:[%s1672_s1 + $0x88] sm:$0xff]   ;;  %v1358_v30 = vld [vmem:[%s1672_s1 + $0x80] sm:$0xff]   ;;  %v1366_v46 = vld [vmem:[%s1672_s1 + $0x138] sm:$0xff]  }
  0x16   : > { %1237 = vmatpush3.bf16.msra.mxu0 %v1338_v10  ;;  %v1355_v27 = vld [vmem:[%s1672_s1 + $0x8] sm:$0xff]   ;;  %v1359_v31 = vld [vmem:[%s1672_s1] sm:$0xff]   ;;  %v1367_v47 = vld [vmem:[%s1672_s1 + $0x1b8] sm:$0xff]  }
  0x17   : > { %1259 = vmatpush3.bf16.msra.mxu1 %v1339_v11  ;;  %1238 = vmatprep.subr.bf16.mxu0 %v1340_v12  ;;  %v257_v32 = vld [vmem:[%s1546_s12] sm:$0xff]  ;;  %v1369_v50 = vld [vmem:[%s1672_s1 + $0x1f0] sm:$0xff]   ;;  %v1373_v54 = vld [vmem:[%s1672_s1 + $0x1e8] sm:$0xff]  }
  0x18   : > { %1260 = vmatprep.subr.bf16.mxu1 %v1341_v13  ;;  %v224_v33 = vld [vmem:[%s1546_s12] sm:$0x77]  ;;  %v1090_v34 = vcombine.low %v257_v32, %v257_v32  ;;  %v1091_v35 = vcombine.high %v257_v32, %v257_v32  ;;  %v1368_v51 = vld [vmem:[%s1672_s1 + $0x170] sm:$0xff]   ;;  %v1372_v55 = vld [vmem:[%s1672_s1 + $0x168] sm:$0xff]  }
  0x19   : > { %v1108_v36 = vcombine.low %v224_v33, %v224_v33  ;;  %v1109_v37 = vcombine.high %v224_v33, %v224_v33  ;;  %v1371_v52 = vld [vmem:[%s1672_s1 + $0x1b0] sm:$0xff]   ;;  %v1375_v56 = vld [vmem:[%s1672_s1 + $0x1a8] sm:$0xff]   ;;  %v1377_v58 = vld [vmem:[%s1672_s1 + $0x1e0] sm:$0xff]  }
  0x1a   : > { %1239 = vmatpush3.bf16.msra.mxu0 %v1342_v14  ;;  %v304_v40 = vshrl.u32 %v1091_v35, 16  ;;  %v306_v41 = vshll.u32 %v1091_v35, 16  ;;  %v297_v42 = vshrl.u32 %v1090_v34, 16  ;;  %v299_v43 = vshll.u32 %v1090_v34, 16  ;;  %v1370_v53 = vld [vmem:[%s1672_s1 + $0x130] sm:$0xff]   ;;  %v1374_v57 = vld [vmem:[%s1672_s1 + $0x128] sm:$0xff]  }
  0x1b   : > { %1261 = vmatpush3.bf16.msra.mxu1 %v1343_v15  ;;  %1240 = vmatprep.subr.bf16.mxu0 %v1344_v16  ;;  %v1376_v59 = vld [vmem:[%s1672_s1 + $0x160] sm:$0xff]   ;;  %v1381_v62 = vld [vmem:[%s1672_s1 + $0x1d8] sm:$0xff]   ;;  %v1385_v2 = vld [vmem:[%s1672_s1 + $0x1d0] sm:$0xff]  }
  0x1c   : > { %1262 = vmatprep.subr.bf16.mxu1 %v1345_v17  ;;  %583 = vmatprep.mubr.bf16.mxu1 %v1109_v37  ;;  %v308_v44 = vrot.slane %v306_v41, 1  ;;  %v301_v45 = vrot.slane %v299_v43, 1  ;;  %v1379_v60 = vld [vmem:[%s1672_s1 + $0x1a0] sm:$0xff]   ;;  %v1380_v63 = vld [vmem:[%s1672_s1 + $0x158] sm:$0xff]   ;;  %v1384_v3 = vld [vmem:[%s1672_s1 + $0x150] sm:$0xff]  }
  0x1d   : > { %v1378_v61 = vld [vmem:[%s1672_s1 + $0x120] sm:$0xff]   ;;  %v1383_v0 = vld [vmem:[%s1672_s1 + $0x198] sm:$0xff]   ;;  %v1387_v4 = vld [vmem:[%s1672_s1 + $0x190] sm:$0xff]  }
  0x1e   : > { %1241 = vmatpush3.bf16.msra.mxu0 %v1346_v18  ;;  %v309_v48 = vor.u32 %v308_v44, %v304_v40  ;;  %v302_v49 = vor.u32 %v301_v45, %v297_v42  ;;  %v1382_v1 = vld [vmem:[%s1672_s1 + $0x118] sm:$0xff]   ;;  %v1386_v5 = vld [vmem:[%s1672_s1 + $0x110] sm:$0xff]   ;;  %v1389_v6 = vld [vmem:[%s1672_s1 + $0x1c8] sm:$0xff]  }
  0x1f   : > { %1263 = vmatpush3.bf16.msra.mxu1 %v1347_v19  ;;  %1242 = vmatprep.subr.bf16.mxu0 %v1348_v20  ;;  %v1388_v7 = vld [vmem:[%s1672_s1 + $0x148] sm:$0xff]   ;;  %v1393_v10 = vld [vmem:[%s1672_s1 + $0x1c0] sm:$0xff]  }
  0x20   : > { %1264 = vmatprep.subr.bf16.mxu1 %v1349_v21  ;;  %440 = vmatprep.mubr.bf16.mxu0 %v309_v48  ;;  %v1391_v8 = vld [vmem:[%s1672_s1 + $0x188] sm:$0xff]   ;;  %v1392_v11 = vld [vmem:[%s1672_s1 + $0x140] sm:$0xff]  }
  0x21   : > { %v1390_v9 = vld [vmem:[%s1672_s1 + $0x108] sm:$0xff]   ;;  %v1395_v12 = vld [vmem:[%s1672_s1 + $0x180] sm:$0xff]  }
  0x22   : > { %1243 = vmatpush3.bf16.msra.mxu0 %v1350_v22  ;;  %v591_v13 = vld [vmem:[%s1546_s12] sm:$0xee]  ;;  %v592_v14 = vld [vmem:[%s1546_s12 + $0x8] sm:$0x11] }
  0x23   : > { %1265 = vmatpush3.bf16.msra.mxu1 %v1351_v23  ;;  %1244 = vmatprep.subr.bf16.mxu0 %v1352_v24  ;;  %v1158_v15 = vcombine.low %v591_v13, %v592_v14  ;;  %v1159_v16 = vcombine.high %v591_v13, %v592_v14  ;;  %v789_v17 = vld [vmem:[%s1546_s12] sm:$0xcc] }
  0x24   : > { %1266 = vmatprep.subr.bf16.mxu1 %v1353_v25  ;;  %v1394_v18 = vld [vmem:[%s1672_s1 + $0x100] sm:$0xff]   ;;  %v1208_v19 = vcombine.low %v789_v17, %v592_v14  ;;  %v1209_v20 = vcombine.high %v789_v17, %v592_v14 }
  0x25   : > { %v643_v21 = vshrl.u32 %v1159_v16, 16  ;;  %v646_v22 = vshll.u32 %v1159_v16, 16  ;;  %v635_v23 = vshrl.u32 %v1158_v15, 16  ;;  %v638_v24 = vshll.u32 %v1158_v15, 16 }
  0x26   : > { %1245 = vmatpush3.bf16.msra.mxu0 %v1354_v26  ;;  %v828_v25 = vrot.slane %v1208_v19, 2  ;;  %v829_v26 = vrot.slane %v1209_v20, 2 }
  0x27   : > { %1267 = vmatpush3.bf16.msra.mxu1 %v1355_v27  ;;  %1246 = vmatprep.subr.bf16.mxu0 %v1356_v28  ;;  %v645_v27 = vrot.slane %v643_v21, 1  ;;  %v648_v28 = vrot.slane %v646_v22, 2 }
  0x28   : > { %1268 = vmatprep.subr.bf16.mxu1 %v1357_v29  ;;  %v637_v29 = vrot.slane %v635_v23, 1 }
  0x2a   : > { %1247 = vmatpush3.bf16.msra.mxu0 %v1358_v30  ;;  %v640_v30 = vrot.slane %v638_v24, 2 }
  0x2b   : > { %1269 = vmatpush3.bf16.msra.mxu1 %v1359_v31  ;;  %1276 = vmatprep.subr.bf16.mxu0 %v1364_v38  ;;  %v649_v31 = vor.u32 %v648_v28, %v645_v27 }
  0x2c   : > { %1298 = vmatprep.subr.bf16.mxu1 %v1365_v39  ;;  %v641_v32 = vor.u32 %v640_v30, %v637_v29 }
  0x2d   : > { %441 = vmatmul.mubr.bf16.vlgmr.msra.gmra.mxu0 %v302_v49 }
  0x2e   : > { %584 = vmatmul.mubr.bf16.vlgmr.msra.gmra.mxu1 %v1108_v36  ;;  %1277 = vmatpush3.bf16.msra.mxu0 %v1366_v46 }
  0x2f   : > { %1299 = vmatpush3.bf16.msra.mxu1 %v1367_v47  ;;  %1278 = vmatprep.subr.bf16.mxu0 %v1368_v51 }
  0x30   : > { %1300 = vmatprep.subr.bf16.mxu1 %v1369_v50  ;;  %960 = vmatprep.mubr.bf16.mxu1 %v829_v26 }
  0x31   : > { %780 = vmatprep.mubr.bf16.mxu0 %v649_v31 }
  0x32   : > { %1279 = vmatpush3.bf16.msra.mxu0 %v1370_v53 }
  0x33   : > { %1301 = vmatpush3.bf16.msra.mxu1 %v1371_v52  ;;  %1280 = vmatprep.subr.bf16.mxu0 %v1372_v55 }
  0x34   : > { %1302 = vmatprep.subr.bf16.mxu1 %v1373_v54  ;;  %v1226_v54 = vld [vmem:[%s1673_s2] ss:$0 sm:$0xff] }
  0x36   : > { %1281 = vmatpush3.bf16.msra.mxu0 %v1374_v57 }
  0x37   : > { %1303 = vmatpush3.bf16.msra.mxu1 %v1375_v56  ;;  %1282 = vmatprep.subr.bf16.mxu0 %v1376_v59  ;;  %v1227_v59 = vld [vmem:[%s1674_s3] ss:$0 sm:$0xff] }
  0x38   : > { %1304 = vmatprep.subr.bf16.mxu1 %v1377_v58 }
  0x3a   : > { %1283 = vmatpush3.bf16.msra.mxu0 %v1378_v61  ;;  %v1228_v61 = vld [vmem:[%s1675_s4] ss:$0 sm:$0xff] }
  0x3b   : > { %1305 = vmatpush3.bf16.msra.mxu1 %v1379_v60  ;;  %1284 = vmatprep.subr.bf16.mxu0 %v1380_v63 }
  0x3c   : > { %1306 = vmatprep.subr.bf16.mxu1 %v1381_v62 }
  0x3e   : > { %1285 = vmatpush3.bf16.msra.mxu0 %v1382_v1 }
  0x3f   : > { %1307 = vmatpush3.bf16.msra.mxu1 %v1383_v0  ;;  %1286 = vmatprep.subr.bf16.mxu0 %v1384_v3 }
  0x40   : > { %1308 = vmatprep.subr.bf16.mxu1 %v1385_v2 }
  0x42   : > { %1287 = vmatpush3.bf16.msra.mxu0 %v1386_v5 }
  0x43   : > { %1309 = vmatpush3.bf16.msra.mxu1 %v1387_v4  ;;  %1288 = vmatprep.subr.bf16.mxu0 %v1388_v7 }
  0x44   : > { %1310 = vmatprep.subr.bf16.mxu1 %v1389_v6 }
  0x46   : > { %1289 = vmatpush3.bf16.msra.mxu0 %v1390_v9 }
  0x47   : > { %1311 = vmatpush3.bf16.msra.mxu1 %v1391_v8  ;;  %1290 = vmatprep.subr.bf16.mxu0 %v1392_v11 }
  0x48   : > { %1312 = vmatprep.subr.bf16.mxu1 %v1393_v10 }
  0x4a   : > { %1291 = vmatpush3.bf16.msra.mxu0 %v1394_v18 }
  0x4b   : > { %1313 = vmatpush3.bf16.msra.mxu1 %v1395_v12 }
  0x4d   : > { %781 = vmatmul.mubr.bf16.vlgmr.msra.gmra.mxu0 %v641_v32 }
  0x4e   : > { %961 = vmatmul.mubr.bf16.vlgmr.msra.gmra.mxu1 %v828_v25 }
  0xed   : > { %v1248_v36 = vpop.f32.mrf.mxu0 }
  0xee   : > { %v1270_v33 = vpop.f32.mrf.mxu1 }
  0xef   : > { %v1249_v38 = vpop.f32.mrf.mxu0 }
  0xf0   : > { %v1271_v34 = vpop.f32.mrf.mxu1  ;;  %v1250_v42 = vadd.f32 %v1249_v38, %v1248_v36 }
  0xf1   : > { %v1251_v39 = vpop.f32.mrf.mxu0  ;;  %v1272_v43 = vadd.f32 %v1271_v34, %v1270_v33 }
  0xf2   : > { %v1273_v35 = vpop.f32.mrf.mxu1 }
  0xf3   : > { %v1252_v40 = vpop.f32.mrf.mxu0  ;;  %v586_v48 = vadd.f32 %v1272_v43, %v1250_v42 }
  0xf4   : > { %v1274_v37 = vpop.f32.mrf.mxu1 }
 0x10d   : > { %v1292_v45 = vpop.f32.mrf.mxu0 }
 0x10e   : > { %v1314_v41 = vpop.f32.mrf.mxu1 }
 0x10f   : > { %v1293_v47 = vpop.f32.mrf.mxu0 }
 0x110   : > { %v1315_v44 = vpop.f32.mrf.mxu1  ;;  %v1294_v49 = vadd.f32 %v1293_v47, %v1292_v45 }
 0x111   : > { %v1295_v51 = vpop.f32.mrf.mxu0  ;;  %v1316_v53 = vadd.f32 %v1315_v44, %v1314_v41 }
 0x112   : > { %v1317_v46 = vpop.f32.mrf.mxu1  ;;  %v788_v52 = vadd.f32 %v1294_v49, %v586_v48 }
 0x113   : > { %v1296_v55 = vpop.f32.mrf.mxu0 }
 0x114   : > { %v1318_v50 = vpop.f32.mrf.mxu1  ;;  %v968_v56 = vadd.f32 %v1316_v53, %v788_v52 }
 0x116   : > { %v976_v57 = vadd.f32 %v1226_v54, %v968_v56 }
 0x118   : > { %v977_v58 = vmul.f32 0.2, %v976_v57 }
 0x11a   : > { %v978_v60 = vmax.f32 %v976_v57, %v977_v58 }
 0x11c   : > { %v986_v62 = vmul.f32 %v1227_v59, %v978_v60 }
 0x11e   : > { %v994_v63 = vadd.f32 %v1228_v61, %v986_v62 }
 0x120   : > { %v995_v0 = vpack.c.bf16 %v994_v63, %v994_v63 }
 0x122   : > { %996 = vst [vmem:[%s222_s25] sm:$0x7] %v995_v0 }
 0x123 PF: > { %s15_s18 = sadd.s32 1, %s1406_s18  }
 0x124   : > { %p12_p4 = scmp.ge.s32.totalorder %s15_s18, 4  }
 0x126   :  { %14 = sbr.rel (!%p12_p4) target bundleno = 1 (0x1), region = 73 }

// kernel: _lambda_.9
= control target key start
LH: loop header
LB: loop body
LE: loop exit
PB: predicated region body
PF: predicated region fallthrough
CT: control target
= control target key end

     0   :  { %v779_v22 = vmov 1966171168   ;;  %v126_v24 = vlaneseq  ;;  %vm21_vm0 = vcmask 1024   ;;  %s957_s1 = inlined_call_operand.vmem [shape: bf16[768,1], index: 1, kind: input, shape index: {}]   ;;  %s958_s0 = inlined_call_operand.vmem [shape: bf16[2,768], index: 0, kind: input, shape index: {}]   ;;  %s959_s2 = inlined_call_operand.<no memory space> [shape: f32[1,1], index: 2, kind: input, shape index: {}]   ;;  %s960_s3 = inlined_call_operand.vmem [shape: f32[2,1], index: 3, kind: output, shape index: {}]  }
   0x1   :  { %v726_v0 = vld [vmem:[%s957_s1 + $0x78] sm:$0xff]   ;;  %v730_v4 = vld [vmem:[%s957_s1 + $0x70] sm:$0xff]   ;;  %v734_v8 = vld [vmem:[%s957_s1 + $0x68] sm:$0xff]   ;;  %v124_v23 = vunpack.c.l.s4 %v779_v22 }
   0x2   :  { %v727_v1 = vld [vmem:[%s957_s1 + $0xf8] sm:$0xff]   ;;  %658 = vmatprep.subr.bf16.mxu0 %v726_v0  ;;  %v731_v5 = vld [vmem:[%s957_s1 + $0xf0] sm:$0xff]   ;;  %v735_v9 = vld [vmem:[%s957_s1 + $0xe8] sm:$0xff]   ;;  %v127_v30 = vshrl.u32 %v126_v24, 7 }
   0x3   :  { %v728_v2 = vld [vmem:[%s957_s1 + $0x38] sm:$0xff]   ;;  %680 = vmatprep.subr.bf16.mxu1 %v727_v1  ;;  %v732_v6 = vld [vmem:[%s957_s1 + $0x30] sm:$0xff]   ;;  %v736_v10 = vld [vmem:[%s957_s1 + $0x28] sm:$0xff]   ;;  %v125_v29 = vunpack.c.0.s8 %v124_v23 }
   0x4   :  { %v729_v3 = vld [vmem:[%s957_s1 + $0xb8] sm:$0xff]   ;;  %659 = vmatpush3.bf16.msra.mxu0 %v728_v2  ;;  %v733_v7 = vld [vmem:[%s957_s1 + $0xb0] sm:$0xff]   ;;  %v737_v11 = vld [vmem:[%s957_s1 + $0xa8] sm:$0xff]   ;;  %v8_v2 = vstv %s959_s2 }
   0x5   :  { %681 = vmatpush3.bf16.msra.mxu1 %v729_v3  ;;  %660 = vmatprep.subr.bf16.mxu0 %v730_v4  ;;  %v738_v12 = vld [vmem:[%s957_s1 + $0x60] sm:$0xff]   ;;  %v742_v16 = vld [vmem:[%s957_s1 + $0x58] sm:$0xff]   ;;  %v746_v20 = vld [vmem:[%s957_s1 + $0x50] sm:$0xff]   ;;  %v128_v35 = vsub.s32 %v125_v29, %v127_v30  ;;  %v780_v3 = vmov 0.0   ;;  %9 = vst [vmem:[#allocation3] sm:$0x1] %v8_v2 }
   0x6   :  { %682 = vmatprep.subr.bf16.mxu1 %v731_v5  ;;  %v739_v13 = vld [vmem:[%s957_s1 + $0xe0] sm:$0xff]   ;;  %v743_v17 = vld [vmem:[%s957_s1 + $0xd8] sm:$0xff]   ;;  %v747_v21 = vld [vmem:[%s957_s1 + $0xd0] sm:$0xff]   ;;  %22 = vst.msk [vmem:[#allocation2] sm:$0x3] %vm21_vm0, %v780_v3 }
   0x7   :  { %v740_v14 = vld [vmem:[%s957_s1 + $0x20] sm:$0xff]   ;;  %v744_v18 = vld [vmem:[%s957_s1 + $0x18] sm:$0xff]   ;;  %v748_v25 = vld [vmem:[%s957_s1 + $0x10] sm:$0xff]  }
   0x8   :  { %661 = vmatpush3.bf16.msra.mxu0 %v732_v6  ;;  %v741_v15 = vld [vmem:[%s957_s1 + $0xa0] sm:$0xff]   ;;  %v745_v19 = vld [vmem:[%s957_s1 + $0x98] sm:$0xff]   ;;  %v749_v26 = vld [vmem:[%s957_s1 + $0x90] sm:$0xff]  }
   0x9   :  { %683 = vmatpush3.bf16.msra.mxu1 %v733_v7  ;;  %662 = vmatprep.subr.bf16.mxu0 %v734_v8  ;;  %v750_v27 = vld [vmem:[%s957_s1 + $0x48] sm:$0xff]   ;;  %v754_v33 = vld [vmem:[%s957_s1 + $0x40] sm:$0xff]   ;;  %v759_v41 = vld [vmem:[%s957_s1 + $0x178] sm:$0xff]  }
   0xa   :  { %684 = vmatprep.subr.bf16.mxu1 %v735_v9  ;;  %v751_v28 = vld [vmem:[%s957_s1 + $0xc8] sm:$0xff]   ;;  %v755_v34 = vld [vmem:[%s957_s1 + $0xc0] sm:$0xff]   ;;  %v760_v46 = vld [vmem:[%s957_s1 + $0x138] sm:$0xff]  }
   0xb   :  { %v752_v31 = vld [vmem:[%s957_s1 + $0x8] sm:$0xff]   ;;  %v756_v36 = vld [vmem:[%s957_s1] sm:$0xff]   ;;  %v761_v49 = vld [vmem:[%s957_s1 + $0x170] sm:$0xff]  }
   0xc   :  { %663 = vmatpush3.bf16.msra.mxu0 %v736_v10  ;;  %v753_v32 = vld [vmem:[%s957_s1 + $0x88] sm:$0xff]   ;;  %v757_v37 = vld [vmem:[%s957_s1 + $0x80] sm:$0xff]   ;;  %v762_v52 = vld [vmem:[%s957_s1 + $0x130] sm:$0xff]  }
   0xd   :  { %685 = vmatpush3.bf16.msra.mxu1 %v737_v11  ;;  %664 = vmatprep.subr.bf16.mxu0 %v738_v12  ;;  %v24_v38 = vld [vmem:[%s958_s0] sm:$0x3f]  ;;  %v763_v53 = vld [vmem:[%s957_s1 + $0x168] sm:$0xff]   ;;  %v767_v57 = vld [vmem:[%s957_s1 + $0x158] sm:$0xff]  }
   0xe   :  { %686 = vmatprep.subr.bf16.mxu1 %v739_v13  ;;  %v122_v39 = vcombine.high %v24_v38, %v24_v38  ;;  %v129_v40 = vrot.slane %v24_v38, %v128_v35  ;;  %v764_v54 = vld [vmem:[%s957_s1 + $0x128] sm:$0xff]   ;;  %v765_v55 = vld [vmem:[%s957_s1 + $0x160] sm:$0xff]   ;;  %v768_v58 = vld [vmem:[%s957_s1 + $0x118] sm:$0xff]  }
   0xf   :  { %v766_v56 = vld [vmem:[%s957_s1 + $0x120] sm:$0xff]   ;;  %v769_v59 = vld [vmem:[%s957_s1 + $0x150] sm:$0xff]   ;;  %v771_v61 = vld [vmem:[%s957_s1 + $0x148] sm:$0xff]  }
  0x10   :  { %665 = vmatpush3.bf16.msra.mxu0 %v740_v14  ;;  %v137_v42 = vcombine.high %v129_v40, %v129_v40  ;;  %v145_v43 = vrot.slane %v129_v40, %v128_v35  ;;  %v136_v44 = vrot.slane %v122_v39, %v128_v35  ;;  %v770_v60 = vld [vmem:[%s957_s1 + $0x110] sm:$0xff]   ;;  %v772_v62 = vld [vmem:[%s957_s1 + $0x108] sm:$0xff]   ;;  %v773_v63 = vld [vmem:[%s957_s1 + $0x140] sm:$0xff]  }
  0x11   :  { %687 = vmatpush3.bf16.msra.mxu1 %v741_v15  ;;  %666 = vmatprep.subr.bf16.mxu0 %v742_v16  ;;  %v774_v0 = vld [vmem:[%s957_s1 + $0x100] sm:$0xff]  }
  0x12   :  { %688 = vmatprep.subr.bf16.mxu1 %v743_v17  ;;  %v159_v45 = vrot.slane %v137_v42, %v128_v35  ;;  %v138_v47 = vcombine.high %v136_v44, %v136_v44  ;;  %v167_v48 = vcombine.high %v145_v43, %v145_v43  ;;  %v152_v1 = vrot.slane %v136_v44, %v128_v35  ;;  %v657_v23 = vld [vmem:[#allocation3] ss:$0 sm:$0xff] }
  0x14   :  { %667 = vmatpush3.bf16.msra.mxu0 %v744_v18  ;;  %495 = vmatprep.mubr.bf16.mxu0 %v159_v45  ;;  %v168_v50 = vcombine.high %v159_v45, %v159_v45  ;;  %v166_v51 = vrot.slane %v138_v47, %v128_v35  ;;  %v23_v18 = vld [vmem:[#allocation2] sm:$0x3] }
  0x15   :  { %689 = vmatpush3.bf16.msra.mxu1 %v745_v19  ;;  %668 = vmatprep.subr.bf16.mxu0 %v746_v20 }
  0x16   :  { %690 = vmatprep.subr.bf16.mxu1 %v747_v21  ;;  %535 = vmatprep.mubr.bf16.mxu1 %v168_v50 }
  0x18   :  { %669 = vmatpush3.bf16.msra.mxu0 %v748_v25 }
  0x19   :  { %691 = vmatpush3.bf16.msra.mxu1 %v749_v26  ;;  %670 = vmatprep.subr.bf16.mxu0 %v750_v27 }
  0x1a   :  { %692 = vmatprep.subr.bf16.mxu1 %v751_v28 }
  0x1c   :  { %671 = vmatpush3.bf16.msra.mxu0 %v752_v31 }
  0x1d   :  { %693 = vmatpush3.bf16.msra.mxu1 %v753_v32  ;;  %672 = vmatprep.subr.bf16.mxu0 %v754_v33 }
  0x1e   :  { %694 = vmatprep.subr.bf16.mxu1 %v755_v34 }
  0x20   :  { %673 = vmatpush3.bf16.msra.mxu0 %v756_v36 }
  0x21   :  { %695 = vmatpush3.bf16.msra.mxu1 %v757_v37  ;;  %702 = vmatprep.subr.bf16.mxu0 %v759_v41 }
  0x23   :  { %496 = vmatmul.mubr.bf16.vlgmr.msra.gmra.mxu0 %v145_v43 }
  0x24   :  { %703 = vmatpush3.bf16.msra.mxu0 %v760_v46  ;;  %536 = vmatmul.mubr.bf16.vlgmr.msra.gmra.mxu1 %v167_v48 }
  0x25   :  { %704 = vmatprep.subr.bf16.mxu0 %v761_v49  ;;  %575 = vmatprep.mubr.bf16.mxu0 %v166_v51 }
  0x28   :  { %705 = vmatpush3.bf16.msra.mxu0 %v762_v52 }
  0x29   :  { %706 = vmatprep.subr.bf16.mxu0 %v763_v53 }
  0x2c   :  { %707 = vmatpush3.bf16.msra.mxu0 %v764_v54 }
  0x2d   :  { %708 = vmatprep.subr.bf16.mxu0 %v765_v55 }
  0x30   :  { %709 = vmatpush3.bf16.msra.mxu0 %v766_v56 }
  0x31   :  { %710 = vmatprep.subr.bf16.mxu0 %v767_v57 }
  0x34   :  { %711 = vmatpush3.bf16.msra.mxu0 %v768_v58 }
  0x35   :  { %712 = vmatprep.subr.bf16.mxu0 %v769_v59 }
  0x38   :  { %713 = vmatpush3.bf16.msra.mxu0 %v770_v60 }
  0x39   :  { %714 = vmatprep.subr.bf16.mxu0 %v771_v61 }
  0x3c   :  { %715 = vmatpush3.bf16.msra.mxu0 %v772_v62 }
  0x3d   :  { %716 = vmatprep.subr.bf16.mxu0 %v773_v63 }
  0x40   :  { %717 = vmatpush3.bf16.msra.mxu0 %v774_v0 }
  0x43   :  { %576 = vmatmul.mubr.bf16.vlgmr.msra.gmra.mxu0 %v152_v1 }
  0xe3   :  { %v674_v4 = vpop.f32.mrf.mxu0 }
  0xe4   :  { %v696_v5 = vpop.f32.mrf.mxu1 }
  0xe5   :  { %v675_v6 = vpop.f32.mrf.mxu0 }
  0xe6   :  { %v697_v7 = vpop.f32.mrf.mxu1  ;;  %v676_v12 = vadd.f32 %v675_v6, %v674_v4 }
  0xe7   :  { %v677_v8 = vpop.f32.mrf.mxu0  ;;  %v698_v13 = vadd.f32 %v697_v7, %v696_v5 }
  0xe8   :  { %v699_v10 = vpop.f32.mrf.mxu1 }
  0xe9   :  { %v678_v9 = vpop.f32.mrf.mxu0  ;;  %v538_v16 = vadd.f32 %v698_v13, %v676_v12 }
  0xea   :  { %v700_v11 = vpop.f32.mrf.mxu1 }
 0x103   :  { %v718_v14 = vpop.f32.mrf.mxu0 }
 0x105   :  { %v719_v15 = vpop.f32.mrf.mxu0 }
 0x106   :  { %v720_v17 = vadd.f32 %v719_v15, %v718_v14 }
 0x107   :  { %v721_v19 = vpop.f32.mrf.mxu0 }
 0x108   :  { %v578_v20 = vadd.f32 %v720_v17, %v538_v16 }
 0x109   :  { %v722_v21 = vpop.f32.mrf.mxu0 }
 0x10a   :  { %v583_v22 = vadd.f32 %v578_v20, %v23_v18 }
 0x10c   :  { %585 = vst.msk [vmem:[#allocation2] sm:$0x3] %vm21_vm0, %v583_v22 }
 0x113   :  { %v589_v24 = vld [vmem:[#allocation2] sm:$0x3] }
 0x114   :  { %v597_v25 = vadd.f32 %v657_v23, %v589_v24 }
 0x116   :  { %v598_v26 = vsub.f32 0.0, %v597_v25 }
 0x118   :  { %v599_v27 = vmul.f32 1.442695, %v598_v26 }
 0x11a   :  { %775 = vpow2.f32 %v599_v27 }
 0x127   :  { %v776_v28 = vpop.eup %775 }
 0x128   :  { %v601_v29 = vadd.f32 1.0, %v776_v28 }
 0x12a   :  { %777 = vrcp.f32 %v601_v29 }
 0x137   :  { %v778_v30 = vpop.eup %777 }
 0x138   :  { %604 = vst.msk [vmem:[%s960_s3] sm:$0x3] %vm21_vm0, %v778_v30 }

</bundles_post_ra>
